<compile_context>
chip_gen: v6e
topology: v6e:2x2x1
jax: 0.10.0
libtpu: 0.0.40
codegen_flags: <defaults>
</compile_context>

<pallas_src>
import functools

import jax
import jax.numpy as jnp
from jax.experimental import pallas as pl
from jax.experimental.pallas import tpu as pltpu

LATENT_DIM = 100                 # nn.Linear(latent_dim, 128)
HIDDEN = (128, 256, 512, 1024)
OUT_DIM = 784                    # 1 x 28 x 28
PAD_LATENT = 128                 # lane-align 100 -> 128  (zero padded, exact)
PAD_OUT = 896                    # lane-align 784 -> 7*128 (padded weights only)
BN_EPS = 1e-5
LEAK = 0.2

# (K, N) of every matmul at padded dims; weights stored (in, out) in bf16.
LAYERS = ((PAD_LATENT, 128), (128, 256), (256, 512), (512, 1024), (1024, PAD_OUT))


def _leaky_relu(x):
    return jnp.where(x >= 0.0, x, LEAK * x)


@functools.lru_cache(maxsize=None)
def _vmem_limit():
    """Generation-specific scoped-VMEM budget in bytes."""
    cap = 64 << 20
    try:
        info = pltpu.get_tpu_info()
        cap = int(getattr(info, "vmem_capacity_bytes", cap))
    except Exception:
        pass
    if cap >= (128 << 20):       # v5e / v6e: 128 MiB physical VMEM
        return 96 << 20
    return 32 << 20              # v7x: 64 MiB physical VMEM


def _cost_estimate(batch, layers, act_bytes, transcendentals=0):
    flops = 2 * batch * sum(k * n for k, n in layers)
    bytes_accessed = sum(k * n * 2 for k, n in layers) + act_bytes   # bf16 weights
    return pl.CostEstimate(flops=int(flops), transcendentals=int(transcendentals),
                           bytes_accessed=int(bytes_accessed))


# ---------------------------------------------------------------------------
# Path 1: single fused kernel (whole batch resident in VMEM).  One HBM pass
# over weights + z + out; used whenever the batch fits the VMEM budget.
# ---------------------------------------------------------------------------
def _fused_kernel(z_ref, w1_ref, b1_ref,
                  w2_ref, b2_ref, g2_ref, be2_ref,
                  w3_ref, b3_ref, g3_ref, be3_ref,
                  w4_ref, b4_ref, g4_ref, be4_ref,
                  w5_ref, b5_ref, out_ref):
    h = jnp.dot(z_ref[...].astype(jnp.bfloat16), w1_ref[...],
                preferred_element_type=jnp.float32) + b1_ref[...]
    h = _leaky_relu(h)
    for w_ref, b_ref, g_ref, be_ref in ((w2_ref, b2_ref, g2_ref, be2_ref),
                                        (w3_ref, b3_ref, g3_ref, be3_ref),
                                        (w4_ref, b4_ref, g4_ref, be4_ref)):
        a = jnp.dot(h.astype(jnp.bfloat16), w_ref[...],
                    preferred_element_type=jnp.float32) + b_ref[...]
        mu = jnp.mean(a, axis=0, keepdims=True)
        var = jnp.mean(a * a, axis=0, keepdims=True) - mu * mu   # E[x^2]-mu^2
        scale = g_ref[...] * jax.lax.rsqrt(var + BN_EPS)
        shift = be_ref[...] - mu * scale
        h = _leaky_relu(a * scale + shift)
    y = jnp.dot(h.astype(jnp.bfloat16), w5_ref[...],
                preferred_element_type=jnp.float32) + b5_ref[...]
    out_ref[...] = jnp.tanh(y[:, :OUT_DIM])     # drop lane padding in-kernel


def _forward_fused(z_pad, p):
    B = z_pad.shape[0]
    args = (z_pad,
            p["w1"], p["b1"],
            p["w2"], p["b2"], p["g2"], p["be2"],
            p["w3"], p["b3"], p["g3"], p["be3"],
            p["w4"], p["b4"], p["g4"], p["be4"],
            p["w5"], p["b5"])
    vmem = pl.BlockSpec(memory_space=pltpu.MemorySpace.VMEM)
    return pl.pallas_call(
        _fused_kernel,
        out_shape=jax.ShapeDtypeStruct((B, OUT_DIM), jnp.float32),
        in_specs=[vmem] * len(args),
        out_specs=vmem,
        compiler_params=pltpu.CompilerParams(vmem_limit_bytes=_vmem_limit()),
        cost_estimate=_cost_estimate(B, LAYERS,
                                     act_bytes=B * (PAD_LATENT + OUT_DIM) * 4,
                                     transcendentals=B * OUT_DIM),
    )(*args)


# ---------------------------------------------------------------------------
# Path 2: batch-tiled pipeline (grid over batch, weights resident in VMEM).
# Inter-stage activations are bf16; BN stats come out as per-tile partial sums
# (reduced in JAX glue) so every stage runs with a "parallel" batch axis.
# ---------------------------------------------------------------------------
def _write_partial_stats(a_f32, s_ref, ss_ref):
    # Partial (per batch tile) sum / sum-of-squares, computed from the f32
    # pre-BN activation; broadcast across 8 sublanes for a clean (8,w) store.
    s = jnp.sum(a_f32, axis=0, keepdims=True)            # (1, w)
    ss = jnp.sum(a_f32 * a_f32, axis=0, keepdims=True)   # (1, w)
    s_ref[...] = jnp.broadcast_to(s[None], s_ref.shape)
    ss_ref[...] = jnp.broadcast_to(ss[None], ss_ref.shape)


def _stage_first_kernel(z_ref, w1_ref, b1_ref, w2_ref, b2_ref,
                        a_ref, s_ref, ss_ref):
    # Linear(100->128)+LeakyReLU, then Linear(128->256) pre-BN activation.
    h = jnp.dot(z_ref[...].astype(jnp.bfloat16), w1_ref[...],
                preferred_element_type=jnp.float32) + b1_ref[...]
    h = _leaky_relu(h)
    a = jnp.dot(h.astype(jnp.bfloat16), w2_ref[...],
                preferred_element_type=jnp.float32) + b2_ref[...]
    a_ref[...] = a.astype(jnp.bfloat16)            # bf16 inter-stage activation
    _write_partial_stats(a, s_ref, ss_ref)


def _stage_mid_kernel(a_ref, scale_ref, shift_ref, w_ref, b_ref,
                      o_ref, s_ref, ss_ref):
    # BN(prev global stats, folded) + LeakyReLU + Linear; emit partial stats.
    x = a_ref[...].astype(jnp.float32)
    h = _leaky_relu(x * scale_ref[...] + shift_ref[...])
    a = jnp.dot(h.astype(jnp.bfloat16), w_ref[...],
                preferred_element_type=jnp.float32) + b_ref[...]
    o_ref[...] = a.astype(jnp.bfloat16)
    _write_partial_stats(a, s_ref, ss_ref)


def _stage_last_kernel(a_ref, scale_ref, shift_ref, w_ref, b_ref, o_ref):
    # BN + LeakyReLU + Linear(1024->896 padded) + slice to 784 + Tanh.
    x = a_ref[...].astype(jnp.float32)
    h = _leaky_relu(x * scale_ref[...] + shift_ref[...])
    y = jnp.dot(h.astype(jnp.bfloat16), w_ref[...],
                preferred_element_type=jnp.float32) + b_ref[...]
    o_ref[...] = jnp.tanh(y[:, :OUT_DIM])


def _bn_affine_from_partials(s_parts, ss_parts, gamma, beta, batch):
    """Reduce per-tile partial sums and fold BN into per-feature scale/shift."""
    s = jnp.sum(s_parts[:, 0, :], axis=0, keepdims=True)     # (1, w)
    ss = jnp.sum(ss_parts[:, 0, :], axis=0, keepdims=True)
    mean = s / batch
    var = ss / batch - mean * mean                            # biased variance
    scale = gamma * jax.lax.rsqrt(var + BN_EPS)
    shift = beta - mean * scale
    return scale, shift


def _forward_tiled(z_pad, p, batch_tile):
    B = z_pad.shape[0]
    T = batch_tile
    assert B % T == 0 and T % 128 == 0, \
        "batch must be divisible by batch_tile; batch_tile must be a multiple of 128"
    nt = B // T
    cp = pltpu.CompilerParams(dimension_semantics=("parallel",),
                              vmem_limit_bytes=_vmem_limit())

    def tile(width):                       # batch-tiled activation spec
        return pl.BlockSpec((T, width), lambda i: (i, 0))

    def res(shape):                        # resident (weights / vectors) spec
        return pl.BlockSpec(shape, lambda i: (0,) * len(shape))

    def stat_spec(width):                  # per-tile partial-statistics slab
        return pl.BlockSpec((1, 8, width), lambda i: (i, 0, 0))

    def stat_shape(width):
        return jax.ShapeDtypeStruct((nt, 8, width), jnp.float32)

    # Stage 1: z -> pre-BN activation of layer 2 (bf16) + per-tile stats.
    a, s_p, ss_p = pl.pallas_call(
        _stage_first_kernel,
        grid=(nt,),
        in_specs=[tile(PAD_LATENT),
                  res((PAD_LATENT, 128)), res((1, 128)),
                  res((128, 256)), res((1, 256))],
        out_specs=[tile(256), stat_spec(256), stat_spec(256)],
        out_shape=[jax.ShapeDtypeStruct((B, 256), jnp.bfloat16),
                   stat_shape(256), stat_shape(256)],
        compiler_params=cp,
        cost_estimate=_cost_estimate(B, LAYERS[:2],
                                     act_bytes=B * (PAD_LATENT * 4 + 256 * 2)),
    )(z_pad, p["w1"], p["b1"], p["w2"], p["b2"])

    # Stages 2 & 3: normalize with previous global stats, LeakyReLU, next Linear.
    for i, (w_in, w_out) in ((2, (256, 512)), (3, (512, 1024))):
        scale, shift = _bn_affine_from_partials(s_p, ss_p, p[f"g{i}"], p[f"be{i}"], B)
        a, s_p, ss_p = pl.pallas_call(
            _stage_mid_kernel,
            grid=(nt,),
            in_specs=[tile(w_in), res((1, w_in)), res((1, w_in)),
                      res((w_in, w_out)), res((1, w_out))],
            out_specs=[tile(w_out), stat_spec(w_out), stat_spec(w_out)],
            out_shape=[jax.ShapeDtypeStruct((B, w_out), jnp.bfloat16),
                       stat_shape(w_out), stat_shape(w_out)],
            compiler_params=cp,
            cost_estimate=_cost_estimate(B, [(w_in, w_out)],
                                         act_bytes=B * (w_in + w_out) * 2),
        )(a, scale, shift, p[f"w{i+1}"], p[f"b{i+1}"])

    # Final stage: BN(1024) + LeakyReLU + Linear(1024, 784) + Tanh.
    scale, shift = _bn_affine_from_partials(s_p, ss_p, p["g4"], p["be4"], B)
    out = pl.pallas_call(
        _stage_last_kernel,
        grid=(nt,),
        in_specs=[tile(1024), res((1, 1024)), res((1, 1024)),
                  res((1024, PAD_OUT)), res((1, PAD_OUT))],
        out_specs=pl.BlockSpec((T, OUT_DIM), lambda i: (i, 0)),
        out_shape=jax.ShapeDtypeStruct((B, OUT_DIM), jnp.float32),
        compiler_params=cp,
        cost_estimate=_cost_estimate(B, [(1024, PAD_OUT)],
                                     act_bytes=B * (1024 * 2 + OUT_DIM * 4),
                                     transcendentals=B * OUT_DIM),
    )(a, scale, shift, p["w5"], p["b5"])
    return out


# ---------------------------------------------------------------------------
# Public forward + parameter handling.
# ---------------------------------------------------------------------------
def _auto_batch_tile(B):
    """VMEM-budget-driven path selection (0 -> fused, >0 -> tiled with that tile)."""
    vmem_limit = _vmem_limit()
    weight_bytes = 4 << 20            # bf16 weights + biases (~3.3 MiB) + slack
    per_sample = 24 * 1024            # conservative peak live-activation bytes/row
    if weight_bytes + B * per_sample <= vmem_limit:
        return 0                      # fused: whole batch resident, one HBM pass
    for t in (1024, 512, 256, 128):   # largest lane-friendly tile dividing B
        if B % t == 0 and B > t:
            return t
    # TODO(synk): odd very-large batches fall back to the fused path (training-
    # mode BN needs whole-batch stats and tiles must divide the batch).
    return 0


@functools.partial(jax.jit, static_argnames=("batch_tile",))
def generator_forward(z, params, *, batch_tile=None):
    """z: (B, 100) f32 -> img: (B, 1, 28, 28) f32.

    batch_tile: None -> auto (VMEM-budget driven); 0 -> force fused;
    >0 -> force tiled with that batch tile (must divide B; BN training mode).
    """
    B = z.shape[0]
    z_pad = jnp.pad(z, ((0, 0), (0, PAD_LATENT - LATENT_DIM)))   # exact (zeros)
    if batch_tile is None:
        batch_tile = _auto_batch_tile(B)
    if batch_tile:
        flat = _forward_tiled(z_pad, params, batch_tile)
    else:
        flat = _forward_fused(z_pad, params)
    # Kernels already emit the unpadded (B, 784) slab -> reshape is metadata only.
    return flat.reshape(B, 1, 28, 28)


def init_params(key):
    """Deterministic synthetic parameters with the module's (unpadded) shapes."""
    dims = [LATENT_DIM, *HIDDEN, OUT_DIM]
    keys = jax.random.split(key, 2 * (len(dims) - 1))
    params = {}
    for i in range(len(dims) - 1):
        fan_in, fan_out = dims[i], dims[i + 1]
        scale = 1.0 / jnp.sqrt(jnp.float32(fan_in))
        params[f"w{i+1}"] = scale * jax.random.normal(
            keys[2 * i], (fan_in, fan_out), jnp.float32)
        params[f"b{i+1}"] = scale * jax.random.normal(
            keys[2 * i + 1], (fan_out,), jnp.float32)
    for i, n in zip((2, 3, 4), HIDDEN[1:]):
        params[f"g{i}"] = jnp.ones((n,), jnp.float32)     # BatchNorm gamma
        params[f"be{i}"] = jnp.zeros((n,), jnp.float32)   # BatchNorm beta
    return params


def prepare_params(raw):
    """Pad to lane-aligned dims and cast weights to bf16 (biases/BN stay f32)."""
    p = {}
    w1 = jnp.pad(raw["w1"], ((0, PAD_LATENT - LATENT_DIM), (0, 0)))
    w5 = jnp.pad(raw["w5"], ((0, 0), (0, PAD_OUT - OUT_DIM)))
    b5 = jnp.pad(raw["b5"], (0, PAD_OUT - OUT_DIM))
    p["w1"] = w1.astype(jnp.bfloat16)
    p["b1"] = raw["b1"].reshape(1, -1)
    for i in (2, 3, 4):
        p[f"w{i}"] = raw[f"w{i}"].astype(jnp.bfloat16)
        p[f"b{i}"] = raw[f"b{i}"].reshape(1, -1)
        p[f"g{i}"] = raw[f"g{i}"].reshape(1, -1)
        p[f"be{i}"] = raw[f"be{i}"].reshape(1, -1)
    p["w5"] = w5.astype(jnp.bfloat16)
    p["b5"] = b5.reshape(1, -1)
    return p


def reference_forward(z, p):
    """Pure-JAX reference mirroring the module math (bf16 matmuls, f32 BN/tanh)."""
    B = z.shape[0]
    bf = jnp.bfloat16
    z_pad = jnp.pad(z, ((0, 0), (0, PAD_LATENT - LATENT_DIM)))
    h = jnp.dot(z_pad.astype(bf), p["w1"], preferred_element_type=jnp.float32) + p["b1"]
    h = jnp.where(h >= 0, h, LEAK * h)
    for i in (2, 3, 4):
        a = jnp.dot(h.astype(bf), p[f"w{i}"],
                    preferred_element_type=jnp.float32) + p[f"b{i}"]
        mu = jnp.mean(a, axis=0, keepdims=True)
        var = jnp.mean(a * a, axis=0, keepdims=True) - mu * mu
        scale = p[f"g{i}"] * jax.lax.rsqrt(var + BN_EPS)
        shift = p[f"be{i}"] - mu * scale
        hp = a * scale + shift
        h = jnp.where(hp >= 0, hp, LEAK * hp)
    y = jnp.dot(h.astype(bf), p["w5"], preferred_element_type=jnp.float32) + p["b5"]
    return jnp.tanh(y)[:, :OUT_DIM].reshape(B, 1, 28, 28)


if __name__ == "__main__":
    key = jax.random.PRNGKey(0)
    pkey, zkey = jax.random.split(key)
    params = prepare_params(init_params(pkey))

    # 1) Small batch -> single fused kernel (BatchNorm training mode needs B > 1).
    B_small = 8
    z_small = jax.random.normal(zkey, (B_small, LATENT_DIM), jnp.float32)
    img_small = jax.block_until_ready(generator_forward(z_small, params))
    ref_small = reference_forward(z_small, params)
    assert img_small.shape == (B_small, 1, 28, 28), img_small.shape
    assert jnp.allclose(img_small, ref_small, atol=3e-3, rtol=0.0), \
        "fused path mismatch vs reference"

    # 2) Forced tiled path (2 batch tiles): checks cross-tile BN stat reduction
    #    and the bf16 inter-stage activations (slightly wider tolerance).
    B_big = 512
    z_big = jax.random.normal(jax.random.fold_in(zkey, 1),
                              (B_big, LATENT_DIM), jnp.float32)
    img_big = jax.block_until_ready(
        generator_forward(z_big, params, batch_tile=256))
    ref_big = reference_forward(z_big, params)
    assert img_big.shape == (B_big, 1, 28, 28), img_big.shape
    assert jnp.allclose(img_big, ref_big, atol=3e-2, rtol=0.0), \
        "tiled path mismatch vs reference"

    print("KERNEL_OK")
</pallas_src>

<mosaic_0001>
module attributes {stable_mosaic.version = 11 : i64} {
  func.func @_fused_kernel(%arg0: memref<8x128xf32, #tpu.memory_space<vmem>>, %arg1: memref<128x128xbf16, #tpu.memory_space<vmem>>, %arg2: memref<1x128xf32, #tpu.memory_space<vmem>>, %arg3: memref<128x256xbf16, #tpu.memory_space<vmem>>, %arg4: memref<1x256xf32, #tpu.memory_space<vmem>>, %arg5: memref<1x256xf32, #tpu.memory_space<vmem>>, %arg6: memref<1x256xf32, #tpu.memory_space<vmem>>, %arg7: memref<256x512xbf16, #tpu.memory_space<vmem>>, %arg8: memref<1x512xf32, #tpu.memory_space<vmem>>, %arg9: memref<1x512xf32, #tpu.memory_space<vmem>>, %arg10: memref<1x512xf32, #tpu.memory_space<vmem>>, %arg11: memref<512x1024xbf16, #tpu.memory_space<vmem>>, %arg12: memref<1x1024xf32, #tpu.memory_space<vmem>>, %arg13: memref<1x1024xf32, #tpu.memory_space<vmem>>, %arg14: memref<1x1024xf32, #tpu.memory_space<vmem>>, %arg15: memref<1024x896xbf16, #tpu.memory_space<vmem>>, %arg16: memref<1x896xf32, #tpu.memory_space<vmem>>, %arg17: memref<8x784xf32, #tpu.memory_space<vmem>>) attributes {dimension_semantics = [], scalar_prefetch = 0 : i64, scratch_operands = 0 : i64, tpu.core_type = #tpu.core_type<tc>} {
    %c0 = arith.constant 0 : index
    %c0_0 = arith.constant 0 : index
    %0 = vector.load %arg0[%c0, %c0_0] : memref<8x128xf32, #tpu.memory_space<vmem>>, vector<8x128xf32>
    %1 = arith.truncf %0 : vector<8x128xf32> to vector<8x128xbf16>
    %c0_1 = arith.constant 0 : index
    %c0_2 = arith.constant 0 : index
    %2 = vector.load %arg1[%c0_1, %c0_2] : memref<128x128xbf16, #tpu.memory_space<vmem>>, vector<128x128xbf16>
    %cst = arith.constant dense<0.000000e+00> : vector<8x128xf32>
    %3 = tpu.matmul %1, %2, %cst {dimension_numbers = #tpu.dot_dimension_numbers<[1], [0], [0], [1], [0, 0, 1, 1], [], []>} : vector<8x128xbf16>, vector<128x128xbf16>, vector<8x128xf32> -> vector<8x128xf32>
    %c0_3 = arith.constant 0 : index
    %c0_4 = arith.constant 0 : index
    %4 = vector.load %arg2[%c0_3, %c0_4] : memref<1x128xf32, #tpu.memory_space<vmem>>, vector<1x128xf32>
    %5 = vector.broadcast %4 : vector<1x128xf32> to vector<8x128xf32>
    %6 = arith.addf %3, %5 : vector<8x128xf32>
    %cst_5 = arith.constant 0.000000e+00 : f32
    %7 = vector.broadcast %cst_5 : f32 to vector<8x128xf32>
    %8 = arith.cmpf oge, %6, %7 : vector<8x128xf32>
    %cst_6 = arith.constant 2.000000e-01 : f32
    %9 = vector.broadcast %cst_6 : f32 to vector<8x128xf32>
    %10 = arith.mulf %9, %6 : vector<8x128xf32>
    %11 = arith.select %8, %6, %10 : vector<8x128xi1>, vector<8x128xf32>
    %12 = arith.truncf %11 : vector<8x128xf32> to vector<8x128xbf16>
    %c0_7 = arith.constant 0 : index
    %c0_8 = arith.constant 0 : index
    %13 = vector.load %arg3[%c0_7, %c0_8] : memref<128x256xbf16, #tpu.memory_space<vmem>>, vector<128x256xbf16>
    %cst_9 = arith.constant dense<0.000000e+00> : vector<8x256xf32>
    %14 = tpu.matmul %12, %13, %cst_9 {dimension_numbers = #tpu.dot_dimension_numbers<[1], [0], [0], [1], [0, 0, 1, 1], [], []>} : vector<8x128xbf16>, vector<128x256xbf16>, vector<8x256xf32> -> vector<8x256xf32>
    %c0_10 = arith.constant 0 : index
    %c0_11 = arith.constant 0 : index
    %15 = vector.load %arg4[%c0_10, %c0_11] : memref<1x256xf32, #tpu.memory_space<vmem>>, vector<1x256xf32>
    %16 = vector.broadcast %15 : vector<1x256xf32> to vector<8x256xf32>
    %17 = arith.addf %14, %16 : vector<8x256xf32>
    %cst_12 = arith.constant dense<0.000000e+00> : vector<256xf32>
    %18 = vector.multi_reduction <add>, %17, %cst_12 [0] : vector<8x256xf32> to vector<256xf32>
    %19 = vector.shape_cast %18 : vector<256xf32> to vector<1x256xf32>
    %cst_13 = arith.constant 8.000000e+00 : f32
    %20 = vector.broadcast %cst_13 : f32 to vector<1x256xf32>
    %21 = arith.divf %19, %20 : vector<1x256xf32>
    %22 = arith.mulf %17, %17 : vector<8x256xf32>
    %cst_14 = arith.constant dense<0.000000e+00> : vector<256xf32>
    %23 = vector.multi_reduction <add>, %22, %cst_14 [0] : vector<8x256xf32> to vector<256xf32>
    %24 = vector.shape_cast %23 : vector<256xf32> to vector<1x256xf32>
    %cst_15 = arith.constant 8.000000e+00 : f32
    %25 = vector.broadcast %cst_15 : f32 to vector<1x256xf32>
    %26 = arith.divf %24, %25 : vector<1x256xf32>
    %27 = arith.mulf %21, %21 : vector<1x256xf32>
    %28 = arith.subf %26, %27 : vector<1x256xf32>
    %c0_16 = arith.constant 0 : index
    %c0_17 = arith.constant 0 : index
    %29 = vector.load %arg5[%c0_16, %c0_17] : memref<1x256xf32, #tpu.memory_space<vmem>>, vector<1x256xf32>
    %cst_18 = arith.constant 9.99999974E-6 : f32
    %30 = vector.broadcast %cst_18 : f32 to vector<1x256xf32>
    %31 = arith.addf %28, %30 : vector<1x256xf32>
    %32 = math.rsqrt %31 : vector<1x256xf32>
    %33 = arith.mulf %29, %32 : vector<1x256xf32>
    %c0_19 = arith.constant 0 : index
    %c0_20 = arith.constant 0 : index
    %34 = vector.load %arg6[%c0_19, %c0_20] : memref<1x256xf32, #tpu.memory_space<vmem>>, vector<1x256xf32>
    %35 = arith.mulf %21, %33 : vector<1x256xf32>
    %36 = arith.subf %34, %35 : vector<1x256xf32>
    %37 = vector.broadcast %33 : vector<1x256xf32> to vector<8x256xf32>
    %38 = arith.mulf %17, %37 : vector<8x256xf32>
    %39 = vector.broadcast %36 : vector<1x256xf32> to vector<8x256xf32>
    %40 = arith.addf %38, %39 : vector<8x256xf32>
    %cst_21 = arith.constant 0.000000e+00 : f32
    %41 = vector.broadcast %cst_21 : f32 to vector<8x256xf32>
    %42 = arith.cmpf oge, %40, %41 : vector<8x256xf32>
    %cst_22 = arith.constant 2.000000e-01 : f32
    %43 = vector.broadcast %cst_22 : f32 to vector<8x256xf32>
    %44 = arith.mulf %43, %40 : vector<8x256xf32>
    %45 = arith.select %42, %40, %44 : vector<8x256xi1>, vector<8x256xf32>
    %46 = arith.truncf %45 : vector<8x256xf32> to vector<8x256xbf16>
    %c0_23 = arith.constant 0 : index
    %c0_24 = arith.constant 0 : index
    %47 = vector.load %arg7[%c0_23, %c0_24] : memref<256x512xbf16, #tpu.memory_space<vmem>>, vector<256x512xbf16>
    %cst_25 = arith.constant dense<0.000000e+00> : vector<8x512xf32>
    %48 = tpu.matmul %46, %47, %cst_25 {dimension_numbers = #tpu.dot_dimension_numbers<[1], [0], [0], [1], [0, 0, 1, 1], [], []>} : vector<8x256xbf16>, vector<256x512xbf16>, vector<8x512xf32> -> vector<8x512xf32>
    %c0_26 = arith.constant 0 : index
    %c0_27 = arith.constant 0 : index
    %49 = vector.load %arg8[%c0_26, %c0_27] : memref<1x512xf32, #tpu.memory_space<vmem>>, vector<1x512xf32>
    %50 = vector.broadcast %49 : vector<1x512xf32> to vector<8x512xf32>
    %51 = arith.addf %48, %50 : vector<8x512xf32>
    %cst_28 = arith.constant dense<0.000000e+00> : vector<512xf32>
    %52 = vector.multi_reduction <add>, %51, %cst_28 [0] : vector<8x512xf32> to vector<512xf32>
    %53 = vector.shape_cast %52 : vector<512xf32> to vector<1x512xf32>
    %cst_29 = arith.constant 8.000000e+00 : f32
    %54 = vector.broadcast %cst_29 : f32 to vector<1x512xf32>
    %55 = arith.divf %53, %54 : vector<1x512xf32>
    %56 = arith.mulf %51, %51 : vector<8x512xf32>
    %cst_30 = arith.constant dense<0.000000e+00> : vector<512xf32>
    %57 = vector.multi_reduction <add>, %56, %cst_30 [0] : vector<8x512xf32> to vector<512xf32>
    %58 = vector.shape_cast %57 : vector<512xf32> to vector<1x512xf32>
    %cst_31 = arith.constant 8.000000e+00 : f32
    %59 = vector.broadcast %cst_31 : f32 to vector<1x512xf32>
    %60 = arith.divf %58, %59 : vector<1x512xf32>
    %61 = arith.mulf %55, %55 : vector<1x512xf32>
    %62 = arith.subf %60, %61 : vector<1x512xf32>
    %c0_32 = arith.constant 0 : index
    %c0_33 = arith.constant 0 : index
    %63 = vector.load %arg9[%c0_32, %c0_33] : memref<1x512xf32, #tpu.memory_space<vmem>>, vector<1x512xf32>
    %cst_34 = arith.constant 9.99999974E-6 : f32
    %64 = vector.broadcast %cst_34 : f32 to vector<1x512xf32>
    %65 = arith.addf %62, %64 : vector<1x512xf32>
    %66 = math.rsqrt %65 : vector<1x512xf32>
    %67 = arith.mulf %63, %66 : vector<1x512xf32>
    %c0_35 = arith.constant 0 : index
    %c0_36 = arith.constant 0 : index
    %68 = vector.load %arg10[%c0_35, %c0_36] : memref<1x512xf32, #tpu.memory_space<vmem>>, vector<1x512xf32>
    %69 = arith.mulf %55, %67 : vector<1x512xf32>
    %70 = arith.subf %68, %69 : vector<1x512xf32>
    %71 = vector.broadcast %67 : vector<1x512xf32> to vector<8x512xf32>
    %72 = arith.mulf %51, %71 : vector<8x512xf32>
    %73 = vector.broadcast %70 : vector<1x512xf32> to vector<8x512xf32>
    %74 = arith.addf %72, %73 : vector<8x512xf32>
    %cst_37 = arith.constant 0.000000e+00 : f32
    %75 = vector.broadcast %cst_37 : f32 to vector<8x512xf32>
    %76 = arith.cmpf oge, %74, %75 : vector<8x512xf32>
    %cst_38 = arith.constant 2.000000e-01 : f32
    %77 = vector.broadcast %cst_38 : f32 to vector<8x512xf32>
    %78 = arith.mulf %77, %74 : vector<8x512xf32>
    %79 = arith.select %76, %74, %78 : vector<8x512xi1>, vector<8x512xf32>
    %80 = arith.truncf %79 : vector<8x512xf32> to vector<8x512xbf16>
    %c0_39 = arith.constant 0 : index
    %c0_40 = arith.constant 0 : index
    %81 = vector.load %arg11[%c0_39, %c0_40] : memref<512x1024xbf16, #tpu.memory_space<vmem>>, vector<512x1024xbf16>
    %cst_41 = arith.constant dense<0.000000e+00> : vector<8x1024xf32>
    %82 = tpu.matmul %80, %81, %cst_41 {dimension_numbers = #tpu.dot_dimension_numbers<[1], [0], [0], [1], [0, 0, 1, 1], [], []>} : vector<8x512xbf16>, vector<512x1024xbf16>, vector<8x1024xf32> -> vector<8x1024xf32>
    %c0_42 = arith.constant 0 : index
    %c0_43 = arith.constant 0 : index
    %83 = vector.load %arg12[%c0_42, %c0_43] : memref<1x1024xf32, #tpu.memory_space<vmem>>, vector<1x1024xf32>
    %84 = vector.broadcast %83 : vector<1x1024xf32> to vector<8x1024xf32>
    %85 = arith.addf %82, %84 : vector<8x1024xf32>
    %cst_44 = arith.constant dense<0.000000e+00> : vector<1024xf32>
    %86 = vector.multi_reduction <add>, %85, %cst_44 [0] : vector<8x1024xf32> to vector<1024xf32>
    %87 = vector.shape_cast %86 : vector<1024xf32> to vector<1x1024xf32>
    %cst_45 = arith.constant 8.000000e+00 : f32
    %88 = vector.broadcast %cst_45 : f32 to vector<1x1024xf32>
    %89 = arith.divf %87, %88 : vector<1x1024xf32>
    %90 = arith.mulf %85, %85 : vector<8x1024xf32>
    %cst_46 = arith.constant dense<0.000000e+00> : vector<1024xf32>
    %91 = vector.multi_reduction <add>, %90, %cst_46 [0] : vector<8x1024xf32> to vector<1024xf32>
    %92 = vector.shape_cast %91 : vector<1024xf32> to vector<1x1024xf32>
    %cst_47 = arith.constant 8.000000e+00 : f32
    %93 = vector.broadcast %cst_47 : f32 to vector<1x1024xf32>
    %94 = arith.divf %92, %93 : vector<1x1024xf32>
    %95 = arith.mulf %89, %89 : vector<1x1024xf32>
    %96 = arith.subf %94, %95 : vector<1x1024xf32>
    %c0_48 = arith.constant 0 : index
    %c0_49 = arith.constant 0 : index
    %97 = vector.load %arg13[%c0_48, %c0_49] : memref<1x1024xf32, #tpu.memory_space<vmem>>, vector<1x1024xf32>
    %cst_50 = arith.constant 9.99999974E-6 : f32
    %98 = vector.broadcast %cst_50 : f32 to vector<1x1024xf32>
    %99 = arith.addf %96, %98 : vector<1x1024xf32>
    %100 = math.rsqrt %99 : vector<1x1024xf32>
    %101 = arith.mulf %97, %100 : vector<1x1024xf32>
    %c0_51 = arith.constant 0 : index
    %c0_52 = arith.constant 0 : index
    %102 = vector.load %arg14[%c0_51, %c0_52] : memref<1x1024xf32, #tpu.memory_space<vmem>>, vector<1x1024xf32>
    %103 = arith.mulf %89, %101 : vector<1x1024xf32>
    %104 = arith.subf %102, %103 : vector<1x1024xf32>
    %105 = vector.broadcast %101 : vector<1x1024xf32> to vector<8x1024xf32>
    %106 = arith.mulf %85, %105 : vector<8x1024xf32>
    %107 = vector.broadcast %104 : vector<1x1024xf32> to vector<8x1024xf32>
    %108 = arith.addf %106, %107 : vector<8x1024xf32>
    %cst_53 = arith.constant 0.000000e+00 : f32
    %109 = vector.broadcast %cst_53 : f32 to vector<8x1024xf32>
    %110 = arith.cmpf oge, %108, %109 : vector<8x1024xf32>
    %cst_54 = arith.constant 2.000000e-01 : f32
    %111 = vector.broadcast %cst_54 : f32 to vector<8x1024xf32>
    %112 = arith.mulf %111, %108 : vector<8x1024xf32>
    %113 = arith.select %110, %108, %112 : vector<8x1024xi1>, vector<8x1024xf32>
    %114 = arith.truncf %113 : vector<8x1024xf32> to vector<8x1024xbf16>
    %c0_55 = arith.constant 0 : index
    %c0_56 = arith.constant 0 : index
    %115 = vector.load %arg15[%c0_55, %c0_56] : memref<1024x896xbf16, #tpu.memory_space<vmem>>, vector<1024x896xbf16>
    %cst_57 = arith.constant dense<0.000000e+00> : vector<8x896xf32>
    %116 = tpu.matmul %114, %115, %cst_57 {dimension_numbers = #tpu.dot_dimension_numbers<[1], [0], [0], [1], [0, 0, 1, 1], [], []>} : vector<8x1024xbf16>, vector<1024x896xbf16>, vector<8x896xf32> -> vector<8x896xf32>
    %c0_58 = arith.constant 0 : index
    %c0_59 = arith.constant 0 : index
    %117 = vector.load %arg16[%c0_58, %c0_59] : memref<1x896xf32, #tpu.memory_space<vmem>>, vector<1x896xf32>
    %118 = vector.broadcast %117 : vector<1x896xf32> to vector<8x896xf32>
    %119 = arith.addf %116, %118 : vector<8x896xf32>
    %120 = vector.extract_strided_slice %119 {offsets = [0, 0], sizes = [8, 784], strides = [1, 1]} : vector<8x896xf32> to vector<8x784xf32>
    %121 = math.tanh %120 : vector<8x784xf32>
    %c0_60 = arith.constant 0 : index
    %c0_61 = arith.constant 0 : index
    %122 = vector.load %arg17[%c0_60, %c0_61] : memref<8x784xf32, #tpu.memory_space<vmem>>, vector<8x784xf32>
    tpu.vector_store %arg17[%c0_60, %c0_61], %121 {strides = array<i32>} : memref<8x784xf32, #tpu.memory_space<vmem>>, vector<8x784xf32>,
    return
  }
}

</mosaic_0001>

<bundles_post_ra>
// kernel: generator_forward.1
= control target key start
LH: loop header
LB: loop body
LE: loop exit
PB: predicated region body
PF: predicated region fallthrough
CT: control target
= control target key end

     0   :  { %s9844_s0 = inlined_call_operand.vmem [shape: f32[8,128], index: 0, kind: input, shape index: {}]   ;;  %s9845_s1 = inlined_call_operand.hbm [shape: bf16[128,128], index: 1, kind: input, shape index: {}]   ;;  %s9846_s2 = inlined_call_operand.hbm [shape: f32[1,128], index: 2, kind: input, shape index: {}]   ;;  %s9847_s3 = inlined_call_operand.hbm [shape: bf16[128,256], index: 3, kind: input, shape index: {}]   ;;  %s9848_s4 = inlined_call_operand.hbm [shape: f32[1,256], index: 4, kind: input, shape index: {}]   ;;  %s9849_s5 = inlined_call_operand.hbm [shape: f32[1,256], index: 5, kind: input, shape index: {}]   ;;  %s9850_s6 = inlined_call_operand.hbm [shape: f32[1,256], index: 6, kind: input, shape index: {}]   ;;  %s9851_s7 = inlined_call_operand.hbm [shape: bf16[256,512], index: 7, kind: input, shape index: {}]   ;;  %s9852_s8 = inlined_call_operand.hbm [shape: f32[1,512], index: 8, kind: input, shape index: {}]   ;;  %s9853_s9 = inlined_call_operand.hbm [shape: f32[1,512], index: 9, kind: input, shape index: {}]   ;;  %s9854_s10 = inlined_call_operand.hbm [shape: f32[1,512], index: 10, kind: input, shape index: {}]   ;;  %s9855_s11 = inlined_call_operand.hbm [shape: bf16[512,1024], index: 11, kind: input, shape index: {}]   ;;  %s9856_s12 = inlined_call_operand.hbm [shape: f32[1,1024], index: 12, kind: input, shape index: {}]   ;;  %s9857_s13 = inlined_call_operand.hbm [shape: f32[1,1024], index: 13, kind: input, shape index: {}]   ;;  %s9858_s14 = inlined_call_operand.hbm [shape: f32[1,1024], index: 14, kind: input, shape index: {}]   ;;  %s9859_s15 = inlined_call_operand.hbm [shape: bf16[1024,896], index: 15, kind: input, shape index: {}]   ;;  %s9860_s16 = inlined_call_operand.hbm [shape: f32[1,896], index: 16, kind: input, shape index: {}]   ;;  %s9861_s17 = inlined_call_operand.vmem [shape: f32[8,784], index: 17, kind: output, shape index: {}]  }
   0x1   :  { %9862 = sst [smem:[#allocation36_spill]] %s9844_s0 }
   0x2   :  { %9863 = sst [smem:[#allocation37_spill]] %s9845_s1 }
   0x3   :  { %22 = vsyncpa [#allocation3], 0 }
   0x4   :  { %23 = vsyncpa [#allocation5], 0 }
   0x5   :  { %24 = vsyncpa [#allocation8], 0 }
   0x6   :  { %25 = vsyncpa [#allocation11], 0 }
   0x7   :  { %26 = vsyncpa [#allocation14], 0 }
   0x8   :  { %27 = vsyncpa [#allocation17], 0 }
   0x9   :  { %28 = vsyncpa [#allocation20], 0 }
   0xa   :  { %29 = vsyncpa [#allocation23], 0 }
   0xb   :  { %30 = vsyncpa [#allocation26], 0  ;;  %s9266_s24 = smov [#allocation4]   ;;  %s9267_s26 = smov [#allocation7]  }
   0xc   :  { %s51_s25 = sshll.u32 %s9266_s24, 4  ;;  %s73_s27 = sshll.u32 %s9267_s26, 4  ;;  %s52_s25 = int_to_ptr.vmem [resolvable:$true] %s51_s25  ;;  %s74_s27 = int_to_ptr.vmem [resolvable:$true] %s73_s27 }
   0xd   :  { %s8936_s28 = scalar_lea.vmem %s52_s25, 16  ;;  %s8940_s29 = scalar_lea.vmem %s52_s25, 32 }
   0xe   :  { %p8937_p0 = scmp.ne.s32.totalorder %s52_s25, %s8936_s28  ;;  %p8941_p1 = scmp.lt.s32.totalorder %s52_s25, %s52_s25 }
   0xf   :  { %p8942_p2 = scmp.lt.s32.totalorder %s8940_s29, %s8936_s28 }
  0x11   :  { %p8943_p3 = por %p8942_p2, %p8941_p1 }
  0x13   :  { %p8944_p4 = pnand %p8943_p3, %p8937_p0 }
  0x15   :  { %8947 = shalt.err (!%p8944_p4)
}
  0x16   :  { %54 = dma.hbm_to_vmem [thread:$0]  %s9846_s2, 16, %s52_s25, [#allocation5]  }
  0x17   :  { %s8956_s18 = scalar_lea.vmem %s74_s27, 32  ;;  %p8961_p6 = scmp.lt.s32.totalorder %s74_s27, %s74_s27 }
  0x18   :  { %p8957_p5 = scmp.ne.s32.totalorder %s74_s27, %s8956_s18  ;;  %p8962_p7 = scmp.lt.s32.totalorder %s8956_s18, %s8956_s18 }
  0x1a   :  { %p8963_p8 = por %p8962_p7, %p8961_p6 }
  0x1c   :  { %p8964_p9 = pnand %p8963_p8, %p8957_p5 }
  0x1e   :  { %8967 = shalt.err (!%p8964_p9)
}
  0x1f   :  { %76 = dma.hbm_to_vmem [thread:$0]  %s9848_s4, 32, %s74_s27, [#allocation8]  }
  0x20   :  { %s9268_s20 = smov [#allocation10]   ;;  %s9269_s22 = smov [#allocation13]  }
  0x21   :  { %s93_s21 = sshll.u32 %s9268_s20, 4  ;;  %s115_s23 = sshll.u32 %s9269_s22, 4  ;;  %s94_s21 = int_to_ptr.vmem [resolvable:$true] %s93_s21  ;;  %s116_s23 = int_to_ptr.vmem [resolvable:$true] %s115_s23 }
  0x22   :  { %s8976_s24 = scalar_lea.vmem %s94_s21, 32  ;;  %p8981_p11 = scmp.lt.s32.totalorder %s94_s21, %s94_s21 }
  0x23   :  { %p8977_p10 = scmp.ne.s32.totalorder %s94_s21, %s8976_s24  ;;  %p8982_p12 = scmp.lt.s32.totalorder %s8976_s24, %s8976_s24 }
  0x25   :  { %p8983_p13 = por %p8982_p12, %p8981_p11 }
  0x27   :  { %p8984_p0 = pnand %p8983_p13, %p8977_p10 }
  0x29   :  { %8987 = shalt.err (!%p8984_p0)
}
  0x2a   :  { %96 = dma.hbm_to_vmem [thread:$0]  %s9850_s6, 32, %s94_s21, [#allocation11]  }
  0x2b   :  { %s8996_s26 = scalar_lea.vmem %s116_s23, 64  ;;  %p9001_p2 = scmp.lt.s32.totalorder %s116_s23, %s116_s23 }
  0x2c   :  { %p8997_p1 = scmp.ne.s32.totalorder %s116_s23, %s8996_s26  ;;  %p9002_p3 = scmp.lt.s32.totalorder %s8996_s26, %s8996_s26 }
  0x2e   :  { %p9003_p4 = por %p9002_p3, %p9001_p2 }
  0x30   :  { %p9004_p5 = pnand %p9003_p4, %p8997_p1 }
  0x32   :  { %9007 = shalt.err (!%p9004_p5)
}
  0x33   :  { %118 = dma.hbm_to_vmem [thread:$0]  %s9852_s8, 64, %s116_s23, [#allocation14]  }
  0x34   :  { %s9270_s28 = smov [#allocation16]   ;;  %s9271_s0 = smov [#allocation19]  }
  0x35   :  { %s135_s29 = sshll.u32 %s9270_s28, 4  ;;  %s157_s30 = sshll.u32 %s9271_s0, 4  ;;  %s136_s29 = int_to_ptr.vmem [resolvable:$true] %s135_s29  ;;  %s158_s30 = int_to_ptr.vmem [resolvable:$true] %s157_s30 }
  0x36   :  { %s9016_s18 = scalar_lea.vmem %s136_s29, 64  ;;  %p9021_p7 = scmp.lt.s32.totalorder %s136_s29, %s136_s29 }
  0x37   :  { %p9017_p6 = scmp.ne.s32.totalorder %s136_s29, %s9016_s18  ;;  %p9022_p8 = scmp.lt.s32.totalorder %s9016_s18, %s9016_s18 }
  0x39   :  { %p9023_p9 = por %p9022_p8, %p9021_p7 }
  0x3b   :  { %p9024_p10 = pnand %p9023_p9, %p9017_p6 }
  0x3d   :  { %9027 = shalt.err (!%p9024_p10)
}
  0x3e   :  { %138 = dma.hbm_to_vmem [thread:$0]  %s9854_s10, 64, %s136_s29, [#allocation17]  }
  0x3f   :  { %s9036_s1 = scalar_lea.vmem %s158_s30, 128  ;;  %p9041_p12 = scmp.lt.s32.totalorder %s158_s30, %s158_s30 }
  0x40   :  { %p9037_p11 = scmp.ne.s32.totalorder %s158_s30, %s9036_s1  ;;  %p9042_p13 = scmp.lt.s32.totalorder %s9036_s1, %s9036_s1 }
  0x42   :  { %p9043_p0 = por %p9042_p13, %p9041_p12 }
  0x44   :  { %p9044_p1 = pnand %p9043_p0, %p9037_p11 }
  0x46   :  { %9047 = shalt.err (!%p9044_p1)
}
  0x47   :  { %160 = dma.hbm_to_vmem [thread:$0]  %s9856_s12, 128, %s158_s30, [#allocation20]  }
  0x48   :  { %s9272_s21 = smov [#allocation22]   ;;  %s9273_s23 = smov [#allocation2]  }
  0x49   :  { %s177_s22 = sshll.u32 %s9272_s21, 4  ;;  %s38_s24 = sshll.u32 %s9273_s23, 4  ;;  %s178_s22 = int_to_ptr.vmem [resolvable:$true] %s177_s22  ;;  %s39_s24 = int_to_ptr.vmem [resolvable:$true] %s38_s24 }
  0x4a   :  { %s9056_s2 = scalar_lea.vmem %s178_s22, 128  ;;  %p9061_p3 = scmp.lt.s32.totalorder %s178_s22, %s178_s22 }
  0x4b   :  { %p9057_p2 = scmp.ne.s32.totalorder %s178_s22, %s9056_s2  ;;  %p9062_p4 = scmp.lt.s32.totalorder %s9056_s2, %s9056_s2 }
  0x4d   :  { %p9063_p5 = por %p9062_p4, %p9061_p3 }
  0x4f   :  { %p9064_p6 = pnand %p9063_p5, %p9057_p2 }
  0x51   :  { %9067 = shalt.err (!%p9064_p6)
}
  0x52   :  { %180 = dma.hbm_to_vmem [thread:$0]  %s9858_s14, 128, %s178_s22, [#allocation23]  }
  0x53   :  { %s9076_s26 = scalar_lea.vmem %s39_s24, 1024  ;;  %p9081_p8 = scmp.lt.s32.totalorder %s39_s24, %s39_s24 }
  0x54   :  { %p9077_p7 = scmp.ne.s32.totalorder %s39_s24, %s9076_s26  ;;  %p9082_p9 = scmp.lt.s32.totalorder %s9076_s26, %s9076_s26 }
  0x56   :  { %p9083_p10 = por %p9082_p9, %p9081_p8 }
  0x58   :  { %p9084_p11 = pnand %p9083_p10, %p9077_p7 }
  0x5a   :  { %9087 = shalt.err (!%p9084_p11)
}
  0x5b   :  { %s9274_s12 = smov 64   ;;  %s9275_s4 = smov 4  }
  0x5c   :  { %s9864_s29 = sld [smem:[#allocation37_spill]]  ;;  %s9276_s0 = smov [#allocation6]  }
  0x5d   :  { %s60_s30 = sshll.u32 %s9276_s0, 4  ;;  %s61_s30 = int_to_ptr.vmem [resolvable:$true] %s60_s30 }
  0x5e   :  { %s9096_s18 = scalar_lea.vmem %s61_s30, 2048  ;;  %p9101_p13 = scmp.lt.s32.totalorder %s61_s30, %s61_s30 }
  0x5f   :  { %p9097_p12 = scmp.ne.s32.totalorder %s61_s30, %s9096_s18  ;;  %p9102_p0 = scmp.lt.s32.totalorder %s9096_s18, %s9096_s18 }
  0x61   :  { %p9103_p1 = por %p9102_p0, %p9101_p13 }
  0x62   :  { %44 = dma.hbm_to_vmem [thread:$0]  %s9864_s29, 1024, %s39_s24, [#allocation3], %s9274_s12, %s9274_s12, %s9275_s4  }
  0x63   :  { %p9104_p2 = pnand %p9103_p1, %p9097_p12 }
  0x65   :  { %9107 = shalt.err (!%p9104_p2)
}
  0x66   :  { %s9277_s14 = smov 128   ;;  %s9278_s6 = smov 8  }
  0x67   :  { %66 = dma.hbm_to_vmem [thread:$0]  %s9847_s3, 2048, %s61_s30, [#allocation5], %s9277_s14, %s9277_s14, %s9278_s6  }
  0x68   :  { %s9279_s8 = smov [#allocation9]   ;;  %s9280_s21 = smov [#allocation12]  }
  0x69   :  { %s83_s20 = sshll.u32 %s9279_s8, 4  ;;  %s102_s22 = sshll.u32 %s9280_s21, 4  ;;  %s84_s20 = int_to_ptr.vmem [resolvable:$true] %s83_s20  ;;  %s103_s22 = int_to_ptr.vmem [resolvable:$true] %s102_s22 }
  0x6a   :  { %s9116_s23 = scalar_lea.vmem %s84_s20, 32  ;;  %p9121_p4 = scmp.lt.s32.totalorder %s84_s20, %s84_s20 }
  0x6b   :  { %p9117_p3 = scmp.ne.s32.totalorder %s84_s20, %s9116_s23  ;;  %p9122_p5 = scmp.lt.s32.totalorder %s9116_s23, %s9116_s23 }
  0x6d   :  { %p9123_p6 = por %p9122_p5, %p9121_p4 }
  0x6f   :  { %p9124_p7 = pnand %p9123_p6, %p9117_p3 }
  0x71   :  { %9127 = shalt.err (!%p9124_p7)
}
  0x72   :  { %86 = dma.hbm_to_vmem [thread:$0]  %s9849_s5, 32, %s84_s20, [#allocation8]  }
  0x73   :  { %s9136_s10 = scalar_lea.vmem %s103_s22, 8192  ;;  %p9141_p9 = scmp.lt.s32.totalorder %s103_s22, %s103_s22 }
  0x74   :  { %p9137_p8 = scmp.ne.s32.totalorder %s103_s22, %s9136_s10  ;;  %p9142_p10 = scmp.lt.s32.totalorder %s9136_s10, %s9136_s10 }
  0x76   :  { %p9143_p11 = por %p9142_p10, %p9141_p9 }
  0x78   :  { %p9144_p12 = pnand %p9143_p11, %p9137_p8 }
  0x7a   :  { %9147 = shalt.err (!%p9144_p12)
}
  0x7b   :  { %s9281_s3 = smov 256   ;;  %s9282_s25 = smov 16  }
  0x7c   :  { %108 = dma.hbm_to_vmem [thread:$0]  %s9851_s7, 8192, %s103_s22, [#allocation11], %s9281_s3, %s9281_s3, %s9282_s25  }
  0x7d   :  { %s9283_s4 = smov [#allocation15]   ;;  %s9284_s28 = smov [#allocation18]  }
  0x7e   :  { %s125_s27 = sshll.u32 %s9283_s4, 4  ;;  %s144_s29 = sshll.u32 %s9284_s28, 4  ;;  %s126_s27 = int_to_ptr.vmem [resolvable:$true] %s125_s27  ;;  %s145_s29 = int_to_ptr.vmem [resolvable:$true] %s144_s29 }
  0x7f   :  { %s9156_s5 = scalar_lea.vmem %s126_s27, 64  ;;  %p9161_p0 = scmp.lt.s32.totalorder %s126_s27, %s126_s27 }
  0x80   :  { %p9157_p13 = scmp.ne.s32.totalorder %s126_s27, %s9156_s5  ;;  %p9162_p1 = scmp.lt.s32.totalorder %s9156_s5, %s9156_s5 }
  0x82   :  { %p9163_p2 = por %p9162_p1, %p9161_p0 }
  0x84   :  { %p9164_p3 = pnand %p9163_p2, %p9157_p13 }
  0x86   :  { %9167 = shalt.err (!%p9164_p3)
}
  0x87   :  { %128 = dma.hbm_to_vmem [thread:$0]  %s9853_s9, 64, %s126_s27, [#allocation14]  }
  0x88   :  { %s9176_s18 = scalar_lea.vmem %s145_s29, 32768  ;;  %p9181_p5 = scmp.lt.s32.totalorder %s145_s29, %s145_s29 }
  0x89   :  { %p9177_p4 = scmp.ne.s32.totalorder %s145_s29, %s9176_s18  ;;  %p9182_p6 = scmp.lt.s32.totalorder %s9176_s18, %s9176_s18 }
  0x8b   :  { %p9183_p7 = por %p9182_p6, %p9181_p5 }
  0x8d   :  { %p9184_p8 = pnand %p9183_p7, %p9177_p4 }
  0x8f   :  { %9187 = shalt.err (!%p9184_p8)
}
  0x90   :  { %s9285_s7 = smov 512   ;;  %s9286_s14 = smov 32  }
  0x91   :  { %150 = dma.hbm_to_vmem [thread:$0]  %s9855_s11, 32768, %s145_s29, [#allocation17], %s9285_s7, %s9285_s7, %s9286_s14  }
  0x92   :  { %s9287_s1 = smov [#allocation21]   ;;  %s9288_s20 = smov [#allocation24]  }
  0x93   :  { %s167_s8 = sshll.u32 %s9287_s1, 4  ;;  %s186_s21 = sshll.u32 %s9288_s20, 4  ;;  %s168_s8 = int_to_ptr.vmem [resolvable:$true] %s167_s8  ;;  %s187_s21 = int_to_ptr.vmem [resolvable:$true] %s186_s21 }
  0x94   :  { %s9196_s9 = scalar_lea.vmem %s168_s8, 128  ;;  %p9201_p10 = scmp.lt.s32.totalorder %s168_s8, %s168_s8 }
  0x95   :  { %p9197_p9 = scmp.ne.s32.totalorder %s168_s8, %s9196_s9  ;;  %p9202_p11 = scmp.lt.s32.totalorder %s9196_s9, %s9196_s9 }
  0x97   :  { %p9203_p12 = por %p9202_p11, %p9201_p10 }
  0x99   :  { %p9204_p13 = pnand %p9203_p12, %p9197_p9 }
  0x9b   :  { %9207 = shalt.err (!%p9204_p13)
}
  0x9c   :  { %170 = dma.hbm_to_vmem [thread:$0]  %s9857_s13, 128, %s168_s8, [#allocation20]  }
  0x9d   :  { %s9216_s24 = scalar_lea.vmem %s187_s21, 57344  ;;  %p9221_p1 = scmp.lt.s32.totalorder %s187_s21, %s187_s21 }
  0x9e   :  { %p9217_p0 = scmp.ne.s32.totalorder %s187_s21, %s9216_s24  ;;  %p9222_p2 = scmp.lt.s32.totalorder %s9216_s24, %s9216_s24 }
  0xa0   :  { %p9223_p3 = por %p9222_p2, %p9221_p1 }
  0xa2   :  { %p9224_p4 = pnand %p9223_p3, %p9217_p0 }
  0xa4   :  { %9227 = shalt.err (!%p9224_p4)
}
  0xa5   :  { %s9289_s11 = smov 448   ;;  %s9290_s2 = smov 28  }
  0xa6   :  { %192 = dma.hbm_to_vmem [thread:$0]  %s9859_s15, 57344, %s187_s21, [#allocation23], %s9289_s11, %s9289_s11, %s9290_s2  }
  0xa7   :  { %s9291_s25 = smov [#allocation25]  }
  0xa8   :  { %s199_s26 = sshll.u32 %s9291_s25, 4  ;;  %s200_s26 = int_to_ptr.vmem [resolvable:$true] %s199_s26 }
  0xa9   :  { %s9236_s12 = scalar_lea.vmem %s200_s26, 112  ;;  %s9240_s13 = scalar_lea.vmem %s200_s26, 128 }
  0xaa   :  { %p9237_p5 = scmp.ne.s32.totalorder %s200_s26, %s9236_s12  ;;  %p9241_p6 = scmp.lt.s32.totalorder %s200_s26, %s200_s26 }
  0xab   :  { %p9242_p7 = scmp.lt.s32.totalorder %s9240_s13, %s9236_s12 }
  0xad   :  { %p9243_p8 = por %p9242_p7, %p9241_p6 }
  0xaf   :  { %p9244_p9 = pnand %p9243_p8, %p9237_p5 }
  0xb1   :  { %9247 = shalt.err (!%p9244_p9)
}
  0xb2   :  { %202 = dma.hbm_to_vmem [thread:$0]  %s9860_s16, 112, %s200_s26, [#allocation26]  }
  0xb3   :  { %9248 = dma.done.wait [#allocation3], 1024  }
  0xb4   :  { %9249 = vsyncadd [#allocation3], 4294966272 }
  0xb5   :  { %9250 = dma.done.wait [#allocation5], 2064  }
  0xb6   :  { %9251 = vsyncadd [#allocation5], 4294965232 }
  0xb7   :  { %9252 = dma.done.wait [#allocation8], 64  }
  0xb8   :  { %9253 = vsyncadd [#allocation8], 4294967232 }
  0xb9   :  { %9254 = dma.done.wait [#allocation11], 8224  }
  0xba   :  { %9255 = vsyncadd [#allocation11], 4294959072 }
  0xbb   :  { %9256 = dma.done.wait [#allocation14], 128  }
  0xbc   :  { %9257 = vsyncadd [#allocation14], 4294967168 }
  0xbd   :  { %9258 = dma.done.wait [#allocation17], 32832  }
  0xbe   :  { %9259 = vsyncadd [#allocation17], 4294934464 }
  0xbf   :  { %9260 = dma.done.wait [#allocation20], 256  }
  0xc0   :  { %9261 = vsyncadd [#allocation20], 4294967040 }
  0xc1   :  { %9262 = dma.done.wait [#allocation23], 57472  }
  0xc2   :  { %9263 = vsyncadd [#allocation23], 4294909824 }
  0xc3   :  { %9264 = dma.done.wait [#allocation26], 112  }
  0xc4   :  { %9265 = vsyncadd [#allocation26], 4294967184  ;;  %v9292_v0 = vmov 0.0   ;;  %vm9293_vm0 = vmmov 0   ;;  %v8118_v1 = vld [vmem:[#allocation2 + $0x38] sm:$0xff]   ;;  %v8119_v2 = vld [vmem:[#allocation2 + $0x30] sm:$0xff]  }
  0xc5   :  { %8068 = vmatprep.subr.bf16.mxu0 %v9292_v0  ;;  %8084 = vmatprep.mubr.msk.bf16.mxu0 %vm9293_vm0, %v9292_v0  ;;  %v8120_v3 = vld [vmem:[#allocation2 + $0x28] sm:$0xff]   ;;  %v8126_v4 = vld [vmem:[#allocation6 + $0x74] ss:$8 sps:$4 sm:$0xff]   ;;  %v8128_v5 = vld [vmem:[#allocation6 + $0x70] ss:$8 sps:$4 sm:$0xff]   ;;  %s9865_s28 = sld [smem:[#allocation36_spill]] }
  0xc6   :  { %8069 = vmatpush3.bf16.msra.mxu0 %v8118_v1  ;;  %v8121_v6 = vld [vmem:[#allocation2 + $0x20] sm:$0xff]   ;;  %477 = vmatprep.subr.bf16.mxu1 %v8126_v4  ;;  %v8122_v10 = vld [vmem:[#allocation2 + $0x18] sm:$0xff]   ;;  %v8123_v11 = vld [vmem:[#allocation2 + $0x10] sm:$0xff]   ;;  %v9294_v27 = vmov 0   ;;  %vm7163_vm0 = vcmask 130048  }
  0xc7   :  { %8070 = vmatprep.subr.bf16.mxu0 %v9292_v0  ;;  %v8129_v7 = vld [vmem:[#allocation6 + $0x64] ss:$8 sps:$4 sm:$0xff]   ;;  %478 = vmatpush1.bf16.msra.mxu1 %v8128_v5  ;;  %v8131_v8 = vld [vmem:[#allocation6 + $0x60] ss:$8 sps:$4 sm:$0xff]   ;;  %v8132_v9 = vld [vmem:[#allocation6 + $0x54] ss:$8 sps:$4 sm:$0xff]  }
  0xc8   :  { %479 = vmatprep.subr.bf16.mxu1 %v8129_v7  ;;  %v8134_v12 = vld [vmem:[#allocation6 + $0x50] ss:$8 sps:$4 sm:$0xff]   ;;  %v8135_v13 = vld [vmem:[#allocation6 + $0x44] ss:$8 sps:$4 sm:$0xff]   ;;  %v8137_v14 = vld [vmem:[#allocation6 + $0x40] ss:$8 sps:$4 sm:$0xff]   ;;  %509 = vmatprep.mubr.bf16.mxu1 %v9294_v27 }
  0xc9   :  { %v8138_v15 = vld [vmem:[#allocation6 + $0x34] ss:$8 sps:$4 sm:$0xff]   ;;  %v8124_v16 = vld [vmem:[#allocation2 + $0x8] sm:$0xff]   ;;  %v8140_v17 = vld [vmem:[#allocation6 + $0x30] ss:$8 sps:$4 sm:$0xff]  }
  0xca   :  { %8071 = vmatpush3.bf16.msra.mxu0 %v8119_v2  ;;  %v8141_v18 = vld [vmem:[#allocation6 + $0x24] ss:$8 sps:$4 sm:$0xff]   ;;  %v8143_v21 = vld [vmem:[#allocation6 + $0x20] ss:$8 sps:$4 sm:$0xff]   ;;  %v8144_v23 = vld [vmem:[#allocation6 + $0x14] ss:$8 sps:$4 sm:$0xff]  }
  0xcb   :  { %8072 = vmatprep.subr.bf16.mxu0 %v9292_v0  ;;  %480 = vmatpush1.bf16.msra.mxu1 %v8131_v8  ;;  %v8125_v19 = vld [vmem:[#allocation2] sm:$0xff]   ;;  %v8146_v24 = vld [vmem:[#allocation6 + $0x10] ss:$8 sps:$4 sm:$0xff]  }
  0xcc   :  { %481 = vmatprep.subr.bf16.mxu1 %v8132_v9  ;;  %v252_v20 = vld [vmem:[%s9865_s28] sm:$0xff]  ;;  %v8152_v37 = vld [vmem:[#allocation12 + $0xe4] ss:$16 sps:$4 sm:$0xff]   ;;  %v8150_v39 = vld [vmem:[#allocation12 + $0xe0] ss:$16 sps:$4 sm:$0xff]  }
  0xcd   :  { %v253_v22 = vpack.c.bf16 %v252_v20, %v252_v20  ;;  %v8147_v25 = vld [vmem:[#allocation6 + $0x4] ss:$8 sps:$4 sm:$0xff]   ;;  %v8149_v26 = vld [vmem:[#allocation6] ss:$8 sps:$4 sm:$0xff]   ;;  %v7178_v28 = vld [vmem:[#allocation4] ss:$0 sm:$0xff] }
  0xce   :  { %8073 = vmatpush3.bf16.msra.mxu0 %v8120_v3  ;;  %v8155_v38 = vld [vmem:[#allocation12 + $0xec] ss:$16 sps:$4 sm:$0xff]   ;;  %v8153_v40 = vld [vmem:[#allocation12 + $0xe8] ss:$16 sps:$4 sm:$0xff]   ;;  %v8158_v41 = vld [vmem:[#allocation12 + $0xc4] ss:$16 sps:$4 sm:$0xff]  }
  0xcf   :  { %8074 = vmatprep.subr.bf16.mxu0 %v9292_v0  ;;  %482 = vmatpush1.bf16.msra.mxu1 %v8134_v12  ;;  %v8161_v42 = vld [vmem:[#allocation12 + $0xcc] ss:$16 sps:$4 sm:$0xff]   ;;  %v8156_v43 = vld [vmem:[#allocation12 + $0xc0] ss:$16 sps:$4 sm:$0xff]   ;;  %v8159_v44 = vld [vmem:[#allocation12 + $0xc8] ss:$16 sps:$4 sm:$0xff]  }
  0xd0   :  { %483 = vmatprep.subr.bf16.mxu1 %v8135_v13  ;;  %v8164_v45 = vld [vmem:[#allocation12 + $0xa4] ss:$16 sps:$4 sm:$0xff]   ;;  %v8167_v46 = vld [vmem:[#allocation12 + $0xac] ss:$16 sps:$4 sm:$0xff]   ;;  %v8162_v47 = vld [vmem:[#allocation12 + $0xa0] ss:$16 sps:$4 sm:$0xff]  }
  0xd1   :  { %v8165_v48 = vld [vmem:[#allocation12 + $0xa8] ss:$16 sps:$4 sm:$0xff]   ;;  %v8170_v49 = vld [vmem:[#allocation12 + $0x84] ss:$16 sps:$4 sm:$0xff]   ;;  %v8173_v50 = vld [vmem:[#allocation12 + $0x8c] ss:$16 sps:$4 sm:$0xff]  }
  0xd2   :  { %8075 = vmatpush3.bf16.msra.mxu0 %v8121_v6  ;;  %v8168_v51 = vld [vmem:[#allocation12 + $0x80] ss:$16 sps:$4 sm:$0xff]   ;;  %v8171_v52 = vld [vmem:[#allocation12 + $0x88] ss:$16 sps:$4 sm:$0xff]   ;;  %v8176_v53 = vld [vmem:[#allocation12 + $0x64] ss:$16 sps:$4 sm:$0xff]  }
  0xd3   :  { %8076 = vmatprep.subr.bf16.mxu0 %v9292_v0  ;;  %484 = vmatpush1.bf16.msra.mxu1 %v8137_v14  ;;  %v8179_v54 = vld [vmem:[#allocation12 + $0x6c] ss:$16 sps:$4 sm:$0xff]   ;;  %v8174_v55 = vld [vmem:[#allocation12 + $0x60] ss:$16 sps:$4 sm:$0xff]   ;;  %v8177_v56 = vld [vmem:[#allocation12 + $0x68] ss:$16 sps:$4 sm:$0xff]  }
  0xd4   :  { %485 = vmatprep.subr.bf16.mxu1 %v8138_v15  ;;  %v8182_v57 = vld [vmem:[#allocation12 + $0x44] ss:$16 sps:$4 sm:$0xff]   ;;  %v8180_v58 = vld [vmem:[#allocation12 + $0x40] ss:$16 sps:$4 sm:$0xff]   ;;  %v8183_v59 = vld [vmem:[#allocation12 + $0x48] ss:$16 sps:$4 sm:$0xff]  }
  0xd5   :  { %v8185_v60 = vld [vmem:[#allocation12 + $0x4c] ss:$16 sps:$4 sm:$0xff]   ;;  %v8188_v61 = vld [vmem:[#allocation12 + $0x24] ss:$16 sps:$4 sm:$0xff]   ;;  %v8186_v63 = vld [vmem:[#allocation12 + $0x20] ss:$16 sps:$4 sm:$0xff]  }
  0xd6   :  { %8077 = vmatpush3.bf16.msra.mxu0 %v8122_v10  ;;  %v8191_v62 = vld [vmem:[#allocation12 + $0x2c] ss:$16 sps:$4 sm:$0xff]   ;;  %v8194_v1 = vld [vmem:[#allocation12 + $0x4] ss:$16 sps:$4 sm:$0xff]   ;;  %v8192_v3 = vld [vmem:[#allocation12] ss:$16 sps:$4 sm:$0xff]  }
  0xd7   :  { %8078 = vmatprep.subr.bf16.mxu0 %v9292_v0  ;;  %486 = vmatpush1.bf16.msra.mxu1 %v8140_v17  ;;  %v8197_v2 = vld [vmem:[#allocation12 + $0xc] ss:$16 sps:$4 sm:$0xff]   ;;  %v8195_v4 = vld [vmem:[#allocation12 + $0x8] ss:$16 sps:$4 sm:$0xff]   ;;  %v8200_v5 = vld [vmem:[#allocation12 + $0x1e4] ss:$16 sps:$4 sm:$0xff]  }
  0xd8   :  { %487 = vmatprep.subr.bf16.mxu1 %v8141_v18  ;;  %v8203_v6 = vld [vmem:[#allocation12 + $0x1ec] ss:$16 sps:$4 sm:$0xff]   ;;  %v8198_v7 = vld [vmem:[#allocation12 + $0x1e0] ss:$16 sps:$4 sm:$0xff]   ;;  %v8201_v8 = vld [vmem:[#allocation12 + $0x1e8] ss:$16 sps:$4 sm:$0xff]  }
  0xd9   :  { %v8206_v9 = vld [vmem:[#allocation12 + $0x1c4] ss:$16 sps:$4 sm:$0xff]   ;;  %v8209_v10 = vld [vmem:[#allocation12 + $0x1cc] ss:$16 sps:$4 sm:$0xff]   ;;  %v8207_v12 = vld [vmem:[#allocation12 + $0x1c8] ss:$16 sps:$4 sm:$0xff]  }
  0xda   :  { %8079 = vmatpush3.bf16.msra.mxu0 %v8123_v11  ;;  %v8204_v11 = vld [vmem:[#allocation12 + $0x1c0] ss:$16 sps:$4 sm:$0xff]   ;;  %v8212_v13 = vld [vmem:[#allocation12 + $0x1a4] ss:$16 sps:$4 sm:$0xff]   ;;  %v8215_v14 = vld [vmem:[#allocation12 + $0x1ac] ss:$16 sps:$4 sm:$0xff]  }
  0xdb   :  { %8080 = vmatprep.subr.bf16.mxu0 %v9292_v0  ;;  %488 = vmatpush1.bf16.msra.mxu1 %v8143_v21  ;;  %v8210_v15 = vld [vmem:[#allocation12 + $0x1a0] ss:$16 sps:$4 sm:$0xff]   ;;  %v8218_v17 = vld [vmem:[#allocation12 + $0x184] ss:$16 sps:$4 sm:$0xff]   ;;  %v8221_v18 = vld [vmem:[#allocation12 + $0x18c] ss:$16 sps:$4 sm:$0xff]  }
  0xdc   :  { %489 = vmatprep.subr.bf16.mxu1 %v8144_v23  ;;  %v8219_v20 = vld [vmem:[#allocation12 + $0x188] ss:$16 sps:$4 sm:$0xff]   ;;  %v8224_v21 = vld [vmem:[#allocation12 + $0x164] ss:$16 sps:$4 sm:$0xff]   ;;  %v8222_v23 = vld [vmem:[#allocation12 + $0x160] ss:$16 sps:$4 sm:$0xff]  }
  0xdd   :  { %v8233_v27 = vld [vmem:[#allocation12 + $0x14c] ss:$16 sps:$4 sm:$0xff]  }
  0xde   :  { %8081 = vmatpush3.bf16.msra.mxu0 %v8124_v16  ;;  %v8213_v16 = vld [vmem:[#allocation12 + $0x1a8] ss:$16 sps:$4 sm:$0xff]  }
  0xdf   :  { %8082 = vmatprep.subr.bf16.mxu0 %v9292_v0  ;;  %490 = vmatpush1.bf16.msra.mxu1 %v8146_v24  ;;  %v8189_v0 = vld [vmem:[#allocation12 + $0x28] ss:$16 sps:$4 sm:$0xff]  }
  0xe0   :  { %491 = vmatprep.subr.bf16.mxu1 %v8147_v25  ;;  %v8225_v24 = vld [vmem:[#allocation12 + $0x168] ss:$16 sps:$4 sm:$0xff]   ;;  %v8230_v25 = vld [vmem:[#allocation12 + $0x144] ss:$16 sps:$4 sm:$0xff]  }
  0xe2   :  { %8083 = vmatpush3.bf16.msra.mxu0 %v8125_v19  ;;  %v8216_v19 = vld [vmem:[#allocation12 + $0x180] ss:$16 sps:$4 sm:$0xff]  }
  0xe3   :  { %492 = vmatpush1.bf16.msra.mxu1 %v8149_v26  ;;  %1039 = vmatprep.subr.bf16.mxu0 %v8152_v37  ;;  %v8228_v26 = vld [vmem:[#allocation12 + $0x140] ss:$16 sps:$4 sm:$0xff]   ;;  %v387_v37 = vlaneseq }
  0xe4   :  { %1080 = vmatprep.subr.bf16.mxu1 %v8155_v38 }
  0xe5   :  { %8085 = vmatmul.mubr.bf16.vlgmr.msra.gmra.mxu0 %v253_v22  ;;  %v8227_v22 = vld [vmem:[#allocation12 + $0x16c] ss:$16 sps:$4 sm:$0xff]   ;;  %v9437_v38 = vshrl.u32 %v387_v37, 7 }
  0xe6   :  { %1040 = vmatpush1.bf16.msra.mxu0 %v8150_v39 }
  0xe7   :  { %1041 = vmatprep.subr.bf16.mxu0 %v8158_v41  ;;  %v9440_v39 = vsub.s32 0, %v9437_v38  ;;  %v9443_v41 = vsub.s32 1, %v9437_v38 }
  0xea   :  { %1042 = vmatpush1.bf16.msra.mxu0 %v8156_v43 }
  0xeb   :  { %1043 = vmatprep.subr.bf16.mxu0 %v8164_v45 }
  0xee   :  { %1044 = vmatpush1.bf16.msra.mxu0 %v8162_v47 }
  0xef   :  { %1045 = vmatprep.subr.bf16.mxu0 %v8170_v49 }
  0xf2   :  { %1046 = vmatpush1.bf16.msra.mxu0 %v8168_v51 }
  0xf3   :  { %1047 = vmatprep.subr.bf16.mxu0 %v8176_v53 }
  0xf6   :  { %1048 = vmatpush1.bf16.msra.mxu0 %v8174_v55 }
  0xf7   :  { %1049 = vmatprep.subr.bf16.mxu0 %v8182_v57 }
  0xfa   :  { %1050 = vmatpush1.bf16.msra.mxu0 %v8180_v58 }
  0xfb   :  { %1051 = vmatprep.subr.bf16.mxu0 %v8188_v61 }
  0xfe   :  { %1052 = vmatpush1.bf16.msra.mxu0 %v8186_v63 }
  0xff   :  { %1053 = vmatprep.subr.bf16.mxu0 %v8194_v1 }
 0x102   :  { %1054 = vmatpush1.bf16.msra.mxu0 %v8192_v3 }
 0x103   :  { %1055 = vmatprep.subr.bf16.mxu0 %v8200_v5 }
 0x106   :  { %1056 = vmatpush2.bf16.msra.mxu0 %v8198_v7 }
 0x107   :  { %1057 = vmatprep.subr.bf16.mxu0 %v8206_v9 }
 0x10a   :  { %1058 = vmatpush2.bf16.msra.mxu0 %v8204_v11 }
 0x10b   :  { %1059 = vmatprep.subr.bf16.mxu0 %v8212_v13 }
 0x10e   :  { %1060 = vmatpush2.bf16.msra.mxu0 %v8210_v15 }
 0x10f   :  { %1061 = vmatprep.subr.bf16.mxu0 %v8218_v17 }
 0x112   :  { %1062 = vmatpush2.bf16.msra.mxu0 %v8216_v19 }
 0x113   :  { %1063 = vmatprep.subr.bf16.mxu0 %v8224_v21 }
 0x116   :  { %1064 = vmatpush2.bf16.msra.mxu0 %v8222_v23 }
 0x117   :  { %1065 = vmatprep.subr.bf16.mxu0 %v8230_v25 }
 0x11a   :  { %1066 = vmatpush2.bf16.msra.mxu0 %v8228_v26 }
 0x1a5   :  { %v359_v29 = vpop.f32.mrf.mxu0 }
 0x1a6   :  { %v360_v30 = vadd.f32 %v7178_v28, %v359_v29  ;;  %v8231_v28 = vld [vmem:[#allocation12 + $0x148] ss:$16 sps:$4 sm:$0xff]   ;;  %v8236_v29 = vld [vmem:[#allocation12 + $0x124] ss:$16 sps:$4 sm:$0xff]  }
 0x1a7   :  { %v8086_v31 = vpop.f32.mrf.mxu0  ;;  %1067 = vmatprep.subr.bf16.mxu0 %v8236_v29 }
 0x1a8   :  { %vm365_vm1 = vcmp.ge.f32.partialorder %v360_v30, 0.0  ;;  %v366_v32 = vmul.f32 0.2, %v360_v30  ;;  %v8234_v31 = vld [vmem:[#allocation12 + $0x120] ss:$16 sps:$4 sm:$0xff]  }
 0x1a9   :  { %v362_v33 = vpop.f32.mrf.mxu0  ;;  %1068 = vmatpush2.bf16.msra.mxu0 %v8234_v31 }
 0x1aa   :  { %v367_v34 = vsel %vm365_vm1, %v360_v30, %v366_v32  ;;  %v8239_v30 = vld [vmem:[#allocation12 + $0x12c] ss:$16 sps:$4 sm:$0xff]   ;;  %v8237_v32 = vld [vmem:[#allocation12 + $0x128] ss:$16 sps:$4 sm:$0xff]   ;;  %v8242_v33 = vld [vmem:[#allocation12 + $0x104] ss:$16 sps:$4 sm:$0xff]  }
 0x1ab   :  { %v8087_v35 = vpop.f32.mrf.mxu0  ;;  %v368_v36 = vpack.c.bf16 %v367_v34, %v367_v34  ;;  %v8245_v34 = vld [vmem:[#allocation12 + $0x10c] ss:$16 sps:$4 sm:$0xff]   ;;  %1069 = vmatprep.subr.bf16.mxu0 %v8242_v33 }
 0x1ac   :  { %v8240_v35 = vld [vmem:[#allocation12 + $0x100] ss:$16 sps:$4 sm:$0xff]  }
 0x1ad   :  { %510 = vmatmul.mubr.bf16.vlgmr.msra.gmra.mxu1 %v368_v36  ;;  %v8243_v36 = vld [vmem:[#allocation12 + $0x108] ss:$16 sps:$4 sm:$0xff]   ;;  %1070 = vmatpush2.bf16.msra.mxu0 %v8240_v35 }
 0x1ae   :  { %1081 = vmatpush1.bf16.msra.mxu1 %v8153_v40  ;;  %v385_v40 = vld [vmem:[#allocation7] sm:$0x3] }
 0x1af   :  { %1082 = vmatprep.subr.bf16.mxu1 %v8161_v42  ;;  %v390_v42 = vrot.slane %v385_v40, %v9440_v39  ;;  %v394_v43 = vrot.slane %v385_v40, %v9443_v41 }
 0x1b2   :  { %1083 = vmatpush1.bf16.msra.mxu1 %v8159_v44 }
 0x1b3   :  { %1084 = vmatprep.subr.bf16.mxu1 %v8167_v46 }
 0x1b6   :  { %1085 = vmatpush1.bf16.msra.mxu1 %v8165_v48 }
 0x1b7   :  { %1086 = vmatprep.subr.bf16.mxu1 %v8173_v50 }
 0x1ba   :  { %1087 = vmatpush1.bf16.msra.mxu1 %v8171_v52 }
 0x1bb   :  { %1088 = vmatprep.subr.bf16.mxu1 %v8179_v54 }
 0x1be   :  { %1089 = vmatpush1.bf16.msra.mxu1 %v8177_v56 }
 0x1bf   :  { %1090 = vmatprep.subr.bf16.mxu1 %v8185_v60 }
 0x1c2   :  { %1091 = vmatpush1.bf16.msra.mxu1 %v8183_v59 }
 0x1c3   :  { %1092 = vmatprep.subr.bf16.mxu1 %v8191_v62 }
 0x1c6   :  { %1093 = vmatpush1.bf16.msra.mxu1 %v8189_v0 }
 0x1c7   :  { %1094 = vmatprep.subr.bf16.mxu1 %v8197_v2 }
 0x1ca   :  { %1095 = vmatpush1.bf16.msra.mxu1 %v8195_v4 }
 0x1cb   :  { %1096 = vmatprep.subr.bf16.mxu1 %v8203_v6 }
 0x1ce   :  { %1097 = vmatpush2.bf16.msra.mxu1 %v8201_v8 }
 0x1cf   :  { %1098 = vmatprep.subr.bf16.mxu1 %v8209_v10 }
 0x1d2   :  { %1099 = vmatpush2.bf16.msra.mxu1 %v8207_v12 }
 0x1d3   :  { %1100 = vmatprep.subr.bf16.mxu1 %v8215_v14 }
 0x1d6   :  { %1101 = vmatpush2.bf16.msra.mxu1 %v8213_v16 }
 0x1d7   :  { %1102 = vmatprep.subr.bf16.mxu1 %v8221_v18 }
 0x1da   :  { %1103 = vmatpush2.bf16.msra.mxu1 %v8219_v20 }
 0x1db   :  { %1104 = vmatprep.subr.bf16.mxu1 %v8227_v22  ;;  %v9295_v22 = vmov 1966171168  }
 0x1dc   :  { %v562_v23 = vunpack.c.l.s4 %v9295_v22 }
 0x1de   :  { %1105 = vmatpush2.bf16.msra.mxu1 %v8225_v24  ;;  %v563_v24 = vunpack.c.0.s8 %v562_v23 }
 0x1df   :  { %1106 = vmatprep.subr.bf16.mxu1 %v8233_v27 }
 0x1e0   :  { %v9454_v26 = vsub.s32 %v563_v24, %v9437_v38 }
 0x1e2   :  { %1107 = vmatpush2.bf16.msra.mxu1 %v8231_v28 }
 0x1e3   :  { %1108 = vmatprep.subr.bf16.mxu1 %v8239_v30  ;;  %v553_v30 = vld [vmem:[#allocation9] sm:$0x3] }
 0x1e6   :  { %1109 = vmatpush2.bf16.msra.mxu1 %v8237_v32 }
 0x1e7   :  { %1110 = vmatprep.subr.bf16.mxu1 %v8245_v34 }
 0x1ea   :  { %1111 = vmatpush2.bf16.msra.mxu1 %v8243_v36 }
 0x26d   :  { %v511_v44 = vpop.f32.mrf.mxu1 }
 0x26e   :  { %v9447_v45 = vadd.f32 %v511_v44, %v390_v42  ;;  %v577_v42 = vld [vmem:[#allocation10] sm:$0x3] }
 0x26f   :  { %v513_v46 = vpop.f32.mrf.mxu1 }
 0x270   :  { %v518_v47 = vrot.slane %v9447_v45, 4  ;;  %v533_v48 = vmul.f32 %v9447_v45, %v9447_v45  ;;  %v514_v49 = vadd.f32 %v513_v46, %v394_v43 }
 0x271   :  { %v515_v50 = vpop.f32.mrf.mxu1 }
 0x272   :  { %v519_v51 = vadd.f32 %v518_v47, %v9447_v45  ;;  %v535_v52 = vrot.slane %v533_v48, 4  ;;  %v524_v53 = vrot.slane %v514_v49, 4  ;;  %v534_v54 = vmul.f32 %v514_v49, %v514_v49 }
 0x273   :  { %v516_v55 = vpop.f32.mrf.mxu1 }
 0x274   :  { %v520_v56 = vrot.slane %v519_v51, 2  ;;  %v536_v57 = vadd.f32 %v535_v52, %v533_v48  ;;  %v525_v58 = vadd.f32 %v524_v53, %v514_v49  ;;  %v541_v59 = vrot.slane %v534_v54, 4 }
 0x276   :  { %v521_v60 = vadd.f32 %v520_v56, %v519_v51  ;;  %v537_v61 = vrot.slane %v536_v57, 2  ;;  %v526_v62 = vrot.slane %v525_v58, 2  ;;  %v542_v63 = vadd.f32 %v541_v59, %v534_v54  ;;  %v1389_v59 = vld [vmem:[#allocation18 + $0x1e0] sm:$0xff] }
 0x278   :  { %v522_v0 = vrot.slane %v521_v60, 1  ;;  %v538_v1 = vadd.f32 %v537_v61, %v536_v57  ;;  %v527_v2 = vadd.f32 %v526_v62, %v525_v58  ;;  %v543_v3 = vrot.slane %v542_v63, 2  ;;  %v1517_v61 = vld [vmem:[#allocation18 + $0x5e0] sm:$0xff] }
 0x27a   :  { %v523_v4 = vadd.f32 %v522_v0, %v521_v60  ;;  %v539_v5 = vrot.slane %v538_v1, 1  ;;  %v528_v6 = vrot.slane %v527_v2, 1  ;;  %v544_v7 = vadd.f32 %v543_v3, %v542_v63  ;;  %v1513_v60 = vld [vmem:[#allocation18 + $0x5c0] sm:$0xff] }
 0x27b   :  { %v7451_v63 = vcombine.low %v1513_v60, %v1517_v61  ;;  %v7452_v0 = vcombine.high %v1513_v60, %v1517_v61  ;;  %v1505_v3 = vld [vmem:[#allocation18 + $0x580] sm:$0xff] }
 0x27c   :  { %v531_v8 = vmul.f32 0.125, %v523_v4  ;;  %v540_v9 = vadd.f32 %v539_v5, %v538_v1  ;;  %v529_v10 = vadd.f32 %v528_v6, %v527_v2  ;;  %v545_v11 = vrot.slane %v544_v7, 1  ;;  %v1377_v1 = vld [vmem:[#allocation18 + $0x180] sm:$0xff] }
 0x27d   :  { %2948 = vmatprep.subr.bf16.mxu1 %v7452_v0  ;;  %v1381_v2 = vld [vmem:[#allocation18 + $0x1a0] sm:$0xff] }
 0x27e   :  { %v547_v12 = vmul.f32 0.125, %v540_v9  ;;  %v549_v13 = vmul.f32 %v531_v8, %v531_v8  ;;  %v532_v14 = vmul.f32 0.125, %v529_v10  ;;  %v546_v15 = vadd.f32 %v545_v11, %v544_v7  ;;  %v1509_v5 = vld [vmem:[#allocation18 + $0x5a0] sm:$0xff] }
 0x27f   :  { %v7316_v4 = vcombine.high %v1377_v1, %v1381_v2  ;;  %v7315_v6 = vcombine.low %v1377_v1, %v1381_v2  ;;  %v7443_v7 = vcombine.low %v1505_v3, %v1509_v5  ;;  %v1369_v9 = vld [vmem:[#allocation18 + $0x140] sm:$0xff] }
 0x280   :  { %v551_v16 = vsub.f32 %v547_v12, %v549_v13  ;;  %v548_v17 = vmul.f32 0.125, %v546_v15  ;;  %v550_v18 = vmul.f32 %v532_v14, %v532_v14  ;;  %v1373_v10 = vld [vmem:[#allocation18 + $0x160] sm:$0xff] }
 0x281   :  { %v1497_v11 = vld [vmem:[#allocation18 + $0x540] sm:$0xff]  ;;  %v7308_v12 = vcombine.high %v1369_v9, %v1373_v10 }
 0x282   :  { %v554_v19 = vadd.f32 1e-05, %v551_v16  ;;  %v552_v20 = vsub.f32 %v548_v17, %v550_v18  ;;  %v1501_v13 = vld [vmem:[#allocation18 + $0x560] sm:$0xff] }
 0x283   :  { %v7435_v15 = vcombine.low %v1497_v11, %v1501_v13  ;;  %v7436_v16 = vcombine.high %v1497_v11, %v1501_v13  ;;  %v1361_v17 = vld [vmem:[#allocation18 + $0x100] sm:$0xff] }
 0x284   :  { %v555_v21 = vadd.f32 1e-05, %v552_v20  ;;  %8886 = vrsqrt.f32 %v554_v19  ;;  %v1365_v18 = vld [vmem:[#allocation18 + $0x120] sm:$0xff] }
 0x285   :  { %v1489_v19 = vld [vmem:[#allocation18 + $0x500] sm:$0xff]  ;;  %v7300_v20 = vcombine.high %v1361_v17, %v1365_v18  ;;  %v7299_v22 = vcombine.low %v1361_v17, %v1365_v18 }
 0x286   :  { %8888 = vrsqrt.f32 %v555_v21  ;;  %v1493_v21 = vld [vmem:[#allocation18 + $0x520] sm:$0xff] }
 0x287   :  { %v7427_v23 = vcombine.low %v1489_v19, %v1493_v21  ;;  %v7428_v24 = vcombine.high %v1489_v19, %v1493_v21  ;;  %v1449_v61 = vld [vmem:[#allocation18 + $0x3c0] sm:$0xff] }
 0x288   :  { %v1581_v1 = vld [vmem:[#allocation18 + $0x7e0] sm:$0xff] }
 0x289   :  { %v1433_v13 = vld [vmem:[#allocation18 + $0x340] sm:$0xff] }
 0x28a   :  { %v1565_v17 = vld [vmem:[#allocation18 + $0x760] sm:$0xff] }
 0x28b   :  { %v1425_v21 = vld [vmem:[#allocation18 + $0x300] sm:$0xff] }
 0x291   :  { %v8887_v25 = vpop.eup %8886 }
 0x293   :  { %v8889_v27 = vpop.eup %8888 }
 0x294   :  { %v560_v28 = vcombine.low %v8887_v25, %v8889_v27  ;;  %v1353_v25 = vld [vmem:[#allocation18 + $0xc0] sm:$0xff] }
 0x295   :  { %v1357_v27 = vld [vmem:[#allocation18 + $0xe0] sm:$0xff] }
 0x296   :  { %v567_v29 = vrot.slane %v560_v28, %v9454_v26  ;;  %v1481_v28 = vld [vmem:[#allocation18 + $0x4c0] sm:$0xff] }
 0x298   :  { %v574_v31 = vrot.slane %v567_v29, %v9454_v26  ;;  %v7292_v29 = vcombine.high %v1353_v25, %v1357_v27 }
 0x29a   :  { %v576_v32 = vmul.f32 %v574_v31, %v553_v30  ;;  %v1485_v30 = vld [vmem:[#allocation18 + $0x4e0] sm:$0xff]  ;;  %v7291_v31 = vcombine.low %v1353_v25, %v1357_v27 }
 0x29b   :  { %v1557_v25 = vld [vmem:[#allocation18 + $0x720] sm:$0xff] }
 0x29c   :  { %v582_v33 = vrot.slane %v576_v32, %v9440_v39  ;;  %v586_v34 = vrot.slane %v576_v32, %v9443_v41  ;;  %v7419_v32 = vcombine.low %v1481_v28, %v1485_v30 }
 0x29e   :  { %v589_v35 = vmul.f32 %v582_v33, %v531_v8  ;;  %v590_v36 = vmul.f32 %v586_v34, %v532_v14  ;;  %v611_v46 = vmul.f32 %v586_v34, %v514_v49  ;;  %v610_v48 = vmul.f32 %v582_v33, %v9447_v45  ;;  %v1385_v49 = vld [vmem:[#allocation18 + $0x1c0] sm:$0xff] }
 0x29f   :  { %v7324_v45 = vcombine.high %v1385_v49, %v1389_v59  ;;  %v7323_v62 = vcombine.low %v1385_v49, %v1389_v59  ;;  %v7444_v8 = vcombine.high %v1505_v3, %v1509_v5  ;;  %v7307_v14 = vcombine.low %v1369_v9, %v1373_v10  ;;  %v1345_v34 = vld [vmem:[#allocation18 + $0x80] sm:$0xff] }
 0x2a0   :  { %v593_v37 = vcombine.low %v589_v35, %v590_v36  ;;  %v7420_v33 = vcombine.high %v1481_v28, %v1485_v30  ;;  %v1349_v35 = vld [vmem:[#allocation18 + $0xa0] sm:$0xff] }
 0x2a1   :  { %2907 = vmatprep.subr.bf16.mxu0 %v7324_v45  ;;  %v1473_v36 = vld [vmem:[#allocation18 + $0x480] sm:$0xff] }
 0x2a2   :  { %v600_v40 = vrot.slane %v593_v37, %v9454_v26  ;;  %v7284_v37 = vcombine.high %v1345_v34, %v1349_v35  ;;  %v1461_v49 = vld [vmem:[#allocation18 + $0x420] sm:$0xff] }
 0x2a3   :  { %v1441_v5 = vld [vmem:[#allocation18 + $0x380] sm:$0xff] }
 0x2a4   :  { %v607_v43 = vrot.slane %v600_v40, %v9454_v26  ;;  %v1477_v40 = vld [vmem:[#allocation18 + $0x4a0] sm:$0xff] }
 0x2a5   :  { %v1573_v9 = vld [vmem:[#allocation18 + $0x7a0] sm:$0xff] }
 0x2a6   :  { %v609_v44 = vsub.f32 %v577_v42, %v607_v43  ;;  %v7283_v42 = vcombine.low %v1345_v34, %v1349_v35  ;;  %v7411_v43 = vcombine.low %v1473_v36, %v1477_v40  ;;  %v1417_v30 = vld [vmem:[#allocation18 + $0x2c0] sm:$0xff] }
 0x2a7   :  { %v1549_v34 = vld [vmem:[#allocation18 + $0x6e0] sm:$0xff] }
 0x2a8   :  { %v620_v47 = vrot.slane %v609_v44, %v9443_v41  ;;  %v616_v50 = vrot.slane %v609_v44, %v9440_v39  ;;  %v7412_v44 = vcombine.high %v1473_v36, %v1477_v40  ;;  %v1409_v40 = vld [vmem:[#allocation18 + $0x280] sm:$0xff] }
 0x2aa   :  { %v624_v51 = vadd.f32 %v620_v47, %v611_v46  ;;  %v623_v52 = vadd.f32 %v616_v50, %v610_v48  ;;  %v1337_v46 = vld [vmem:[#allocation18 + $0x40] sm:$0xff] }
 0x2ab   :  { %v1341_v47 = vld [vmem:[#allocation18 + $0x60] sm:$0xff] }
 0x2ac   :  { %vm626_vm2 = vcmp.ge.f32.partialorder %v624_v51, 0.0  ;;  %v628_v53 = vmul.f32 0.2, %v624_v51  ;;  %vm625_vm3 = vcmp.ge.f32.partialorder %v623_v52, 0.0  ;;  %v627_v54 = vmul.f32 0.2, %v623_v52 }
 0x2ad   :  { %v1465_v48 = vld [vmem:[#allocation18 + $0x440] sm:$0xff]  ;;  %v7276_v50 = vcombine.high %v1337_v46, %v1341_v47 }
 0x2ae   :  { %v630_v55 = vsel %vm626_vm2, %v624_v51, %v628_v53  ;;  %v629_v56 = vsel %vm625_vm3, %v623_v52, %v627_v54  ;;  %v1469_v51 = vld [vmem:[#allocation18 + $0x460] sm:$0xff]  ;;  %v7275_v52 = vcombine.low %v1337_v46, %v1341_v47 }
 0x2af   :  { %v632_v57 = vpack.c.bf16 %v630_v55, %v630_v55  ;;  %v631_v58 = vpack.c.bf16 %v629_v56, %v629_v56  ;;  %v7403_v53 = vcombine.low %v1465_v48, %v1469_v51  ;;  %v7404_v54 = vcombine.high %v1465_v48, %v1469_v51  ;;  %v1329_v55 = vld [vmem:[#allocation18] sm:$0xff] }
 0x2b0   :  { %v1333_v56 = vld [vmem:[#allocation18 + $0x20] sm:$0xff] }
 0x2b1   :  { %1071 = vmatprep.mubr.bf16.mxu0 %v632_v57  ;;  %1112 = vmatprep.mubr.bf16.mxu1 %v632_v57  ;;  %v1457_v57 = vld [vmem:[#allocation18 + $0x400] sm:$0xff]  ;;  %v7267_v59 = vcombine.low %v1329_v55, %v1333_v56 }
 0x2b2   :  { %1072 = vmatmul.mubr.bf16.vlgmr.msra.gmra.mxu0 %v631_v58  ;;  %1113 = vmatmul.mubr.bf16.vlgmr.msra.gmra.mxu1 %v631_v58  ;;  %v7268_v58 = vcombine.high %v1329_v55, %v1333_v56  ;;  %v7395_v60 = vcombine.low %v1457_v57, %v1461_v49  ;;  %v7396_v45 = vcombine.high %v1457_v57, %v1461_v49  ;;  %v1541_v46 = vld [vmem:[#allocation18 + $0x6a0] sm:$0xff] }
 0x2b3   :  { %2908 = vmatpush1.bf16.msra.mxu0 %v7323_v62  ;;  %2949 = vmatpush1.bf16.msra.mxu1 %v7451_v63  ;;  %v1453_v62 = vld [vmem:[#allocation18 + $0x3e0] sm:$0xff] }
 0x2b4   :  { %2909 = vmatprep.subr.bf16.mxu0 %v7316_v4  ;;  %2950 = vmatprep.subr.bf16.mxu1 %v7444_v8  ;;  %v1577_v63 = vld [vmem:[#allocation18 + $0x7c0] sm:$0xff]  ;;  %v7388_v0 = vcombine.high %v1449_v61, %v1453_v62  ;;  %v7387_v2 = vcombine.low %v1449_v61, %v1453_v62 }
 0x2b5   :  { %v7515_v3 = vcombine.low %v1577_v63, %v1581_v1  ;;  %v7516_v4 = vcombine.high %v1577_v63, %v1581_v1  ;;  %v1401_v51 = vld [vmem:[#allocation18 + $0x240] sm:$0xff]  ;;  %v9465_v1 = vld [vmem:[#allocation18 + $0x1c8] sm:$0xff] }
 0x2b6   :  { %v1533_v55 = vld [vmem:[#allocation18 + $0x660] sm:$0xff] }
 0x2b7   :  { %2910 = vmatpush1.bf16.msra.mxu0 %v7315_v6  ;;  %2951 = vmatpush1.bf16.msra.mxu1 %v7443_v7  ;;  %v1445_v6 = vld [vmem:[#allocation18 + $0x3a0] sm:$0xff] }
 0x2b8   :  { %2911 = vmatprep.subr.bf16.mxu0 %v7308_v12  ;;  %2952 = vmatprep.subr.bf16.mxu1 %v7436_v16  ;;  %v1569_v7 = vld [vmem:[#allocation18 + $0x780] sm:$0xff]  ;;  %v7380_v8 = vcombine.high %v1441_v5, %v1445_v6  ;;  %v7379_v10 = vcombine.low %v1441_v5, %v1445_v6  ;;  %v9473_v5 = vld [vmem:[#allocation18 + $0x5e8] sm:$0xff] }
 0x2b9   :  { %v7507_v11 = vcombine.low %v1569_v7, %v1573_v9  ;;  %v7508_v12 = vcombine.high %v1569_v7, %v1573_v9  ;;  %v1393_v49 = vld [vmem:[#allocation18 + $0x200] sm:$0xff]  ;;  %v9482_v9 = vsub.s32 2, %v9437_v38 }
 0x2ba   :  { %v1525_v62 = vld [vmem:[#allocation18 + $0x620] sm:$0xff] }
 0x2bb   :  { %2912 = vmatpush1.bf16.msra.mxu0 %v7307_v14  ;;  %2953 = vmatpush1.bf16.msra.mxu1 %v7435_v15  ;;  %v1437_v14 = vld [vmem:[#allocation18 + $0x360] sm:$0xff] }
 0x2bc   :  { %2913 = vmatprep.subr.bf16.mxu0 %v7300_v20  ;;  %2954 = vmatprep.subr.bf16.mxu1 %v7428_v24  ;;  %v1561_v15 = vld [vmem:[#allocation18 + $0x740] sm:$0xff]  ;;  %v7372_v16 = vcombine.high %v1433_v13, %v1437_v14  ;;  %v7371_v18 = vcombine.low %v1433_v13, %v1437_v14 }
 0x2bd   :  { %v7499_v19 = vcombine.low %v1561_v15, %v1565_v17  ;;  %v7500_v20 = vcombine.high %v1561_v15, %v1565_v17 }
 0x2bf   :  { %2914 = vmatpush1.bf16.msra.mxu0 %v7299_v22  ;;  %2955 = vmatpush1.bf16.msra.mxu1 %v7427_v23  ;;  %v1429_v22 = vld [vmem:[#allocation18 + $0x320] sm:$0xff] }
 0x2c0   :  { %2915 = vmatprep.subr.bf16.mxu0 %v7292_v29  ;;  %2956 = vmatprep.subr.bf16.mxu1 %v7420_v33  ;;  %v1553_v23 = vld [vmem:[#allocation18 + $0x700] sm:$0xff]  ;;  %v7364_v24 = vcombine.high %v1425_v21, %v1429_v22  ;;  %v7363_v27 = vcombine.low %v1425_v21, %v1429_v22 }
 0x2c1   :  { %v7491_v28 = vcombine.low %v1553_v23, %v1557_v25  ;;  %v7492_v29 = vcombine.high %v1553_v23, %v1557_v25 }
 0x2c3   :  { %2916 = vmatpush1.bf16.msra.mxu0 %v7291_v31  ;;  %2957 = vmatpush1.bf16.msra.mxu1 %v7419_v32  ;;  %v1421_v31 = vld [vmem:[#allocation18 + $0x2e0] sm:$0xff] }
 0x2c4   :  { %2917 = vmatprep.subr.bf16.mxu0 %v7284_v37  ;;  %2958 = vmatprep.subr.bf16.mxu1 %v7412_v44  ;;  %v1545_v32 = vld [vmem:[#allocation18 + $0x6c0] sm:$0xff]  ;;  %v7356_v33 = vcombine.high %v1417_v30, %v1421_v31  ;;  %v7355_v35 = vcombine.low %v1417_v30, %v1421_v31 }
 0x2c5   :  { %v7483_v36 = vcombine.low %v1545_v32, %v1549_v34  ;;  %v7484_v37 = vcombine.high %v1545_v32, %v1549_v34 }
 0x2c7   :  { %2918 = vmatpush1.bf16.msra.mxu0 %v7283_v42  ;;  %2959 = vmatpush1.bf16.msra.mxu1 %v7411_v43  ;;  %v1413_v42 = vld [vmem:[#allocation18 + $0x2a0] sm:$0xff] }
 0x2c8   :  { %2919 = vmatprep.subr.bf16.mxu0 %v7276_v50  ;;  %2960 = vmatprep.subr.bf16.mxu1 %v7404_v54  ;;  %v1537_v43 = vld [vmem:[#allocation18 + $0x680] sm:$0xff]  ;;  %v7348_v44 = vcombine.high %v1409_v40, %v1413_v42  ;;  %v7347_v47 = vcombine.low %v1409_v40, %v1413_v42 }
 0x2c9   :  { %v7475_v48 = vcombine.low %v1537_v43, %v1541_v46  ;;  %v7476_v50 = vcombine.high %v1537_v43, %v1541_v46 }
 0x2cb   :  { %2920 = vmatpush1.bf16.msra.mxu0 %v7275_v52  ;;  %2961 = vmatpush1.bf16.msra.mxu1 %v7403_v53  ;;  %v1405_v52 = vld [vmem:[#allocation18 + $0x260] sm:$0xff] }
 0x2cc   :  { %2921 = vmatprep.subr.bf16.mxu0 %v7268_v58  ;;  %2962 = vmatprep.subr.bf16.mxu1 %v7396_v45  ;;  %v1529_v53 = vld [vmem:[#allocation18 + $0x640] sm:$0xff]  ;;  %v7340_v54 = vcombine.high %v1401_v51, %v1405_v52  ;;  %v7339_v56 = vcombine.low %v1401_v51, %v1405_v52 }
 0x2cd   :  { %v7467_v57 = vcombine.low %v1529_v53, %v1533_v55  ;;  %v7468_v58 = vcombine.high %v1529_v53, %v1533_v55 }
 0x2cf   :  { %2922 = vmatpush1.bf16.msra.mxu0 %v7267_v59  ;;  %2963 = vmatpush1.bf16.msra.mxu1 %v7395_v60  ;;  %v1397_v59 = vld [vmem:[#allocation18 + $0x220] sm:$0xff] }
 0x2d0   :  { %2923 = vmatprep.subr.bf16.mxu0 %v7388_v0  ;;  %2964 = vmatprep.subr.bf16.mxu1 %v7516_v4  ;;  %v1521_v60 = vld [vmem:[#allocation18 + $0x600] sm:$0xff]  ;;  %v7331_v45 = vcombine.low %v1393_v49, %v1397_v59  ;;  %v7332_v61 = vcombine.high %v1393_v49, %v1397_v59 }
 0x2d1   :  { %v7459_v63 = vcombine.low %v1521_v60, %v1525_v62  ;;  %v7460_v0 = vcombine.high %v1521_v60, %v1525_v62 }
 0x2d3   :  { %2924 = vmatpush2.bf16.msra.mxu0 %v7387_v2  ;;  %2965 = vmatpush2.bf16.msra.mxu1 %v7515_v3  ;;  %v9467_v2 = vld [vmem:[#allocation18 + $0x1e8] sm:$0xff] }
 0x2d4   :  { %2925 = vmatprep.subr.bf16.mxu0 %v7380_v8  ;;  %2966 = vmatprep.subr.bf16.mxu1 %v7508_v12  ;;  %v9469_v3 = vld [vmem:[#allocation18 + $0x5c8] sm:$0xff]  ;;  %v7326_v4 = vcombine.high %v9465_v1, %v9467_v2  ;;  %v7325_v6 = vcombine.low %v9465_v1, %v9467_v2 }
 0x2d5   :  { %v7453_v7 = vcombine.low %v9469_v3, %v9473_v5  ;;  %v7454_v8 = vcombine.high %v9469_v3, %v9473_v5 }
 0x2d7   :  { %2926 = vmatpush2.bf16.msra.mxu0 %v7379_v10  ;;  %2967 = vmatpush2.bf16.msra.mxu1 %v7507_v11  ;;  %v697_v10 = vld [vmem:[#allocation13] sm:$0xf]  ;;  %v9485_v11 = vsub.s32 3, %v9437_v38 }
 0x2d8   :  { %2927 = vmatprep.subr.bf16.mxu0 %v7372_v16  ;;  %2968 = vmatprep.subr.bf16.mxu1 %v7500_v20  ;;  %v702_v12 = vrot.slane %v697_v10, %v9440_v39  ;;  %v710_v13 = vrot.slane %v697_v10, %v9482_v9  ;;  %v706_v16 = vrot.slane %v697_v10, %v9443_v41 }
 0x2d9   :  { %v714_v17 = vrot.slane %v697_v10, %v9485_v11 }
 0x2db   :  { %2928 = vmatpush2.bf16.msra.mxu0 %v7371_v18  ;;  %2969 = vmatpush2.bf16.msra.mxu1 %v7499_v19 }
 0x2dc   :  { %2929 = vmatprep.subr.bf16.mxu0 %v7364_v24  ;;  %2970 = vmatprep.subr.bf16.mxu1 %v7492_v29 }
 0x2df   :  { %2930 = vmatpush2.bf16.msra.mxu0 %v7363_v27  ;;  %2971 = vmatpush2.bf16.msra.mxu1 %v7491_v28 }
 0x2e0   :  { %2931 = vmatprep.subr.bf16.mxu0 %v7356_v33  ;;  %2972 = vmatprep.subr.bf16.mxu1 %v7484_v37 }
 0x2e3   :  { %2932 = vmatpush2.bf16.msra.mxu0 %v7355_v35  ;;  %2973 = vmatpush2.bf16.msra.mxu1 %v7483_v36 }
 0x2e4   :  { %2933 = vmatprep.subr.bf16.mxu0 %v7348_v44  ;;  %2974 = vmatprep.subr.bf16.mxu1 %v7476_v50 }
 0x2e7   :  { %2934 = vmatpush2.bf16.msra.mxu0 %v7347_v47  ;;  %2975 = vmatpush2.bf16.msra.mxu1 %v7475_v48 }
 0x2e8   :  { %2935 = vmatprep.subr.bf16.mxu0 %v7340_v54  ;;  %2976 = vmatprep.subr.bf16.mxu1 %v7468_v58 }
 0x2eb   :  { %2936 = vmatpush2.bf16.msra.mxu0 %v7339_v56  ;;  %2977 = vmatpush2.bf16.msra.mxu1 %v7467_v57 }
 0x2ec   :  { %2937 = vmatprep.subr.bf16.mxu0 %v7332_v61  ;;  %2978 = vmatprep.subr.bf16.mxu1 %v7460_v0 }
 0x2ef   :  { %2938 = vmatpush2.bf16.msra.mxu0 %v7331_v45  ;;  %2979 = vmatpush2.bf16.msra.mxu1 %v7459_v63 }
 0x2f0   :  { %2989 = vmatprep.subr.bf16.mxu0 %v7326_v4  ;;  %3030 = vmatprep.subr.bf16.mxu1 %v7454_v8 }
 0x372   :  { %v1073_v14 = vpop.f32.mrf.mxu0  ;;  %v1114_v15 = vpop.f32.mrf.mxu1 }
 0x373   :  { %v9491_v18 = vadd.f32 %v1073_v14, %v702_v12  ;;  %v9493_v19 = vadd.f32 %v1114_v15, %v710_v13 }
 0x374   :  { %v1075_v20 = vpop.f32.mrf.mxu0  ;;  %v1116_v21 = vpop.f32.mrf.mxu1 }
 0x375   :  { %v1121_v22 = vrot.slane %v9491_v18, 4  ;;  %v1149_v23 = vmul.f32 %v9491_v18, %v9491_v18  ;;  %v1133_v24 = vrot.slane %v9493_v19, 4  ;;  %v1151_v25 = vmul.f32 %v9493_v19, %v9493_v19 }
 0x376   :  { %v9501_v27 = vadd.f32 %v1075_v20, %v706_v16  ;;  %v9503_v28 = vadd.f32 %v1116_v21, %v714_v17  ;;  %v1077_v29 = vpop.f32.mrf.mxu0  ;;  %v1118_v30 = vpop.f32.mrf.mxu1 }
 0x377   :  { %v1122_v31 = vadd.f32 %v1121_v22, %v9491_v18  ;;  %v1153_v32 = vrot.slane %v1149_v23, 4  ;;  %v1134_v33 = vadd.f32 %v1133_v24, %v9493_v19  ;;  %v1165_v34 = vrot.slane %v1151_v25, 4 }
 0x378   :  { %v1127_v35 = vrot.slane %v9501_v27, 4  ;;  %v1150_v36 = vmul.f32 %v9501_v27, %v9501_v27  ;;  %v1139_v37 = vrot.slane %v9503_v28, 4  ;;  %v1152_v40 = vmul.f32 %v9503_v28, %v9503_v28  ;;  %v1078_v42 = vpop.f32.mrf.mxu0  ;;  %v1119_v43 = vpop.f32.mrf.mxu1 }
 0x379   :  { %v1123_v44 = vrot.slane %v1122_v31, 2  ;;  %v1154_v46 = vadd.f32 %v1153_v32, %v1149_v23  ;;  %v1135_v47 = vrot.slane %v1134_v33, 2  ;;  %v1166_v48 = vadd.f32 %v1165_v34, %v1151_v25 }
 0x37a   :  { %v1128_v50 = vadd.f32 %v1127_v35, %v9501_v27  ;;  %v1159_v51 = vrot.slane %v1150_v36, 4  ;;  %v1140_v52 = vadd.f32 %v1139_v37, %v9503_v28  ;;  %v1171_v53 = vrot.slane %v1152_v40, 4 }
 0x37b   :  { %v1124_v54 = vadd.f32 %v1123_v44, %v1122_v31  ;;  %v1155_v55 = vrot.slane %v1154_v46, 2  ;;  %v1136_v56 = vadd.f32 %v1135_v47, %v1134_v33  ;;  %v1167_v57 = vrot.slane %v1166_v48, 2 }
 0x37c   :  { %v1129_v58 = vrot.slane %v1128_v50, 2  ;;  %v1160_v49 = vadd.f32 %v1159_v51, %v1150_v36  ;;  %v1141_v59 = vrot.slane %v1140_v52, 2  ;;  %v1172_v60 = vadd.f32 %v1171_v53, %v1152_v40 }
 0x37d   :  { %v1125_v45 = vrot.slane %v1124_v54, 1  ;;  %v1156_v61 = vadd.f32 %v1155_v55, %v1154_v46  ;;  %v1137_v62 = vrot.slane %v1136_v56, 1  ;;  %v1168_v63 = vadd.f32 %v1167_v57, %v1166_v48 }
 0x37e   :  { %v1130_v0 = vadd.f32 %v1129_v58, %v1128_v50  ;;  %v1161_v4 = vrot.slane %v1160_v49, 2  ;;  %v1142_v8 = vadd.f32 %v1141_v59, %v1140_v52  ;;  %v1173_v10 = vrot.slane %v1172_v60, 2 }
 0x37f   :  { %v1126_v12 = vadd.f32 %v1125_v45, %v1124_v54  ;;  %v1157_v13 = vrot.slane %v1156_v61, 1  ;;  %v1138_v14 = vadd.f32 %v1137_v62, %v1136_v56  ;;  %v1169_v15 = vrot.slane %v1168_v63, 1 }
 0x380   :  { %v1131_v16 = vrot.slane %v1130_v0, 1  ;;  %v1162_v17 = vadd.f32 %v1161_v4, %v1160_v49  ;;  %v1143_v20 = vrot.slane %v1142_v8, 1  ;;  %v1174_v21 = vadd.f32 %v1173_v10, %v1172_v60  ;;  %v1189_v4 = vld [vmem:[#allocation15] sm:$0xf] }
 0x381   :  { %v1145_v22 = vmul.f32 0.125, %v1126_v12  ;;  %v1158_v23 = vadd.f32 %v1157_v13, %v1156_v61  ;;  %v1147_v24 = vmul.f32 0.125, %v1138_v14  ;;  %v1170_v25 = vadd.f32 %v1169_v15, %v1168_v63 }
 0x382   :  { %v1132_v29 = vadd.f32 %v1131_v16, %v1130_v0  ;;  %v1163_v30 = vrot.slane %v1162_v17, 1  ;;  %v1144_v31 = vadd.f32 %v1143_v20, %v1142_v8  ;;  %v1175_v32 = vrot.slane %v1174_v21, 1 }
 0x383   :  { %v1177_v33 = vmul.f32 0.125, %v1158_v23  ;;  %v1181_v34 = vmul.f32 %v1145_v22, %v1145_v22  ;;  %v1179_v35 = vmul.f32 0.125, %v1170_v25  ;;  %v1183_v36 = vmul.f32 %v1147_v24, %v1147_v24 }
 0x384   :  { %v1146_v37 = vmul.f32 0.125, %v1132_v29  ;;  %v1164_v40 = vadd.f32 %v1163_v30, %v1162_v17  ;;  %v1148_v42 = vmul.f32 0.125, %v1144_v31  ;;  %v1176_v43 = vadd.f32 %v1175_v32, %v1174_v21  ;;  %v1228_v32 = vld [vmem:[#allocation16] sm:$0xf] }
 0x385   :  { %v1185_v44 = vsub.f32 %v1177_v33, %v1181_v34  ;;  %v1187_v46 = vsub.f32 %v1179_v35, %v1183_v36 }
 0x386   :  { %v1178_v47 = vmul.f32 0.125, %v1164_v40  ;;  %v1182_v48 = vmul.f32 %v1146_v37, %v1146_v37  ;;  %v1180_v50 = vmul.f32 0.125, %v1176_v43  ;;  %v1184_v51 = vmul.f32 %v1148_v42, %v1148_v42 }
 0x387   :  { %v1190_v52 = vadd.f32 1e-05, %v1185_v44  ;;  %v1192_v53 = vadd.f32 1e-05, %v1187_v46 }
 0x388   :  { %v1186_v54 = vsub.f32 %v1178_v47, %v1182_v48  ;;  %v1188_v55 = vsub.f32 %v1180_v50, %v1184_v51  ;;  %v1378_v50 = vld [vmem:[#allocation18 + $0x188] sm:$0xff] }
 0x389   :  { %8890 = vrsqrt.f32 %v1190_v52 }
 0x38a   :  { %v1191_v56 = vadd.f32 1e-05, %v1186_v54  ;;  %v1193_v57 = vadd.f32 1e-05, %v1188_v55  ;;  %8892 = vrsqrt.f32 %v1192_v53  ;;  %v1382_v53 = vld [vmem:[#allocation18 + $0x1a8] sm:$0xff] }
 0x38b   :  { %v1506_v54 = vld [vmem:[#allocation18 + $0x588] sm:$0xff] }
 0x38c   :  { %8894 = vrsqrt.f32 %v1191_v56  ;;  %v1510_v55 = vld [vmem:[#allocation18 + $0x5a8] sm:$0xff] }
 0x38d   :  { %8896 = vrsqrt.f32 %v1193_v57 }
 0x396   :  { %v8891_v58 = vpop.eup %8890 }
 0x397   :  { %v8893_v49 = vpop.eup %8892 }
 0x399   :  { %v8895_v59 = vpop.eup %8894 }
 0x39a   :  { %v8897_v60 = vpop.eup %8896  ;;  %v1202_v45 = vcombine.low %v8891_v58, %v8895_v59 }
 0x39b   :  { %v1203_v61 = vcombine.low %v8893_v49, %v8897_v60 }
 0x39c   :  { %v1210_v62 = vrot.slane %v1202_v45, %v9454_v26  ;;  %v1370_v45 = vld [vmem:[#allocation18 + $0x148] sm:$0xff] }
 0x39d   :  { %v1217_v63 = vrot.slane %v1203_v61, %v9454_v26  ;;  %v7318_v61 = vcombine.high %v1378_v50, %v1382_v53 }
 0x39f   :  { %v1218_v0 = vcombine.low %v1210_v62, %v1217_v63  ;;  %v7446_v62 = vcombine.high %v1506_v54, %v1510_v55  ;;  %v1374_v63 = vld [vmem:[#allocation18 + $0x168] sm:$0xff] }
 0x3a0   :  { %v7309_v1 = vcombine.low %v1370_v45, %v1374_v63 }
 0x3a1   :  { %v1225_v8 = vrot.slane %v1218_v0, %v9454_v26  ;;  %v1498_v0 = vld [vmem:[#allocation18 + $0x548] sm:$0xff] }
 0x3a3   :  { %v1227_v10 = vmul.f32 %v1225_v8, %v1189_v4  ;;  %v1502_v4 = vld [vmem:[#allocation18 + $0x568] sm:$0xff]  ;;  %v7317_v8 = vcombine.low %v1378_v50, %v1382_v53 }
 0x3a4   :  { %v7437_v2 = vcombine.low %v1498_v0, %v1502_v4  ;;  %v1458_v50 = vld [vmem:[#allocation18 + $0x408] sm:$0xff] }
 0x3a5   :  { %v1233_v12 = vrot.slane %v1227_v10, %v9440_v39  ;;  %v1237_v13 = vrot.slane %v1227_v10, %v9443_v41  ;;  %v1241_v14 = vrot.slane %v1227_v10, %v9482_v9  ;;  %v1245_v15 = vrot.slane %v1227_v10, %v9485_v11 }
 0x3a6   :  { %v7445_v10 = vcombine.low %v1506_v54, %v1510_v55  ;;  %v1450_v54 = vld [vmem:[#allocation18 + $0x3c8] sm:$0xff] }
 0x3a7   :  { %v1250_v16 = vmul.f32 %v1233_v12, %v1145_v22  ;;  %v1251_v17 = vmul.f32 %v1237_v13, %v1146_v37  ;;  %v1252_v20 = vmul.f32 %v1241_v14, %v1147_v24  ;;  %v1253_v21 = vmul.f32 %v1245_v15, %v1148_v42  ;;  %v1454_v55 = vld [vmem:[#allocation18 + $0x3e8] sm:$0xff] }
 0x3a8   :  { %v1287_v35 = vmul.f32 %v1245_v15, %v9503_v28  ;;  %v1285_v36 = vmul.f32 %v1237_v13, %v9501_v27  ;;  %v1284_v22 = vmul.f32 %v1233_v12, %v9491_v18  ;;  %v1286_v24 = vmul.f32 %v1241_v14, %v9493_v19  ;;  %v1362_v14 = vld [vmem:[#allocation18 + $0x108] sm:$0xff] }
 0x3a9   :  { %v1258_v23 = vcombine.low %v1250_v16, %v1251_v17  ;;  %v1259_v25 = vcombine.low %v1252_v20, %v1253_v21  ;;  %v7310_v12 = vcombine.high %v1370_v45, %v1374_v63  ;;  %v7438_v13 = vcombine.high %v1498_v0, %v1502_v4  ;;  %v1366_v15 = vld [vmem:[#allocation18 + $0x128] sm:$0xff] }
 0x3aa   :  { %v1490_v16 = vld [vmem:[#allocation18 + $0x508] sm:$0xff]  ;;  %v7302_v3 = vcombine.high %v1362_v14, %v1366_v15 }
 0x3ab   :  { %v1266_v29 = vrot.slane %v1258_v23, %v9454_v26  ;;  %v1273_v30 = vrot.slane %v1259_v25, %v9454_v26  ;;  %v1494_v17 = vld [vmem:[#allocation18 + $0x528] sm:$0xff]  ;;  %v7301_v23 = vcombine.low %v1362_v14, %v1366_v15 }
 0x3ac   :  { %v7430_v5 = vcombine.high %v1490_v16, %v1494_v17  ;;  %v1482_v20 = vld [vmem:[#allocation18 + $0x4c8] sm:$0xff]  ;;  %v7429_v25 = vcombine.low %v1490_v16, %v1494_v17 }
 0x3ad   :  { %v1274_v31 = vcombine.low %v1266_v29, %v1273_v30  ;;  %v1486_v21 = vld [vmem:[#allocation18 + $0x4e8] sm:$0xff] }
 0x3ae   :  { %v7422_v30 = vcombine.high %v1482_v20, %v1486_v21  ;;  %v1442_v0 = vld [vmem:[#allocation18 + $0x388] sm:$0xff] }
 0x3af   :  { %v1281_v33 = vrot.slane %v1274_v31, %v9454_v26  ;;  %v1346_v31 = vld [vmem:[#allocation18 + $0x88] sm:$0xff] }
 0x3b0   :  { %v1446_v4 = vld [vmem:[#allocation18 + $0x3a8] sm:$0xff] }
 0x3b1   :  { %v1283_v34 = vsub.f32 %v1228_v32, %v1281_v33  ;;  %v1350_v32 = vld [vmem:[#allocation18 + $0xa8] sm:$0xff]  ;;  %v7382_v14 = vcombine.high %v1442_v0, %v1446_v4 }
 0x3b2   :  { %v1474_v33 = vld [vmem:[#allocation18 + $0x488] sm:$0xff] }
 0x3b3   :  { %v1304_v37 = vrot.slane %v1283_v34, %v9485_v11  ;;  %v1296_v40 = vrot.slane %v1283_v34, %v9443_v41  ;;  %v1292_v42 = vrot.slane %v1283_v34, %v9440_v39  ;;  %v1300_v43 = vrot.slane %v1283_v34, %v9482_v9  ;;  %v1478_v34 = vld [vmem:[#allocation18 + $0x4a8] sm:$0xff] }
 0x3b4   :  { %v1434_v16 = vld [vmem:[#allocation18 + $0x348] sm:$0xff] }
 0x3b5   :  { %v1312_v44 = vadd.f32 %v1304_v37, %v1287_v35  ;;  %v1310_v46 = vadd.f32 %v1296_v40, %v1285_v36  ;;  %v1309_v47 = vadd.f32 %v1292_v42, %v1284_v22  ;;  %v1311_v48 = vadd.f32 %v1300_v43, %v1286_v24  ;;  %v1338_v37 = vld [vmem:[#allocation18 + $0x48] sm:$0xff] }
 0x3b6   :  { %v7421_v36 = vcombine.low %v1482_v20, %v1486_v21  ;;  %v7286_v22 = vcombine.high %v1346_v31, %v1350_v32  ;;  %v7414_v24 = vcombine.high %v1474_v33, %v1478_v34  ;;  %v1342_v40 = vld [vmem:[#allocation18 + $0x68] sm:$0xff] }
 0x3b7   :  { %vm1314_vm4 = vcmp.ge.f32.partialorder %v1310_v46, 0.0  ;;  %v1318_v28 = vmul.f32 0.2, %v1310_v46  ;;  %vm1316_vm5 = vcmp.ge.f32.partialorder %v1312_v44, 0.0  ;;  %v1320_v27 = vmul.f32 0.2, %v1312_v44 }
 0x3b8   :  { %vm1313_vm6 = vcmp.ge.f32.partialorder %v1309_v47, 0.0  ;;  %v1317_v18 = vmul.f32 0.2, %v1309_v47  ;;  %vm1315_vm7 = vcmp.ge.f32.partialorder %v1311_v48, 0.0  ;;  %v1319_v19 = vmul.f32 0.2, %v1311_v48 }
 0x3b9   :  { %v1322_v51 = vsel %vm1314_vm4, %v1310_v46, %v1318_v28  ;;  %v1324_v52 = vsel %vm1316_vm5, %v1312_v44, %v1320_v27  ;;  %v1466_v42 = vld [vmem:[#allocation18 + $0x448] sm:$0xff]  ;;  %v7285_v44 = vcombine.low %v1346_v31, %v1350_v32  ;;  %v7413_v46 = vcombine.low %v1474_v33, %v1478_v34 }
 0x3ba   :  { %v9533_v56 = vpack.c.bf16 %v1322_v51, %v1322_v51  ;;  %v9535_v57 = vpack.c.bf16 %v1324_v52, %v1324_v52  ;;  %v1321_v58 = vsel %vm1313_vm6, %v1309_v47, %v1317_v18  ;;  %v1323_v49 = vsel %vm1315_vm7, %v1311_v48, %v1319_v19  ;;  %v1470_v43 = vld [vmem:[#allocation18 + $0x468] sm:$0xff] }
 0x3bb   :  { %v9537_v59 = vpack.c.bf16 %v1321_v58, %v1321_v58  ;;  %v9539_v60 = vpack.c.bf16 %v1323_v49, %v1323_v49  ;;  %v7278_v47 = vcombine.high %v1338_v37, %v1342_v40  ;;  %v7406_v48 = vcombine.high %v1466_v42, %v1470_v43  ;;  %v1330_v28 = vld [vmem:[#allocation18 + $0x8] sm:$0xff] }
 0x3bc   :  { %2939 = vmatprep.mubr.bf16.mxu0 %v9533_v56  ;;  %2980 = vmatprep.mubr.bf16.mxu1 %v9535_v57  ;;  %v1334_v27 = vld [vmem:[#allocation18 + $0x28] sm:$0xff]  ;;  %v7277_v19 = vcombine.low %v1338_v37, %v1342_v40  ;;  %v7405_v51 = vcombine.low %v1466_v42, %v1470_v43 }
 0x3bd   :  { %2940 = vmatmul.mubr.bf16.vlgmr.msra.gmra.mxu0 %v9537_v59  ;;  %2981 = vmatmul.mubr.bf16.vlgmr.msra.gmra.mxu1 %v9539_v60  ;;  %v1462_v18 = vld [vmem:[#allocation18 + $0x428] sm:$0xff]  ;;  %v7270_v52 = vcombine.high %v1330_v28, %v1334_v27  ;;  %v7269_v45 = vcombine.low %v1330_v28, %v1334_v27 }
 0x3be   :  { %2990 = vmatpush1.bf16.msra.mxu0 %v7325_v6  ;;  %3031 = vmatpush1.bf16.msra.mxu1 %v7453_v7  ;;  %v1354_v6 = vld [vmem:[#allocation18 + $0xc8] sm:$0xff]  ;;  %v7398_v53 = vcombine.high %v1458_v50, %v1462_v18 }
 0x3bf   :  { %3021 = vmatprep.mubr.bf16.mxu0 %v9533_v56  ;;  %3062 = vmatprep.mubr.bf16.mxu1 %v9535_v57  ;;  %v1358_v7 = vld [vmem:[#allocation18 + $0xe8] sm:$0xff] }
 0x3c0   :  { %2991 = vmatprep.subr.bf16.mxu0 %v7318_v61  ;;  %3032 = vmatprep.subr.bf16.mxu1 %v7446_v62  ;;  %v7294_v29 = vcombine.high %v1354_v6, %v1358_v7  ;;  %v7293_v35 = vcombine.low %v1354_v6, %v1358_v7  ;;  %v1578_v58 = vld [vmem:[#allocation18 + $0x7c8] sm:$0xff]  ;;  %v7397_v61 = vcombine.low %v1458_v50, %v1462_v18 }
 0x3c1   :  { %v1582_v49 = vld [vmem:[#allocation18 + $0x7e8] sm:$0xff]  ;;  %v7390_v62 = vcombine.high %v1450_v54, %v1454_v55 }
 0x3c2   :  { %2992 = vmatpush1.bf16.msra.mxu0 %v7317_v8  ;;  %3033 = vmatpush1.bf16.msra.mxu1 %v7445_v10  ;;  %v7518_v63 = vcombine.high %v1578_v58, %v1582_v49  ;;  %v1570_v8 = vld [vmem:[#allocation18 + $0x788] sm:$0xff] }
 0x3c3   :  { %2993 = vmatprep.subr.bf16.mxu0 %v7310_v12  ;;  %3034 = vmatprep.subr.bf16.mxu1 %v7438_v13  ;;  %v1574_v10 = vld [vmem:[#allocation18 + $0x7a8] sm:$0xff]  ;;  %v7389_v12 = vcombine.low %v1450_v54, %v1454_v55  ;;  %v7517_v13 = vcombine.low %v1578_v58, %v1582_v49 }
 0x3c4   :  { %v7510_v15 = vcombine.high %v1570_v8, %v1574_v10  ;;  %v1438_v17 = vld [vmem:[#allocation18 + $0x368] sm:$0xff] }
 0x3c5   :  { %v7374_v6 = vcombine.high %v1434_v16, %v1438_v17  ;;  %v1426_v20 = vld [vmem:[#allocation18 + $0x308] sm:$0xff] }
 0x3c6   :  { %2994 = vmatpush1.bf16.msra.mxu0 %v7309_v1  ;;  %3035 = vmatpush1.bf16.msra.mxu1 %v7437_v2  ;;  %v1562_v1 = vld [vmem:[#allocation18 + $0x748] sm:$0xff] }
 0x3c7   :  { %2995 = vmatprep.subr.bf16.mxu0 %v7302_v3  ;;  %3036 = vmatprep.subr.bf16.mxu1 %v7430_v5  ;;  %v1566_v2 = vld [vmem:[#allocation18 + $0x768] sm:$0xff]  ;;  %v7381_v3 = vcombine.low %v1442_v0, %v1446_v4  ;;  %v7509_v5 = vcombine.low %v1570_v8, %v1574_v10  ;;  %v1387_v8 = vld [vmem:[#allocation18 + $0x1d0] sm:$0xff] }
 0x3c8   :  { %v7502_v7 = vcombine.high %v1562_v1, %v1566_v2  ;;  %v1430_v21 = vld [vmem:[#allocation18 + $0x328] sm:$0xff]  ;;  %v1391_v10 = vld [vmem:[#allocation18 + $0x1f0] sm:$0xff] }
 0x3c9   :  { %v7366_v31 = vcombine.high %v1426_v20, %v1430_v21  ;;  %v1418_v33 = vld [vmem:[#allocation18 + $0x2c8] sm:$0xff] }
 0x3ca   :  { %2996 = vmatpush1.bf16.msra.mxu0 %v7301_v23  ;;  %3037 = vmatpush1.bf16.msra.mxu1 %v7429_v25  ;;  %v1554_v23 = vld [vmem:[#allocation18 + $0x708] sm:$0xff] }
 0x3cb   :  { %2997 = vmatprep.subr.bf16.mxu0 %v7294_v29  ;;  %3038 = vmatprep.subr.bf16.mxu1 %v7422_v30  ;;  %v1558_v25 = vld [vmem:[#allocation18 + $0x728] sm:$0xff]  ;;  %v7373_v29 = vcombine.low %v1434_v16, %v1438_v17  ;;  %v7501_v30 = vcombine.low %v1562_v1, %v1566_v2  ;;  %v7328_v16 = vcombine.high %v1387_v8, %v1391_v10  ;;  %v1379_v1 = vld [vmem:[#allocation18 + $0x190] sm:$0xff] }
 0x3cc   :  { %v7494_v32 = vcombine.high %v1554_v23, %v1558_v25  ;;  %v1422_v34 = vld [vmem:[#allocation18 + $0x2e8] sm:$0xff]  ;;  %v1383_v2 = vld [vmem:[#allocation18 + $0x1b0] sm:$0xff] }
 0x3cd   :  { %v7358_v37 = vcombine.high %v1418_v33, %v1422_v34  ;;  %v1410_v42 = vld [vmem:[#allocation18 + $0x288] sm:$0xff] }
 0x3ce   :  { %2998 = vmatpush1.bf16.msra.mxu0 %v7293_v35  ;;  %3039 = vmatpush1.bf16.msra.mxu1 %v7421_v36  ;;  %v1546_v35 = vld [vmem:[#allocation18 + $0x6c8] sm:$0xff] }
 0x3cf   :  { %2999 = vmatprep.subr.bf16.mxu0 %v7286_v22  ;;  %3040 = vmatprep.subr.bf16.mxu1 %v7414_v24  ;;  %v1550_v36 = vld [vmem:[#allocation18 + $0x6e8] sm:$0xff]  ;;  %v7365_v22 = vcombine.low %v1426_v20, %v1430_v21  ;;  %v7493_v24 = vcombine.low %v1554_v23, %v1558_v25  ;;  %v7320_v20 = vcombine.high %v1379_v1, %v1383_v2  ;;  %v1371_v23 = vld [vmem:[#allocation18 + $0x150] sm:$0xff] }
 0x3d0   :  { %v7486_v40 = vcombine.high %v1546_v35, %v1550_v36  ;;  %v1414_v43 = vld [vmem:[#allocation18 + $0x2a8] sm:$0xff]  ;;  %v1375_v25 = vld [vmem:[#allocation18 + $0x170] sm:$0xff] }
 0x3d1   :  { %v7350_v28 = vcombine.high %v1410_v42, %v1414_v43  ;;  %v1402_v50 = vld [vmem:[#allocation18 + $0x248] sm:$0xff] }
 0x3d2   :  { %3000 = vmatpush1.bf16.msra.mxu0 %v7285_v44  ;;  %3041 = vmatpush1.bf16.msra.mxu1 %v7413_v46  ;;  %v1538_v44 = vld [vmem:[#allocation18 + $0x688] sm:$0xff] }
 0x3d3   :  { %3001 = vmatprep.subr.bf16.mxu0 %v7278_v47  ;;  %3042 = vmatprep.subr.bf16.mxu1 %v7406_v48  ;;  %v1542_v46 = vld [vmem:[#allocation18 + $0x6a8] sm:$0xff]  ;;  %v7357_v47 = vcombine.low %v1418_v33, %v1422_v34  ;;  %v7485_v48 = vcombine.low %v1546_v35, %v1550_v36  ;;  %v7312_v33 = vcombine.high %v1371_v23, %v1375_v25  ;;  %v1363_v35 = vld [vmem:[#allocation18 + $0x110] sm:$0xff] }
 0x3d4   :  { %v7478_v27 = vcombine.high %v1538_v44, %v1542_v46  ;;  %v1406_v18 = vld [vmem:[#allocation18 + $0x268] sm:$0xff]  ;;  %v1367_v36 = vld [vmem:[#allocation18 + $0x130] sm:$0xff] }
 0x3d5   :  { %v7342_v54 = vcombine.high %v1402_v50, %v1406_v18  ;;  %v1394_v58 = vld [vmem:[#allocation18 + $0x208] sm:$0xff] }
 0x3d6   :  { %3002 = vmatpush1.bf16.msra.mxu0 %v7277_v19  ;;  %3043 = vmatpush1.bf16.msra.mxu1 %v7405_v51  ;;  %v1530_v19 = vld [vmem:[#allocation18 + $0x648] sm:$0xff] }
 0x3d7   :  { %3003 = vmatprep.subr.bf16.mxu0 %v7270_v52  ;;  %3044 = vmatprep.subr.bf16.mxu1 %v7398_v53  ;;  %v1534_v51 = vld [vmem:[#allocation18 + $0x668] sm:$0xff]  ;;  %v7349_v52 = vcombine.low %v1410_v42, %v1414_v43  ;;  %v7477_v53 = vcombine.low %v1538_v44, %v1542_v46  ;;  %v7304_v42 = vcombine.high %v1363_v35, %v1367_v36  ;;  %v1355_v44 = vld [vmem:[#allocation18 + $0xd0] sm:$0xff] }
 0x3d8   :  { %v7470_v55 = vcombine.high %v1530_v19, %v1534_v51  ;;  %v1398_v49 = vld [vmem:[#allocation18 + $0x228] sm:$0xff]  ;;  %v1359_v46 = vld [vmem:[#allocation18 + $0xf0] sm:$0xff] }
 0x3d9   :  { %v7334_v0 = vcombine.high %v1394_v58, %v1398_v49 }
 0x3da   :  { %3004 = vmatpush1.bf16.msra.mxu0 %v7269_v45  ;;  %3045 = vmatpush1.bf16.msra.mxu1 %v7397_v61  ;;  %v1522_v45 = vld [vmem:[#allocation18 + $0x608] sm:$0xff] }
 0x3db   :  { %3005 = vmatprep.subr.bf16.mxu0 %v7390_v62  ;;  %3046 = vmatprep.subr.bf16.mxu1 %v7518_v63  ;;  %v1526_v61 = vld [vmem:[#allocation18 + $0x628] sm:$0xff]  ;;  %v7341_v62 = vcombine.low %v1402_v50, %v1406_v18  ;;  %v7469_v63 = vcombine.low %v1530_v19, %v1534_v51  ;;  %v7296_v50 = vcombine.high %v1355_v44, %v1359_v46  ;;  %v1347_v19 = vld [vmem:[#allocation18 + $0x90] sm:$0xff] }
 0x3dc   :  { %v7462_v4 = vcombine.high %v1522_v45, %v1526_v61  ;;  %v1351_v51 = vld [vmem:[#allocation18 + $0xb0] sm:$0xff] }
 0x3de   :  { %3006 = vmatpush2.bf16.msra.mxu0 %v7389_v12  ;;  %3047 = vmatpush2.bf16.msra.mxu1 %v7517_v13  ;;  %v1515_v12 = vld [vmem:[#allocation18 + $0x5d0] sm:$0xff] }
 0x3df   :  { %3007 = vmatprep.subr.bf16.mxu0 %v7382_v14  ;;  %3048 = vmatprep.subr.bf16.mxu1 %v7510_v15  ;;  %v1519_v13 = vld [vmem:[#allocation18 + $0x5f0] sm:$0xff]  ;;  %v7333_v14 = vcombine.low %v1394_v58, %v1398_v49  ;;  %v7461_v15 = vcombine.low %v1522_v45, %v1526_v61  ;;  %v7288_v58 = vcombine.high %v1347_v19, %v1351_v51 }
 0x3e0   :  { %v7456_v17 = vcombine.high %v1515_v12, %v1519_v13  ;;  %v1339_v45 = vld [vmem:[#allocation18 + $0x50] sm:$0xff] }
 0x3e1   :  { %v1343_v61 = vld [vmem:[#allocation18 + $0x70] sm:$0xff] }
 0x3e2   :  { %3008 = vmatpush2.bf16.msra.mxu0 %v7381_v3  ;;  %3049 = vmatpush2.bf16.msra.mxu1 %v7509_v5  ;;  %v1507_v3 = vld [vmem:[#allocation18 + $0x590] sm:$0xff] }
 0x3e3   :  { %3009 = vmatprep.subr.bf16.mxu0 %v7374_v6  ;;  %3050 = vmatprep.subr.bf16.mxu1 %v7502_v7  ;;  %v1511_v5 = vld [vmem:[#allocation18 + $0x5b0] sm:$0xff]  ;;  %v7327_v6 = vcombine.low %v1387_v8, %v1391_v10  ;;  %v7455_v7 = vcombine.low %v1515_v12, %v1519_v13  ;;  %v7280_v8 = vcombine.high %v1339_v45, %v1343_v61 }
 0x3e4   :  { %v7448_v21 = vcombine.high %v1507_v3, %v1511_v5  ;;  %v1331_v12 = vld [vmem:[#allocation18 + $0x10] sm:$0xff] }
 0x3e5   :  { %v1335_v13 = vld [vmem:[#allocation18 + $0x30] sm:$0xff] }
 0x3e6   :  { %3010 = vmatpush2.bf16.msra.mxu0 %v7373_v29  ;;  %3051 = vmatpush2.bf16.msra.mxu1 %v7501_v30  ;;  %v1499_v29 = vld [vmem:[#allocation18 + $0x550] sm:$0xff] }
 0x3e7   :  { %3011 = vmatprep.subr.bf16.mxu0 %v7366_v31  ;;  %3052 = vmatprep.subr.bf16.mxu1 %v7494_v32  ;;  %v1503_v30 = vld [vmem:[#allocation18 + $0x570] sm:$0xff]  ;;  %v7319_v31 = vcombine.low %v1379_v1, %v1383_v2  ;;  %v7447_v32 = vcombine.low %v1507_v3, %v1511_v5  ;;  %v7272_v1 = vcombine.high %v1331_v12, %v1335_v13 }
 0x3e8   :  { %v7440_v34 = vcombine.high %v1499_v29, %v1503_v30  ;;  %v1451_v3 = vld [vmem:[#allocation18 + $0x3d0] sm:$0xff] }
 0x3e9   :  { %v1455_v5 = vld [vmem:[#allocation18 + $0x3f0] sm:$0xff] }
 0x3ea   :  { %3012 = vmatpush2.bf16.msra.mxu0 %v7365_v22  ;;  %3053 = vmatpush2.bf16.msra.mxu1 %v7493_v24  ;;  %v1491_v22 = vld [vmem:[#allocation18 + $0x510] sm:$0xff] }
 0x3eb   :  { %3013 = vmatprep.subr.bf16.mxu0 %v7358_v37  ;;  %3054 = vmatprep.subr.bf16.mxu1 %v7486_v40  ;;  %v1495_v24 = vld [vmem:[#allocation18 + $0x530] sm:$0xff]  ;;  %v7311_v37 = vcombine.low %v1371_v23, %v1375_v25  ;;  %v7439_v40 = vcombine.low %v1499_v29, %v1503_v30  ;;  %v7392_v23 = vcombine.high %v1451_v3, %v1455_v5 }
 0x3ec   :  { %v7432_v43 = vcombine.high %v1491_v22, %v1495_v24  ;;  %v1443_v29 = vld [vmem:[#allocation18 + $0x390] sm:$0xff] }
 0x3ed   :  { %v1447_v30 = vld [vmem:[#allocation18 + $0x3b0] sm:$0xff] }
 0x3ee   :  { %3014 = vmatpush2.bf16.msra.mxu0 %v7357_v47  ;;  %3055 = vmatpush2.bf16.msra.mxu1 %v7485_v48  ;;  %v1483_v47 = vld [vmem:[#allocation18 + $0x4d0] sm:$0xff] }
 0x3ef   :  { %3015 = vmatprep.subr.bf16.mxu0 %v7350_v28  ;;  %3056 = vmatprep.subr.bf16.mxu1 %v7478_v27  ;;  %v1487_v48 = vld [vmem:[#allocation18 + $0x4f0] sm:$0xff]  ;;  %v7303_v28 = vcombine.low %v1363_v35, %v1367_v36  ;;  %v7431_v27 = vcombine.low %v1491_v22, %v1495_v24  ;;  %v7384_v35 = vcombine.high %v1443_v29, %v1447_v30 }
 0x3f0   :  { %v7424_v18 = vcombine.high %v1483_v47, %v1487_v48  ;;  %v1435_v22 = vld [vmem:[#allocation18 + $0x350] sm:$0xff] }
 0x3f1   :  { %v1439_v24 = vld [vmem:[#allocation18 + $0x370] sm:$0xff] }
 0x3f2   :  { %3016 = vmatpush2.bf16.msra.mxu0 %v7349_v52  ;;  %3057 = vmatpush2.bf16.msra.mxu1 %v7477_v53  ;;  %v1475_v52 = vld [vmem:[#allocation18 + $0x490] sm:$0xff] }
 0x3f3   :  { %3017 = vmatprep.subr.bf16.mxu0 %v7342_v54  ;;  %3058 = vmatprep.subr.bf16.mxu1 %v7470_v55  ;;  %v1479_v53 = vld [vmem:[#allocation18 + $0x4b0] sm:$0xff]  ;;  %v7295_v54 = vcombine.low %v1355_v44, %v1359_v46  ;;  %v7423_v55 = vcombine.low %v1483_v47, %v1487_v48  ;;  %v7376_v44 = vcombine.high %v1435_v22, %v1439_v24 }
 0x3f4   :  { %v7416_v49 = vcombine.high %v1475_v52, %v1479_v53  ;;  %v1427_v47 = vld [vmem:[#allocation18 + $0x310] sm:$0xff] }
 0x3f5   :  { %v1431_v48 = vld [vmem:[#allocation18 + $0x330] sm:$0xff] }
 0x3f6   :  { %3018 = vmatpush2.bf16.msra.mxu0 %v7341_v62  ;;  %3059 = vmatpush2.bf16.msra.mxu1 %v7469_v63  ;;  %v1467_v62 = vld [vmem:[#allocation18 + $0x450] sm:$0xff] }
 0x3f7   :  { %3019 = vmatprep.subr.bf16.mxu0 %v7334_v0  ;;  %3060 = vmatprep.subr.bf16.mxu1 %v7462_v4  ;;  %v1471_v63 = vld [vmem:[#allocation18 + $0x470] sm:$0xff]  ;;  %v7287_v0 = vcombine.low %v1347_v19, %v1351_v51  ;;  %v7415_v4 = vcombine.low %v1475_v52, %v1479_v53  ;;  %v7368_v19 = vcombine.high %v1427_v47, %v1431_v48 }
 0x3f8   :  { %v7408_v10 = vcombine.high %v1467_v62, %v1471_v63  ;;  %v1419_v52 = vld [vmem:[#allocation18 + $0x2d0] sm:$0xff] }
 0x3f9   :  { %v1423_v53 = vld [vmem:[#allocation18 + $0x2f0] sm:$0xff] }
 0x3fa   :  { %3020 = vmatpush2.bf16.msra.mxu0 %v7333_v14  ;;  %3061 = vmatpush2.bf16.msra.mxu1 %v7461_v15  ;;  %v1459_v14 = vld [vmem:[#allocation18 + $0x410] sm:$0xff] }
 0x3fb   :  { %3071 = vmatprep.subr.bf16.mxu0 %v7328_v16  ;;  %3112 = vmatprep.subr.bf16.mxu1 %v7456_v17  ;;  %v1463_v15 = vld [vmem:[#allocation18 + $0x430] sm:$0xff]  ;;  %v7279_v16 = vcombine.low %v1339_v45, %v1343_v61  ;;  %v7407_v17 = vcombine.low %v1467_v62, %v1471_v63  ;;  %v7360_v45 = vcombine.high %v1419_v52, %v1423_v53 }
 0x3fc   :  { %v7400_v2 = vcombine.high %v1459_v14, %v1463_v15  ;;  %v1411_v62 = vld [vmem:[#allocation18 + $0x290] sm:$0xff] }
 0x3fd   :  { %3022 = vmatmul.mubr.bf16.vlgmr.msra.gmra.mxu0 %v9537_v59  ;;  %3063 = vmatmul.mubr.bf16.vlgmr.msra.gmra.mxu1 %v9539_v60  ;;  %v1415_v63 = vld [vmem:[#allocation18 + $0x2b0] sm:$0xff] }
 0x3fe   :  { %3072 = vmatpush1.bf16.msra.mxu0 %v7327_v6  ;;  %3103 = vmatprep.mubr.bf16.mxu0 %v9533_v56  ;;  %v1579_v6 = vld [vmem:[#allocation18 + $0x7d0] sm:$0xff] }
 0x3ff   :  { %3113 = vmatpush1.bf16.msra.mxu1 %v7455_v7  ;;  %3144 = vmatprep.mubr.bf16.mxu1 %v9535_v57  ;;  %v1583_v7 = vld [vmem:[#allocation18 + $0x7f0] sm:$0xff] }
 0x400   :  { %3073 = vmatprep.subr.bf16.mxu0 %v7320_v20  ;;  %3114 = vmatprep.subr.bf16.mxu1 %v7448_v21  ;;  %v7271_v20 = vcombine.low %v1331_v12, %v1335_v13  ;;  %v7399_v21 = vcombine.low %v1459_v14, %v1463_v15  ;;  %v7520_v25 = vcombine.high %v1579_v6, %v1583_v7  ;;  %v1403_v14 = vld [vmem:[#allocation18 + $0x250] sm:$0xff] }
 0x401   :  { %v7352_v12 = vcombine.high %v1411_v62, %v1415_v63  ;;  %v1407_v15 = vld [vmem:[#allocation18 + $0x270] sm:$0xff] }
 0x402   :  { %3074 = vmatpush1.bf16.msra.mxu0 %v7319_v31  ;;  %v1571_v31 = vld [vmem:[#allocation18 + $0x790] sm:$0xff] }
 0x403   :  { %3115 = vmatpush1.bf16.msra.mxu1 %v7447_v32  ;;  %3075 = vmatprep.subr.bf16.mxu0 %v7312_v33  ;;  %v1575_v32 = vld [vmem:[#allocation18 + $0x7b0] sm:$0xff]  ;;  %v7391_v33 = vcombine.low %v1451_v3, %v1455_v5  ;;  %v7344_v3 = vcombine.high %v1403_v14, %v1407_v15 }
 0x404   :  { %3116 = vmatprep.subr.bf16.mxu1 %v7440_v34  ;;  %v7519_v34 = vcombine.low %v1579_v6, %v1583_v7  ;;  %v7512_v36 = vcombine.high %v1571_v31, %v1575_v32  ;;  %v1395_v6 = vld [vmem:[#allocation18 + $0x210] sm:$0xff] }
 0x405   :  { %v1399_v7 = vld [vmem:[#allocation18 + $0x230] sm:$0xff] }
 0x406   :  { %3076 = vmatpush1.bf16.msra.mxu0 %v7311_v37  ;;  %v1563_v37 = vld [vmem:[#allocation18 + $0x750] sm:$0xff] }
 0x407   :  { %3117 = vmatpush1.bf16.msra.mxu1 %v7439_v40  ;;  %3077 = vmatprep.subr.bf16.mxu0 %v7304_v42  ;;  %v1567_v40 = vld [vmem:[#allocation18 + $0x770] sm:$0xff]  ;;  %v7383_v42 = vcombine.low %v1443_v29, %v1447_v30  ;;  %v7336_v29 = vcombine.high %v1395_v6, %v1399_v7 }
 0x408   :  { %3118 = vmatprep.subr.bf16.mxu1 %v7432_v43  ;;  %v7511_v43 = vcombine.low %v1571_v31, %v1575_v32  ;;  %v7504_v46 = vcombine.high %v1563_v37, %v1567_v40  ;;  %v1388_v31 = vld [vmem:[#allocation18 + $0x1d8] sm:$0xff] }
 0x409   :  { %v1392_v32 = vld [vmem:[#allocation18 + $0x1f8] sm:$0xff] }
 0x40a   :  { %3078 = vmatpush1.bf16.msra.mxu0 %v7303_v28  ;;  %v1555_v28 = vld [vmem:[#allocation18 + $0x710] sm:$0xff] }
 0x40b   :  { %3119 = vmatpush1.bf16.msra.mxu1 %v7431_v27  ;;  %3079 = vmatprep.subr.bf16.mxu0 %v7296_v50  ;;  %v1559_v27 = vld [vmem:[#allocation18 + $0x730] sm:$0xff]  ;;  %v7375_v50 = vcombine.low %v1435_v22, %v1439_v24  ;;  %v7330_v22 = vcombine.high %v1388_v31, %v1392_v32 }
 0x40c   :  { %3120 = vmatprep.subr.bf16.mxu1 %v7424_v18  ;;  %v7503_v18 = vcombine.low %v1563_v37, %v1567_v40  ;;  %v7496_v51 = vcombine.high %v1555_v28, %v1559_v27  ;;  %v1380_v37 = vld [vmem:[#allocation18 + $0x198] sm:$0xff] }
 0x40d   :  { %v1384_v40 = vld [vmem:[#allocation18 + $0x1b8] sm:$0xff] }
 0x40e   :  { %3080 = vmatpush1.bf16.msra.mxu0 %v7295_v54  ;;  %v1547_v54 = vld [vmem:[#allocation18 + $0x6d0] sm:$0xff] }
 0x40f   :  { %3121 = vmatpush1.bf16.msra.mxu1 %v7423_v55  ;;  %3081 = vmatprep.subr.bf16.mxu0 %v7288_v58  ;;  %v1551_v55 = vld [vmem:[#allocation18 + $0x6f0] sm:$0xff]  ;;  %v7367_v58 = vcombine.low %v1427_v47, %v1431_v48  ;;  %v7322_v47 = vcombine.high %v1380_v37, %v1384_v40  ;;  %v1372_v48 = vld [vmem:[#allocation18 + $0x158] sm:$0xff] }
 0x410   :  { %3122 = vmatprep.subr.bf16.mxu1 %v7416_v49  ;;  %v7495_v49 = vcombine.low %v1555_v28, %v1559_v27  ;;  %v7488_v61 = vcombine.high %v1547_v54, %v1551_v55  ;;  %v1376_v28 = vld [vmem:[#allocation18 + $0x178] sm:$0xff] }
 0x412   :  { %3082 = vmatpush1.bf16.msra.mxu0 %v7287_v0  ;;  %v1539_v0 = vld [vmem:[#allocation18 + $0x690] sm:$0xff] }
 0x413   :  { %3123 = vmatpush1.bf16.msra.mxu1 %v7415_v4  ;;  %3083 = vmatprep.subr.bf16.mxu0 %v7280_v8  ;;  %v1543_v4 = vld [vmem:[#allocation18 + $0x6b0] sm:$0xff]  ;;  %v7359_v8 = vcombine.low %v1419_v52, %v1423_v53  ;;  %v7314_v52 = vcombine.high %v1372_v48, %v1376_v28 }
 0x414   :  { %3124 = vmatprep.subr.bf16.mxu1 %v7408_v10  ;;  %v7487_v10 = vcombine.low %v1547_v54, %v1551_v55  ;;  %v7480_v13 = vcombine.high %v1539_v0, %v1543_v4  ;;  %v1364_v54 = vld [vmem:[#allocation18 + $0x118] sm:$0xff] }
 0x415   :  { %v1368_v55 = vld [vmem:[#allocation18 + $0x138] sm:$0xff] }
 0x416   :  { %3084 = vmatpush1.bf16.msra.mxu0 %v7279_v16  ;;  %v1531_v16 = vld [vmem:[#allocation18 + $0x650] sm:$0xff] }
 0x417   :  { %3125 = vmatpush1.bf16.msra.mxu1 %v7407_v17  ;;  %3085 = vmatprep.subr.bf16.mxu0 %v7272_v1  ;;  %v1535_v17 = vld [vmem:[#allocation18 + $0x670] sm:$0xff]  ;;  %v7351_v1 = vcombine.low %v1411_v62, %v1415_v63  ;;  %v7306_v62 = vcombine.high %v1364_v54, %v1368_v55  ;;  %v1356_v63 = vld [vmem:[#allocation18 + $0xd8] sm:$0xff] }
 0x418   :  { %3126 = vmatprep.subr.bf16.mxu1 %v7400_v2  ;;  %v7479_v2 = vcombine.low %v1539_v0, %v1543_v4  ;;  %v7472_v5 = vcombine.high %v1531_v16, %v1535_v17  ;;  %v1360_v0 = vld [vmem:[#allocation18 + $0xf8] sm:$0xff] }
 0x419   :  { %v1484_v4 = vld [vmem:[#allocation18 + $0x4d8] sm:$0xff] }
 0x41a   :  { %3086 = vmatpush1.bf16.msra.mxu0 %v7271_v20  ;;  %v1523_v20 = vld [vmem:[#allocation18 + $0x610] sm:$0xff] }
 0x41b   :  { %3127 = vmatpush1.bf16.msra.mxu1 %v7399_v21  ;;  %3087 = vmatprep.subr.bf16.mxu0 %v7392_v23  ;;  %v1527_v21 = vld [vmem:[#allocation18 + $0x630] sm:$0xff]  ;;  %v7343_v23 = vcombine.low %v1403_v14, %v1407_v15  ;;  %v1348_v14 = vld [vmem:[#allocation18 + $0x98] sm:$0xff] }
 0x41c   :  { %3128 = vmatprep.subr.bf16.mxu1 %v7520_v25  ;;  %v7471_v25 = vcombine.low %v1531_v16, %v1535_v17  ;;  %v7464_v30 = vcombine.high %v1523_v20, %v1527_v21  ;;  %v1352_v15 = vld [vmem:[#allocation18 + $0xb8] sm:$0xff] }
 0x41d   :  { %v1476_v16 = vld [vmem:[#allocation18 + $0x498] sm:$0xff] }
 0x41e   :  { %3088 = vmatpush2.bf16.msra.mxu0 %v7391_v33  ;;  %v1516_v33 = vld [vmem:[#allocation18 + $0x5d8] sm:$0xff] }
 0x41f   :  { %3129 = vmatpush2.bf16.msra.mxu1 %v7519_v34  ;;  %3089 = vmatprep.subr.bf16.mxu0 %v7384_v35  ;;  %v1520_v34 = vld [vmem:[#allocation18 + $0x5f8] sm:$0xff]  ;;  %v7335_v35 = vcombine.low %v1395_v6, %v1399_v7 }
 0x420   :  { %3130 = vmatprep.subr.bf16.mxu1 %v7512_v36  ;;  %v7463_v36 = vcombine.low %v1523_v20, %v1527_v21  ;;  %v7458_v24 = vcombine.high %v1516_v33, %v1520_v34  ;;  %v1480_v17 = vld [vmem:[#allocation18 + $0x4b8] sm:$0xff] }
 0x421   :  { %v1340_v6 = vld [vmem:[#allocation18 + $0x58] sm:$0xff] }
 0x422   :  { %3090 = vmatpush2.bf16.msra.mxu0 %v7383_v42  ;;  %v7329_v42 = vcombine.low %v1388_v31, %v1392_v32  ;;  %v1344_v7 = vld [vmem:[#allocation18 + $0x78] sm:$0xff] }
 0x423   :  { %3131 = vmatpush2.bf16.msra.mxu1 %v7511_v43  ;;  %3091 = vmatprep.subr.bf16.mxu0 %v7376_v44  ;;  %v1508_v43 = vld [vmem:[#allocation18 + $0x598] sm:$0xff] }
 0x424   :  { %3132 = vmatprep.subr.bf16.mxu1 %v7504_v46  ;;  %v1512_v44 = vld [vmem:[#allocation18 + $0x5b8] sm:$0xff]  ;;  %v7457_v46 = vcombine.low %v1516_v33, %v1520_v34 }
 0x425   :  { %v7450_v27 = vcombine.high %v1508_v43, %v1512_v44  ;;  %v1468_v20 = vld [vmem:[#allocation18 + $0x458] sm:$0xff] }
 0x426   :  { %3092 = vmatpush2.bf16.msra.mxu0 %v7375_v50  ;;  %v1500_v50 = vld [vmem:[#allocation18 + $0x558] sm:$0xff] }
 0x427   :  { %3133 = vmatpush2.bf16.msra.mxu1 %v7503_v18  ;;  %3093 = vmatprep.subr.bf16.mxu0 %v7368_v19  ;;  %v1504_v18 = vld [vmem:[#allocation18 + $0x578] sm:$0xff]  ;;  %v7321_v19 = vcombine.low %v1380_v37, %v1384_v40 }
 0x428   :  { %3134 = vmatprep.subr.bf16.mxu1 %v7496_v51  ;;  %v7449_v51 = vcombine.low %v1508_v43, %v1512_v44  ;;  %v7442_v53 = vcombine.high %v1500_v50, %v1504_v18  ;;  %v1472_v21 = vld [vmem:[#allocation18 + $0x478] sm:$0xff] }
 0x429   :  { %v1332_v31 = vld [vmem:[#allocation18 + $0x18] sm:$0xff] }
 0x42a   :  { %3094 = vmatpush2.bf16.msra.mxu0 %v7367_v58  ;;  %v1492_v58 = vld [vmem:[#allocation18 + $0x518] sm:$0xff] }
 0x42b   :  { %3135 = vmatpush2.bf16.msra.mxu1 %v7495_v49  ;;  %3095 = vmatprep.subr.bf16.mxu0 %v7360_v45  ;;  %v1496_v49 = vld [vmem:[#allocation18 + $0x538] sm:$0xff]  ;;  %v7313_v45 = vcombine.low %v1372_v48, %v1376_v28 }
 0x42c   :  { %3136 = vmatprep.subr.bf16.mxu1 %v7488_v61  ;;  %v7441_v61 = vcombine.low %v1500_v50, %v1504_v18  ;;  %v1336_v32 = vld [vmem:[#allocation18 + $0x38] sm:$0xff] }
 0x42d   :  { %v1460_v33 = vld [vmem:[#allocation18 + $0x418] sm:$0xff]  ;;  %v7273_v44 = vcombine.low %v1332_v31, %v1336_v32 }
 0x42e   :  { %3096 = vmatpush2.bf16.msra.mxu0 %v7359_v8  ;;  %v1488_v8 = vld [vmem:[#allocation18 + $0x4f8] sm:$0xff] }
 0x42f   :  { %3137 = vmatpush2.bf16.msra.mxu1 %v7487_v10  ;;  %3097 = vmatprep.subr.bf16.mxu0 %v7352_v12  ;;  %v7433_v10 = vcombine.low %v1492_v58, %v1496_v49  ;;  %v7298_v12 = vcombine.high %v1356_v63, %v1360_v0  ;;  %v1464_v34 = vld [vmem:[#allocation18 + $0x438] sm:$0xff] }
 0x430   :  { %3138 = vmatprep.subr.bf16.mxu1 %v7480_v13  ;;  %v7426_v13 = vcombine.high %v1484_v4, %v1488_v8  ;;  %v1452_v37 = vld [vmem:[#allocation18 + $0x3d8] sm:$0xff] }
 0x431   :  { %v1456_v40 = vld [vmem:[#allocation18 + $0x3f8] sm:$0xff] }
 0x432   :  { %3098 = vmatpush2.bf16.msra.mxu0 %v7351_v1  ;;  %v7297_v1 = vcombine.low %v1356_v63, %v1360_v0  ;;  %v1584_v43 = vld [vmem:[#allocation18 + $0x7f8] sm:$0xff] }
 0x433   :  { %3139 = vmatpush2.bf16.msra.mxu1 %v7479_v2  ;;  %3099 = vmatprep.subr.bf16.mxu0 %v7344_v3  ;;  %v7425_v2 = vcombine.low %v1484_v4, %v1488_v8  ;;  %v7290_v3 = vcombine.high %v1348_v14, %v1352_v15  ;;  %v1444_v28 = vld [vmem:[#allocation18 + $0x398] sm:$0xff] }
 0x434   :  { %3140 = vmatprep.subr.bf16.mxu1 %v7472_v5  ;;  %v7418_v5 = vcombine.high %v1476_v16, %v1480_v17  ;;  %v1572_v50 = vld [vmem:[#allocation18 + $0x798] sm:$0xff] }
 0x435   :  { %v1576_v18 = vld [vmem:[#allocation18 + $0x7b8] sm:$0xff] }
 0x436   :  { %3100 = vmatpush2.bf16.msra.mxu0 %v7343_v23  ;;  %v7289_v23 = vcombine.low %v1348_v14, %v1352_v15  ;;  %v1428_v63 = vld [vmem:[#allocation18 + $0x318] sm:$0xff] }
 0x437   :  { %3141 = vmatpush2.bf16.msra.mxu1 %v7471_v25  ;;  %3101 = vmatprep.subr.bf16.mxu0 %v7336_v29  ;;  %v7417_v25 = vcombine.low %v1476_v16, %v1480_v17  ;;  %v7282_v29 = vcombine.high %v1340_v6, %v1344_v7  ;;  %v1432_v0 = vld [vmem:[#allocation18 + $0x338] sm:$0xff] }
 0x438   :  { %3142 = vmatprep.subr.bf16.mxu1 %v7464_v30  ;;  %v7410_v30 = vcombine.high %v1468_v20, %v1472_v21  ;;  %v1556_v4 = vld [vmem:[#allocation18 + $0x718] sm:$0xff] }
 0x439   :  { %v1560_v8 = vld [vmem:[#allocation18 + $0x738] sm:$0xff] }
 0x43a   :  { %3102 = vmatpush2.bf16.msra.mxu0 %v7335_v35  ;;  %v7281_v35 = vcombine.low %v1340_v6, %v1344_v7  ;;  %v1420_v14 = vld [vmem:[#allocation18 + $0x2d8] sm:$0xff] }
 0x43b   :  { %3143 = vmatpush2.bf16.msra.mxu1 %v7463_v36  ;;  %3153 = vmatprep.subr.bf16.mxu0 %v7330_v22  ;;  %v7409_v36 = vcombine.low %v1468_v20, %v1472_v21  ;;  %v7274_v22 = vcombine.high %v1332_v31, %v1336_v32  ;;  %v1424_v15 = vld [vmem:[#allocation18 + $0x2f8] sm:$0xff] }
 0x43c   :  { %3194 = vmatprep.subr.bf16.mxu1 %v7458_v24  ;;  %v7402_v24 = vcombine.high %v1460_v33, %v1464_v34  ;;  %v1548_v16 = vld [vmem:[#allocation18 + $0x6d8] sm:$0xff] }
 0x43d   :  { %3104 = vmatmul.mubr.bf16.vlgmr.msra.gmra.mxu0 %v9537_v59  ;;  %v1552_v17 = vld [vmem:[#allocation18 + $0x6f8] sm:$0xff] }
 0x43e   :  { %3145 = vmatmul.mubr.bf16.vlgmr.msra.gmra.mxu1 %v9539_v60  ;;  %3154 = vmatpush1.bf16.msra.mxu0 %v7329_v42  ;;  %v1580_v42 = vld [vmem:[#allocation18 + $0x7d8] sm:$0xff] }
 0x43f   :  { %3185 = vmatprep.mubr.bf16.mxu0 %v9533_v56  ;;  %3195 = vmatpush1.bf16.msra.mxu1 %v7457_v46  ;;  %v7434_v56 = vcombine.high %v1492_v58, %v1496_v49  ;;  %v7401_v46 = vcombine.low %v1460_v33, %v1464_v34  ;;  %v7522_v48 = vcombine.high %v1580_v42, %v1584_v43  ;;  %v1564_v58 = vld [vmem:[#allocation18 + $0x758] sm:$0xff] }
 0x440   :  { %3226 = vmatprep.mubr.bf16.mxu1 %v9535_v57  ;;  %3155 = vmatprep.subr.bf16.mxu0 %v7322_v47  ;;  %v7305_v57 = vcombine.low %v1364_v54, %v1368_v55  ;;  %v7394_v47 = vcombine.high %v1452_v37, %v1456_v40  ;;  %v1436_v54 = vld [vmem:[#allocation18 + $0x358] sm:$0xff] }
 0x441   :  { %3196 = vmatprep.subr.bf16.mxu1 %v7450_v27  ;;  %v1448_v27 = vld [vmem:[#allocation18 + $0x3b8] sm:$0xff] }
 0x442   :  { %3156 = vmatpush1.bf16.msra.mxu0 %v7321_v19  ;;  %v7393_v19 = vcombine.low %v1452_v37, %v1456_v40  ;;  %v1440_v55 = vld [vmem:[#allocation18 + $0x378] sm:$0xff] }
 0x443   :  { %3197 = vmatpush1.bf16.msra.mxu1 %v7449_v51  ;;  %3157 = vmatprep.subr.bf16.mxu0 %v7314_v52  ;;  %v7521_v51 = vcombine.low %v1580_v42, %v1584_v43  ;;  %v7386_v52 = vcombine.high %v1444_v28, %v1448_v27  ;;  %v1568_v49 = vld [vmem:[#allocation18 + $0x778] sm:$0xff] }
 0x444   :  { %3198 = vmatprep.subr.bf16.mxu1 %v7442_v53  ;;  %v7514_v53 = vcombine.high %v1572_v50, %v1576_v18  ;;  %v1412_v6 = vld [vmem:[#allocation18 + $0x298] sm:$0xff] }
 0x445   :  { %v1416_v7 = vld [vmem:[#allocation18 + $0x2b8] sm:$0xff] }
 0x446   :  { %3158 = vmatpush1.bf16.msra.mxu0 %v7313_v45  ;;  %v7385_v45 = vcombine.low %v1444_v28, %v1448_v27  ;;  %v1540_v20 = vld [vmem:[#allocation18 + $0x698] sm:$0xff] }
 0x447   :  { %3199 = vmatpush1.bf16.msra.mxu1 %v7441_v61  ;;  %3159 = vmatprep.subr.bf16.mxu0 %v7306_v62  ;;  %v7513_v61 = vcombine.low %v1572_v50, %v1576_v18  ;;  %v7378_v62 = vcombine.high %v1436_v54, %v1440_v55  ;;  %v1544_v21 = vld [vmem:[#allocation18 + $0x6b8] sm:$0xff]  ;;  %v9561_v50 = vld [vmem:[#allocation19] sm:$0xff] }
 0x448   :  { %3200 = vmatprep.subr.bf16.mxu1 %v7434_v56  ;;  %v7506_v56 = vcombine.high %v1564_v58, %v1568_v49  ;;  %v1404_v31 = vld [vmem:[#allocation18 + $0x258] sm:$0xff]  ;;  %v1590_v18 = vrot.slane %v9561_v50, %v9440_v39 }
 0x449   :  { %v1408_v32 = vld [vmem:[#allocation18 + $0x278] sm:$0xff] }
 0x44a   :  { %3160 = vmatpush1.bf16.msra.mxu0 %v7305_v57  ;;  %v7377_v57 = vcombine.low %v1436_v54, %v1440_v55  ;;  %v1532_v33 = vld [vmem:[#allocation18 + $0x658] sm:$0xff] }
 0x44b   :  { %3201 = vmatpush1.bf16.msra.mxu1 %v7433_v10  ;;  %3161 = vmatprep.subr.bf16.mxu0 %v7298_v12  ;;  %v7505_v10 = vcombine.low %v1564_v58, %v1568_v49  ;;  %v7370_v12 = vcombine.high %v1428_v63, %v1432_v0  ;;  %v1536_v34 = vld [vmem:[#allocation18 + $0x678] sm:$0xff] }
 0x44c   :  { %3202 = vmatprep.subr.bf16.mxu1 %v7426_v13  ;;  %v7498_v13 = vcombine.high %v1556_v4, %v1560_v8  ;;  %v1396_v37 = vld [vmem:[#allocation18 + $0x218] sm:$0xff] }
 0x44d   :  { %v1400_v40 = vld [vmem:[#allocation18 + $0x238] sm:$0xff] }
 0x44e   :  { %3162 = vmatpush1.bf16.msra.mxu0 %v7297_v1  ;;  %v7369_v1 = vcombine.low %v1428_v63, %v1432_v0  ;;  %v1524_v42 = vld [vmem:[#allocation18 + $0x618] sm:$0xff]  ;;  %v7337_v28 = vcombine.low %v1396_v37, %v1400_v40 }
 0x44f   :  { %3203 = vmatpush1.bf16.msra.mxu1 %v7425_v2  ;;  %3163 = vmatprep.subr.bf16.mxu0 %v7290_v3  ;;  %v7497_v2 = vcombine.low %v1556_v4, %v1560_v8  ;;  %v7362_v3 = vcombine.high %v1420_v14, %v1424_v15  ;;  %v1528_v43 = vld [vmem:[#allocation18 + $0x638] sm:$0xff] }
 0x450   :  { %3204 = vmatprep.subr.bf16.mxu1 %v7418_v5  ;;  %v7490_v5 = vcombine.high %v1548_v16, %v1552_v17  ;;  %v7465_v27 = vcombine.low %v1524_v42, %v1528_v43 }
 0x452   :  { %3164 = vmatpush1.bf16.msra.mxu0 %v7289_v23  ;;  %v7361_v23 = vcombine.low %v1420_v14, %v1424_v15 }
 0x453   :  { %3205 = vmatpush1.bf16.msra.mxu1 %v7417_v25  ;;  %3165 = vmatprep.subr.bf16.mxu0 %v7282_v29  ;;  %v7489_v25 = vcombine.low %v1548_v16, %v1552_v17  ;;  %v7354_v29 = vcombine.high %v1412_v6, %v1416_v7 }
 0x454   :  { %3206 = vmatprep.subr.bf16.mxu1 %v7410_v30  ;;  %v7482_v30 = vcombine.high %v1540_v20, %v1544_v21 }
 0x456   :  { %3166 = vmatpush1.bf16.msra.mxu0 %v7281_v35  ;;  %v7353_v35 = vcombine.low %v1412_v6, %v1416_v7 }
 0x457   :  { %3207 = vmatpush1.bf16.msra.mxu1 %v7409_v36  ;;  %3167 = vmatprep.subr.bf16.mxu0 %v7274_v22  ;;  %v7481_v36 = vcombine.low %v1540_v20, %v1544_v21  ;;  %v7346_v22 = vcombine.high %v1404_v31, %v1408_v32 }
 0x458   :  { %3208 = vmatprep.subr.bf16.mxu1 %v7402_v24  ;;  %v7474_v24 = vcombine.high %v1532_v33, %v1536_v34 }
 0x45a   :  { %3168 = vmatpush1.bf16.msra.mxu0 %v7273_v44  ;;  %v7345_v44 = vcombine.low %v1404_v31, %v1408_v32 }
 0x45b   :  { %3209 = vmatpush1.bf16.msra.mxu1 %v7401_v46  ;;  %3169 = vmatprep.subr.bf16.mxu0 %v7394_v47  ;;  %v7473_v46 = vcombine.low %v1532_v33, %v1536_v34  ;;  %v7338_v47 = vcombine.high %v1396_v37, %v1400_v40 }
 0x45c   :  { %3210 = vmatprep.subr.bf16.mxu1 %v7522_v48  ;;  %v7466_v48 = vcombine.high %v1524_v42, %v1528_v43 }
 0x45e   :  { %3170 = vmatpush2.bf16.msra.mxu0 %v7393_v19  ;;  %v1594_v19 = vrot.slane %v9561_v50, %v9443_v41 }
 0x45f   :  { %3211 = vmatpush2.bf16.msra.mxu1 %v7521_v51  ;;  %3171 = vmatprep.subr.bf16.mxu0 %v7386_v52 }
 0x460   :  { %3212 = vmatprep.subr.bf16.mxu1 %v7514_v53 }
 0x462   :  { %3172 = vmatpush2.bf16.msra.mxu0 %v7385_v45 }
 0x463   :  { %3213 = vmatpush2.bf16.msra.mxu1 %v7513_v61  ;;  %3173 = vmatprep.subr.bf16.mxu0 %v7378_v62 }
 0x464   :  { %3214 = vmatprep.subr.bf16.mxu1 %v7506_v56 }
 0x466   :  { %3174 = vmatpush2.bf16.msra.mxu0 %v7377_v57 }
 0x467   :  { %3215 = vmatpush2.bf16.msra.mxu1 %v7505_v10  ;;  %3175 = vmatprep.subr.bf16.mxu0 %v7370_v12 }
 0x468   :  { %3216 = vmatprep.subr.bf16.mxu1 %v7498_v13 }
 0x46a   :  { %3176 = vmatpush2.bf16.msra.mxu0 %v7369_v1 }
 0x46b   :  { %3217 = vmatpush2.bf16.msra.mxu1 %v7497_v2  ;;  %3177 = vmatprep.subr.bf16.mxu0 %v7362_v3 }
 0x46c   :  { %3218 = vmatprep.subr.bf16.mxu1 %v7490_v5 }
 0x46e   :  { %3178 = vmatpush2.bf16.msra.mxu0 %v7361_v23 }
 0x46f   :  { %3219 = vmatpush2.bf16.msra.mxu1 %v7489_v25  ;;  %3179 = vmatprep.subr.bf16.mxu0 %v7354_v29 }
 0x470   :  { %3220 = vmatprep.subr.bf16.mxu1 %v7482_v30 }
 0x472   :  { %3180 = vmatpush2.bf16.msra.mxu0 %v7353_v35 }
 0x473   :  { %3221 = vmatpush2.bf16.msra.mxu1 %v7481_v36  ;;  %3181 = vmatprep.subr.bf16.mxu0 %v7346_v22 }
 0x474   :  { %3222 = vmatprep.subr.bf16.mxu1 %v7474_v24 }
 0x476   :  { %3182 = vmatpush2.bf16.msra.mxu0 %v7345_v44 }
 0x477   :  { %3223 = vmatpush2.bf16.msra.mxu1 %v7473_v46  ;;  %3183 = vmatprep.subr.bf16.mxu0 %v7338_v47  ;;  %v1598_v47 = vrot.slane %v9561_v50, %v9482_v9 }
 0x478   :  { %3224 = vmatprep.subr.bf16.mxu1 %v7466_v48  ;;  %v1602_v48 = vrot.slane %v9561_v50, %v9485_v11 }
 0x47a   :  { %3184 = vmatpush2.bf16.msra.mxu0 %v7337_v28 }
 0x47b   :  { %3225 = vmatpush2.bf16.msra.mxu1 %v7465_v27 }
 0x47d   :  { %3186 = vmatmul.mubr.bf16.vlgmr.msra.gmra.mxu0 %v9537_v59  ;;  %v2941_v51 = vpop.f32.mrf.mxu0  ;;  %v2982_v52 = vpop.f32.mrf.mxu1 }
 0x47e   :  { %3227 = vmatmul.mubr.bf16.vlgmr.msra.gmra.mxu1 %v9539_v60  ;;  %v2942_v53 = vadd.f32 %v2941_v51, %v1590_v18 }
 0x47f   :  { %v2943_v54 = vpop.f32.mrf.mxu0  ;;  %v2984_v55 = vpop.f32.mrf.mxu1 }
 0x480   :  { %v9569_v58 = vadd.f32 %v2982_v52, %v2942_v53  ;;  %v2944_v49 = vadd.f32 %v2943_v54, %v1594_v19 }
 0x481   :  { %v2945_v45 = vpop.f32.mrf.mxu0  ;;  %v2986_v61 = vpop.f32.mrf.mxu1 }
 0x482   :  { %v3235_v62 = vrot.slane %v9569_v58, 4  ;;  %v3291_v56 = vmul.f32 %v9569_v58, %v9569_v58  ;;  %v9574_v63 = vadd.f32 %v2984_v55, %v2944_v49 }
 0x483   :  { %v2946_v59 = vpop.f32.mrf.mxu0  ;;  %v2987_v0 = vpop.f32.mrf.mxu1 }
 0x484   :  { %v3236_v4 = vadd.f32 %v3235_v62, %v9569_v58  ;;  %v3299_v60 = vrot.slane %v3291_v56, 4  ;;  %v3241_v8 = vrot.slane %v9574_v63, 4  ;;  %v3292_v57 = vmul.f32 %v9574_v63, %v9574_v63 }
 0x486   :  { %v3237_v10 = vrot.slane %v3236_v4, 2  ;;  %v3300_v12 = vadd.f32 %v3299_v60, %v3291_v56  ;;  %v3242_v13 = vadd.f32 %v3241_v8, %v9574_v63  ;;  %v3305_v14 = vrot.slane %v3292_v57, 4 }
 0x488   :  { %v3238_v15 = vadd.f32 %v3237_v10, %v3236_v4  ;;  %v3301_v16 = vrot.slane %v3300_v12, 2  ;;  %v3243_v17 = vrot.slane %v3242_v13, 2  ;;  %v3306_v1 = vadd.f32 %v3305_v14, %v3292_v57 }
 0x48a   :  { %v3239_v2 = vrot.slane %v3238_v15, 1  ;;  %v3302_v3 = vadd.f32 %v3301_v16, %v3300_v12  ;;  %v3244_v5 = vadd.f32 %v3243_v17, %v3242_v13  ;;  %v3307_v6 = vrot.slane %v3306_v1, 2 }
 0x48c   :  { %v3240_v7 = vadd.f32 %v3239_v2, %v3238_v15  ;;  %v3303_v20 = vrot.slane %v3302_v3, 1  ;;  %v3245_v21 = vrot.slane %v3244_v5, 1  ;;  %v3308_v23 = vadd.f32 %v3307_v6, %v3306_v1  ;;  %v8251_v6 = vld [vmem:[#allocation24 + $0x50c] ss:$28 sps:$4 sm:$0xff]  }
 0x48d   :  { %6539 = vmatprep.subr.bf16.mxu1 %v8251_v6  ;;  %v8290_v6 = vld [vmem:[#allocation24 + $0x4] ss:$28 sps:$4 sm:$0xff]  }
 0x48e   :  { %v9581_v25 = vmul.f32 0.125, %v3240_v7  ;;  %v3304_v29 = vadd.f32 %v3303_v20, %v3302_v3  ;;  %v3246_v30 = vadd.f32 %v3245_v21, %v3244_v5  ;;  %v3309_v31 = vrot.slane %v3308_v23, 1  ;;  %v8248_v5 = vld [vmem:[#allocation24 + $0x18c] ss:$28 sps:$4 sm:$0xff]  }
 0x48f   :  { %6498 = vmatprep.subr.bf16.mxu0 %v8248_v5 }
 0x490   :  { %v3347_v32 = vmul.f32 0.125, %v3304_v29  ;;  %v3355_v33 = vmul.f32 %v9581_v25, %v9581_v25  ;;  %v9585_v34 = vmul.f32 0.125, %v3246_v30  ;;  %v3310_v35 = vadd.f32 %v3309_v31, %v3308_v23  ;;  %v8246_v29 = vld [vmem:[#allocation24 + $0x188] ss:$28 sps:$4 sm:$0xff]  }
 0x491   :  { %v8249_v30 = vld [vmem:[#allocation24 + $0x508] ss:$28 sps:$4 sm:$0xff]   ;;  %6499 = vmatpush1.bf16.msra.mxu0 %v8246_v29  ;;  %v8291_v29 = vld [vmem:[#allocation24 + $0x380] ss:$28 sps:$4 sm:$0xff]  }
 0x492   :  { %v3363_v36 = vsub.f32 %v3347_v32, %v3355_v33  ;;  %v3348_v22 = vmul.f32 0.125, %v3310_v35  ;;  %v3356_v24 = vmul.f32 %v9585_v34, %v9585_v34  ;;  %6540 = vmatpush1.bf16.msra.mxu1 %v8249_v30 }
 0x494   :  { %v3372_v37 = vadd.f32 1e-05, %v3363_v36  ;;  %v3364_v40 = vsub.f32 %v3348_v22, %v3356_v24  ;;  %v8254_v36 = vld [vmem:[#allocation24 + $0x154] ss:$28 sps:$4 sm:$0xff]  }
 0x495   :  { %v8257_v22 = vld [vmem:[#allocation24 + $0x4d4] ss:$28 sps:$4 sm:$0xff]   ;;  %6500 = vmatprep.subr.bf16.mxu0 %v8254_v36  ;;  %v8297_v36 = vld [vmem:[#allocation24 + $0x6c8] ss:$28 sps:$4 sm:$0xff]  }
 0x496   :  { %v3373_v42 = vadd.f32 1e-05, %v3364_v40  ;;  %8898 = vrsqrt.f32 %v3372_v37  ;;  %6541 = vmatprep.subr.bf16.mxu1 %v8257_v22  ;;  %v8303_v22 = vld [vmem:[#allocation24 + $0x690] ss:$28 sps:$4 sm:$0xff]  }
 0x498   :  { %8900 = vrsqrt.f32 %v3373_v42 }
 0x4a3   :  { %v9589_v43 = vpop.eup %8898 }
 0x4a5   :  { %v9591_v44 = vpop.eup %8900 }
 0x4a6   :  { %v3396_v46 = vcombine.low %v9589_v43, %v9591_v44  ;;  %v8302_v43 = vld [vmem:[#allocation24 + $0x314] ss:$28 sps:$4 sm:$0xff]  }
 0x4a7   :  { %v8305_v44 = vld [vmem:[#allocation24 + $0x694] ss:$28 sps:$4 sm:$0xff]  }
 0x4bd   :  { %v3023_v28 = vpop.f32.mrf.mxu0  ;;  %v3064_v27 = vpop.f32.mrf.mxu1 }
 0x4be   :  { %v3024_v18 = vadd.f32 %v3023_v28, %v1598_v47  ;;  %v8252_v47 = vld [vmem:[#allocation24 + $0x150] ss:$28 sps:$4 sm:$0xff]  }
 0x4bf   :  { %v3025_v19 = vpop.f32.mrf.mxu0  ;;  %v3066_v51 = vpop.f32.mrf.mxu1  ;;  %6501 = vmatpush1.bf16.msra.mxu0 %v8252_v47  ;;  %v8309_v47 = vld [vmem:[#allocation24 + $0x658] ss:$28 sps:$4 sm:$0xff]  }
 0x4c0   :  { %v9599_v52 = vadd.f32 %v3064_v27, %v3024_v18  ;;  %v3026_v53 = vadd.f32 %v3025_v19, %v1602_v48  ;;  %v8255_v48 = vld [vmem:[#allocation24 + $0x4d0] ss:$28 sps:$4 sm:$0xff]   ;;  %v8260_v19 = vld [vmem:[#allocation24 + $0x11c] ss:$28 sps:$4 sm:$0xff]  }
 0x4c1   :  { %v3027_v54 = vpop.f32.mrf.mxu0  ;;  %v3068_v55 = vpop.f32.mrf.mxu1  ;;  %6542 = vmatpush1.bf16.msra.mxu1 %v8255_v48  ;;  %6502 = vmatprep.subr.bf16.mxu0 %v8260_v19  ;;  %v9631_v48 = vsub.s32 4, %v9437_v38  ;;  %v8312_v19 = vld [vmem:[#allocation24 + $0x2a0] ss:$28 sps:$4 sm:$0xff]  }
 0x4c2   :  { %v3247_v49 = vrot.slane %v9599_v52, 4  ;;  %v3293_v45 = vmul.f32 %v9599_v52, %v9599_v52  ;;  %v9604_v61 = vadd.f32 %v3066_v51, %v3026_v53  ;;  %v8263_v51 = vld [vmem:[#allocation24 + $0x49c] ss:$28 sps:$4 sm:$0xff]  }
 0x4c3   :  { %v3028_v62 = vpop.f32.mrf.mxu0  ;;  %v3069_v56 = vpop.f32.mrf.mxu1  ;;  %v8258_v55 = vld [vmem:[#allocation24 + $0x118] ss:$28 sps:$4 sm:$0xff]   ;;  %6543 = vmatprep.subr.bf16.mxu1 %v8263_v51  ;;  %v8315_v51 = vld [vmem:[#allocation24 + $0x620] ss:$28 sps:$4 sm:$0xff]  }
 0x4c4   :  { %v3248_v59 = vadd.f32 %v3247_v49, %v9599_v52  ;;  %v3311_v0 = vrot.slane %v3293_v45, 4  ;;  %v3253_v4 = vrot.slane %v9604_v61, 4  ;;  %v3294_v60 = vmul.f32 %v9604_v61, %v9604_v61  ;;  %v8261_v49 = vld [vmem:[#allocation24 + $0x498] ss:$28 sps:$4 sm:$0xff]   ;;  %6503 = vmatpush1.bf16.msra.mxu0 %v8258_v55  ;;  %v8266_v62 = vld [vmem:[#allocation24 + $0xe4] ss:$28 sps:$4 sm:$0xff]  }
 0x4c5   :  { %6544 = vmatpush1.bf16.msra.mxu1 %v8261_v49  ;;  %v8269_v56 = vld [vmem:[#allocation24 + $0x464] ss:$28 sps:$4 sm:$0xff]   ;;  %6504 = vmatprep.subr.bf16.mxu0 %v8266_v62  ;;  %v8323_v55 = vld [vmem:[#allocation24 + $0x5ec] ss:$28 sps:$4 sm:$0xff]  }
 0x4c6   :  { %v3249_v8 = vrot.slane %v3248_v59, 2  ;;  %v3312_v57 = vadd.f32 %v3311_v0, %v3293_v45  ;;  %v3254_v10 = vadd.f32 %v3253_v4, %v9604_v61  ;;  %v3317_v12 = vrot.slane %v3294_v60, 4  ;;  %v8267_v0 = vld [vmem:[#allocation24 + $0x460] ss:$28 sps:$4 sm:$0xff]   ;;  %6545 = vmatprep.subr.bf16.mxu1 %v8269_v56  ;;  %v8272_v4 = vld [vmem:[#allocation24 + $0xac] ss:$28 sps:$4 sm:$0xff]  }
 0x4c7   :  { %v8321_v62 = vld [vmem:[#allocation24 + $0x5e8] ss:$28 sps:$4 sm:$0xff]  }
 0x4c8   :  { %v3250_v13 = vadd.f32 %v3249_v8, %v3248_v59  ;;  %v3313_v14 = vrot.slane %v3312_v57, 2  ;;  %v3255_v15 = vrot.slane %v3254_v10, 2  ;;  %v3318_v16 = vadd.f32 %v3317_v12, %v3294_v60  ;;  %v8264_v59 = vld [vmem:[#allocation24 + $0xe0] ss:$28 sps:$4 sm:$0xff]   ;;  %v8275_v60 = vld [vmem:[#allocation24 + $0x42c] ss:$28 sps:$4 sm:$0xff]  }
 0x4c9   :  { %6505 = vmatpush1.bf16.msra.mxu0 %v8264_v59  ;;  %6546 = vmatpush1.bf16.msra.mxu1 %v8267_v0  ;;  %v8270_v8 = vld [vmem:[#allocation24 + $0xa8] ss:$28 sps:$4 sm:$0xff]   ;;  %v8281_v12 = vld [vmem:[#allocation24 + $0x3f4] ss:$28 sps:$4 sm:$0xff]  }
 0x4ca   :  { %v3251_v17 = vrot.slane %v3250_v13, 1  ;;  %v3314_v1 = vadd.f32 %v3313_v14, %v3312_v57  ;;  %v3256_v2 = vadd.f32 %v3255_v15, %v3254_v10  ;;  %v3319_v3 = vrot.slane %v3318_v16, 2  ;;  %v8273_v57 = vld [vmem:[#allocation24 + $0x428] ss:$28 sps:$4 sm:$0xff]   ;;  %6506 = vmatprep.subr.bf16.mxu0 %v8272_v4  ;;  %6547 = vmatprep.subr.bf16.mxu1 %v8275_v60  ;;  %v8278_v10 = vld [vmem:[#allocation24 + $0x74] ss:$28 sps:$4 sm:$0xff]  }
 0x4cb   :  { %v8279_v14 = vld [vmem:[#allocation24 + $0x3f0] ss:$28 sps:$4 sm:$0xff]   ;;  %v8284_v15 = vld [vmem:[#allocation24 + $0x3c] ss:$28 sps:$4 sm:$0xff]  }
 0x4cc   :  { %v3252_v7 = vadd.f32 %v3251_v17, %v3250_v13  ;;  %v3315_v20 = vrot.slane %v3314_v1, 1  ;;  %v3257_v21 = vrot.slane %v3256_v2, 1  ;;  %v3320_v23 = vadd.f32 %v3319_v3, %v3318_v16  ;;  %v8276_v13 = vld [vmem:[#allocation24 + $0x70] ss:$28 sps:$4 sm:$0xff]   ;;  %v8287_v16 = vld [vmem:[#allocation24 + $0x3bc] ss:$28 sps:$4 sm:$0xff]  }
 0x4cd   :  { %6507 = vmatpush1.bf16.msra.mxu0 %v8270_v8  ;;  %6548 = vmatpush1.bf16.msra.mxu1 %v8273_v57  ;;  %v8326_v60 = vld [vmem:[#allocation24 + $0x234] ss:$28 sps:$4 sm:$0xff]  }
 0x4ce   :  { %v9611_v31 = vmul.f32 0.125, %v3252_v7  ;;  %v3316_v32 = vadd.f32 %v3315_v20, %v3314_v1  ;;  %v3258_v33 = vadd.f32 %v3257_v21, %v3256_v2  ;;  %v3321_v35 = vrot.slane %v3320_v23, 1  ;;  %6508 = vmatprep.subr.bf16.mxu0 %v8278_v10  ;;  %6549 = vmatprep.subr.bf16.mxu1 %v8281_v12  ;;  %v8282_v1 = vld [vmem:[#allocation24 + $0x38] ss:$28 sps:$4 sm:$0xff]   ;;  %v8293_v7 = vld [vmem:[#allocation24 + $0x384] ss:$28 sps:$4 sm:$0xff]  }
 0x4cf   :  { %v8285_v2 = vld [vmem:[#allocation24 + $0x3b8] ss:$28 sps:$4 sm:$0xff]   ;;  %v9623_v20 = vrot.slane %v3396_v46, %v9454_v26  ;;  %v8300_v46 = vld [vmem:[#allocation24 + $0x310] ss:$28 sps:$4 sm:$0xff]  }
 0x4d0   :  { %v3349_v24 = vmul.f32 0.125, %v3316_v32  ;;  %v3357_v37 = vmul.f32 %v9611_v31, %v9611_v31  ;;  %v9615_v40 = vmul.f32 0.125, %v3258_v33  ;;  %v3322_v42 = vadd.f32 %v3321_v35, %v3320_v23  ;;  %v8288_v23 = vld [vmem:[#allocation24] ss:$28 sps:$4 sm:$0xff]   ;;  %v8296_v32 = vld [vmem:[#allocation24 + $0x34c] ss:$28 sps:$4 sm:$0xff]  }
 0x4d1   :  { %6509 = vmatpush1.bf16.msra.mxu0 %v8276_v13  ;;  %6550 = vmatpush1.bf16.msra.mxu1 %v8279_v14  ;;  %v8299_v33 = vld [vmem:[#allocation24 + $0x6cc] ss:$28 sps:$4 sm:$0xff]   ;;  %v8329_v8 = vld [vmem:[#allocation24 + $0x5b4] ss:$28 sps:$4 sm:$0xff]  }
 0x4d2   :  { %v3365_v28 = vsub.f32 %v3349_v24, %v3357_v37  ;;  %v3350_v27 = vmul.f32 0.125, %v3322_v42  ;;  %v3358_v18 = vmul.f32 %v9615_v40, %v9615_v40  ;;  %6510 = vmatprep.subr.bf16.mxu0 %v8284_v15  ;;  %6551 = vmatprep.subr.bf16.mxu1 %v8287_v16  ;;  %v8294_v35 = vld [vmem:[#allocation24 + $0x348] ss:$28 sps:$4 sm:$0xff]   ;;  %v8308_v24 = vld [vmem:[#allocation24 + $0x2dc] ss:$28 sps:$4 sm:$0xff]  }
 0x4d3   :  { %v8311_v37 = vld [vmem:[#allocation24 + $0x65c] ss:$28 sps:$4 sm:$0xff]   ;;  %v8324_v13 = vld [vmem:[#allocation24 + $0x230] ss:$28 sps:$4 sm:$0xff]  }
 0x4d4   :  { %v3374_v53 = vadd.f32 1e-05, %v3365_v28  ;;  %v3366_v54 = vsub.f32 %v3350_v27, %v3358_v18  ;;  %v8306_v42 = vld [vmem:[#allocation24 + $0x2d8] ss:$28 sps:$4 sm:$0xff]   ;;  %v8314_v28 = vld [vmem:[#allocation24 + $0x2a4] ss:$28 sps:$4 sm:$0xff]  }
 0x4d5   :  { %6511 = vmatpush1.bf16.msra.mxu0 %v8282_v1  ;;  %6552 = vmatpush1.bf16.msra.mxu1 %v8285_v2  ;;  %v8317_v27 = vld [vmem:[#allocation24 + $0x624] ss:$28 sps:$4 sm:$0xff]   ;;  %v9634_v18 = vsub.s32 5, %v9437_v38  ;;  %v8327_v14 = vld [vmem:[#allocation24 + $0x5b0] ss:$28 sps:$4 sm:$0xff]  }
 0x4d6   :  { %v3375_v45 = vadd.f32 1e-05, %v3366_v54  ;;  %8902 = vrsqrt.f32 %v3374_v53  ;;  %6512 = vmatprep.subr.bf16.mxu0 %v8290_v6  ;;  %6553 = vmatprep.subr.bf16.mxu1 %v8293_v7  ;;  %v1606_v53 = vrot.slane %v9561_v50, %v9631_v48  ;;  %v8320_v54 = vld [vmem:[#allocation24 + $0x26c] ss:$28 sps:$4 sm:$0xff]   ;;  %v8332_v2 = vld [vmem:[#allocation24 + $0x1fc] ss:$28 sps:$4 sm:$0xff]  }
 0x4d7   :  { %v1610_v49 = vrot.slane %v9561_v50, %v9634_v18  ;;  %v8330_v6 = vld [vmem:[#allocation24 + $0x1f8] ss:$28 sps:$4 sm:$0xff]  }
 0x4d8   :  { %8904 = vrsqrt.f32 %v3375_v45  ;;  %v8318_v45 = vld [vmem:[#allocation24 + $0x268] ss:$28 sps:$4 sm:$0xff]   ;;  %v8333_v7 = vld [vmem:[#allocation24 + $0x578] ss:$28 sps:$4 sm:$0xff]  }
 0x4d9   :  { %6513 = vmatpush1.bf16.msra.mxu0 %v8288_v23  ;;  %6554 = vmatpush1.bf16.msra.mxu1 %v8291_v29  ;;  %v8338_v23 = vld [vmem:[#allocation24 + $0x1c4] ss:$28 sps:$4 sm:$0xff]  }
 0x4da   :  { %6514 = vmatprep.subr.bf16.mxu0 %v8296_v32  ;;  %6555 = vmatprep.subr.bf16.mxu1 %v8299_v33  ;;  %v8336_v29 = vld [vmem:[#allocation24 + $0x1c0] ss:$28 sps:$4 sm:$0xff]  }
 0x4db   :  { %v8339_v32 = vld [vmem:[#allocation24 + $0x540] ss:$28 sps:$4 sm:$0xff]  }
 0x4dc   :  { %v8341_v33 = vld [vmem:[#allocation24 + $0x544] ss:$28 sps:$4 sm:$0xff]  }
 0x4dd   :  { %6515 = vmatpush2.bf16.msra.mxu0 %v8294_v35  ;;  %6556 = vmatpush2.bf16.msra.mxu1 %v8297_v36  ;;  %v8344_v35 = vld [vmem:[#allocation24 + $0x88c] ss:$28 sps:$4 sm:$0xff]  }
 0x4de   :  { %6516 = vmatprep.subr.bf16.mxu0 %v8302_v43  ;;  %6557 = vmatprep.subr.bf16.mxu1 %v8305_v44  ;;  %v8347_v36 = vld [vmem:[#allocation24 + $0xc0c] ss:$28 sps:$4 sm:$0xff]  }
 0x4e1   :  { %6517 = vmatpush2.bf16.msra.mxu0 %v8300_v46  ;;  %6558 = vmatpush2.bf16.msra.mxu1 %v8303_v22 }
 0x4e2   :  { %6518 = vmatprep.subr.bf16.mxu0 %v8308_v24  ;;  %6559 = vmatprep.subr.bf16.mxu1 %v8311_v37 }
 0x4e3   :  { %v8903_v17 = vpop.eup %8902 }
 0x4e5   :  { %v8905_v3 = vpop.eup %8904  ;;  %6519 = vmatpush2.bf16.msra.mxu0 %v8306_v42  ;;  %6560 = vmatpush2.bf16.msra.mxu1 %v8309_v47 }
 0x4e6   :  { %v3397_v5 = vcombine.low %v8903_v17, %v8905_v3  ;;  %6520 = vmatprep.subr.bf16.mxu0 %v8314_v28  ;;  %6561 = vmatprep.subr.bf16.mxu1 %v8317_v27  ;;  %v8335_v3 = vld [vmem:[#allocation24 + $0x57c] ss:$28 sps:$4 sm:$0xff]  }
 0x4e8   :  { %v9626_v21 = vrot.slane %v3397_v5, %v9454_v26 }
 0x4e9   :  { %6521 = vmatpush2.bf16.msra.mxu0 %v8312_v19  ;;  %6562 = vmatpush2.bf16.msra.mxu1 %v8315_v51 }
 0x4ea   :  { %v3428_v30 = vcombine.low %v9623_v20, %v9626_v21  ;;  %6522 = vmatprep.subr.bf16.mxu0 %v8320_v54  ;;  %6563 = vmatprep.subr.bf16.mxu1 %v8323_v55 }
 0x4ed   :  { %6523 = vmatpush2.bf16.msra.mxu0 %v8318_v45  ;;  %6564 = vmatpush2.bf16.msra.mxu1 %v8321_v62 }
 0x4ee   :  { %6524 = vmatprep.subr.bf16.mxu0 %v8326_v60  ;;  %6565 = vmatprep.subr.bf16.mxu1 %v8329_v8 }
 0x4f1   :  { %6525 = vmatpush2.bf16.msra.mxu0 %v8324_v13  ;;  %6566 = vmatpush2.bf16.msra.mxu1 %v8327_v14 }
 0x4f2   :  { %6526 = vmatprep.subr.bf16.mxu0 %v8332_v2  ;;  %6567 = vmatprep.subr.bf16.mxu1 %v8335_v3 }
 0x4f5   :  { %6527 = vmatpush2.bf16.msra.mxu0 %v8330_v6  ;;  %6568 = vmatpush2.bf16.msra.mxu1 %v8333_v7 }
 0x4f6   :  { %6528 = vmatprep.subr.bf16.mxu0 %v8338_v23  ;;  %6569 = vmatprep.subr.bf16.mxu1 %v8341_v33 }
 0x4f9   :  { %6529 = vmatpush2.bf16.msra.mxu0 %v8336_v29  ;;  %6570 = vmatpush2.bf16.msra.mxu1 %v8339_v32 }
 0x4fa   :  { %6580 = vmatprep.subr.bf16.mxu0 %v8344_v35  ;;  %6621 = vmatprep.subr.bf16.mxu1 %v8347_v36 }
 0x4fd   :  { %v3105_v56 = vpop.f32.mrf.mxu0 }
 0x4fe   :  { %v3106_v59 = vadd.f32 %v3105_v56, %v1606_v53  ;;  %v3146_v0 = vpop.f32.mrf.mxu1  ;;  %v9653_v53 = vsub.s32 6, %v9437_v38 }
 0x4ff   :  { %v3107_v4 = vpop.f32.mrf.mxu0 }
 0x500   :  { %v9640_v57 = vadd.f32 %v3146_v0, %v3106_v59  ;;  %v3108_v10 = vadd.f32 %v3107_v4, %v1610_v49  ;;  %v3148_v12 = vpop.f32.mrf.mxu1  ;;  %v9656_v49 = vsub.s32 7, %v9437_v38  ;;  %v1614_v56 = vrot.slane %v9561_v50, %v9653_v53 }
 0x501   :  { %v3109_v15 = vpop.f32.mrf.mxu0 }
 0x502   :  { %v9642_v16 = vadd.f32 %v3148_v12, %v3108_v10  ;;  %v3150_v17 = vpop.f32.mrf.mxu1  ;;  %v3259_v46 = vrot.slane %v9640_v57, 4  ;;  %v3295_v22 = vmul.f32 %v9640_v57, %v9640_v57  ;;  %v1618_v4 = vrot.slane %v9561_v50, %v9656_v49 }
 0x503   :  { %v3110_v1 = vpop.f32.mrf.mxu0 }
 0x504   :  { %v3151_v5 = vpop.f32.mrf.mxu1  ;;  %v3265_v43 = vrot.slane %v9642_v16, 4  ;;  %v3296_v44 = vmul.f32 %v9642_v16, %v9642_v16  ;;  %v3260_v42 = vadd.f32 %v3259_v46, %v9640_v57  ;;  %v3323_v47 = vrot.slane %v3295_v22, 4 }
 0x506   :  { %v3266_v24 = vadd.f32 %v3265_v43, %v9642_v16  ;;  %v3329_v37 = vrot.slane %v3296_v44, 4  ;;  %v3261_v19 = vrot.slane %v3260_v42, 2  ;;  %v3324_v51 = vadd.f32 %v3323_v47, %v3295_v22 }
 0x508   :  { %v3267_v28 = vrot.slane %v3266_v24, 2  ;;  %v3330_v27 = vadd.f32 %v3329_v37, %v3296_v44  ;;  %v3262_v45 = vadd.f32 %v3261_v19, %v3260_v42  ;;  %v3325_v62 = vrot.slane %v3324_v51, 2 }
 0x50a   :  { %v3268_v54 = vadd.f32 %v3267_v28, %v3266_v24  ;;  %v3331_v55 = vrot.slane %v3330_v27, 2  ;;  %v3263_v60 = vrot.slane %v3262_v45, 1  ;;  %v3326_v8 = vadd.f32 %v3325_v62, %v3324_v51 }
 0x50c   :  { %v3269_v59 = vrot.slane %v3268_v54, 1  ;;  %v3332_v0 = vadd.f32 %v3331_v55, %v3330_v27  ;;  %v3264_v3 = vadd.f32 %v3263_v60, %v3262_v45  ;;  %v3327_v5 = vrot.slane %v3326_v8, 1 }
 0x50e   :  { %v3270_v14 = vadd.f32 %v3269_v59, %v3268_v54  ;;  %v3333_v15 = vrot.slane %v3332_v0, 1  ;;  %v9675_v24 = vmul.f32 0.125, %v3264_v3  ;;  %v3328_v37 = vadd.f32 %v3327_v5, %v3326_v8 }
 0x510   :  { %v9669_v32 = vmul.f32 0.125, %v3270_v14  ;;  %v3334_v33 = vadd.f32 %v3333_v15, %v3332_v0  ;;  %v3359_v59 = vmul.f32 %v9675_v24, %v9675_v24 }
 0x512   :  { %v3352_v19 = vmul.f32 0.125, %v3334_v33  ;;  %v3360_v51 = vmul.f32 %v9669_v32, %v9669_v32 }
 0x53d   :  { %v3187_v10 = vpop.f32.mrf.mxu0 }
 0x53e   :  { %v3188_v12 = vadd.f32 %v3187_v10, %v1614_v56  ;;  %v3228_v13 = vpop.f32.mrf.mxu1  ;;  %v3351_v56 = vmul.f32 0.125, %v3328_v37  ;;  %v3368_v10 = vsub.f32 %v3352_v19, %v3360_v51 }
 0x53f   :  { %v3189_v17 = vpop.f32.mrf.mxu0 }
 0x540   :  { %v9662_v38 = vadd.f32 %v3228_v13, %v3188_v12  ;;  %v3190_v1 = vadd.f32 %v3189_v17, %v1618_v4  ;;  %v3230_v2 = vpop.f32.mrf.mxu1  ;;  %v3367_v17 = vsub.f32 %v3351_v56, %v3359_v59  ;;  %v3371_v59 = vld [vmem:[#allocation21] sm:$0xff] }
 0x541   :  { %v3191_v6 = vpop.f32.mrf.mxu0 }
 0x542   :  { %v3271_v7 = vrot.slane %v9662_v38, 4  ;;  %v3297_v50 = vmul.f32 %v9662_v38, %v9662_v38  ;;  %v9667_v23 = vadd.f32 %v3230_v2, %v3190_v1  ;;  %v3232_v29 = vpop.f32.mrf.mxu1  ;;  %v3377_v6 = vadd.f32 1e-05, %v3368_v10 }
 0x543   :  { %v3192_v35 = vpop.f32.mrf.mxu0 }
 0x544   :  { %v3272_v36 = vadd.f32 %v3271_v7, %v9662_v38  ;;  %v3335_v43 = vrot.slane %v3297_v50, 4  ;;  %v3277_v44 = vrot.slane %v9667_v23, 4  ;;  %v3298_v46 = vmul.f32 %v9667_v23, %v9667_v23  ;;  %v3233_v22 = vpop.f32.mrf.mxu1 }
 0x545   :  { %v3376_v35 = vadd.f32 1e-05, %v3367_v17  ;;  %8906 = vrsqrt.f32 %v3377_v6 }
 0x546   :  { %v3273_v42 = vrot.slane %v3272_v36, 2  ;;  %v3336_v47 = vadd.f32 %v3335_v43, %v3297_v50  ;;  %v3278_v28 = vadd.f32 %v3277_v44, %v9667_v23  ;;  %v3341_v27 = vrot.slane %v3298_v46, 4 }
 0x547   :  { %8908 = vrsqrt.f32 %v3376_v35 }
 0x548   :  { %v3274_v54 = vadd.f32 %v3273_v42, %v3272_v36  ;;  %v3337_v55 = vrot.slane %v3336_v47, 2  ;;  %v3279_v45 = vrot.slane %v3278_v28, 2  ;;  %v3342_v62 = vadd.f32 %v3341_v27, %v3298_v46 }
 0x54a   :  { %v3275_v0 = vrot.slane %v3274_v54, 1  ;;  %v3338_v4 = vadd.f32 %v3337_v55, %v3336_v47  ;;  %v3280_v60 = vadd.f32 %v3279_v45, %v3278_v28  ;;  %v3343_v8 = vrot.slane %v3342_v62, 2 }
 0x54c   :  { %v3276_v12 = vadd.f32 %v3275_v0, %v3274_v54  ;;  %v3339_v13 = vrot.slane %v3338_v4, 1  ;;  %v3281_v14 = vrot.slane %v3280_v60, 1  ;;  %v3344_v15 = vadd.f32 %v3343_v8, %v3342_v62 }
 0x54d   :  { %v3436_v62 = vrot.slane %v3428_v30, %v9454_v26 }
 0x54e   :  { %v3289_v1 = vmul.f32 0.125, %v3276_v12  ;;  %v3340_v2 = vadd.f32 %v3339_v13, %v3338_v4  ;;  %v3282_v3 = vadd.f32 %v3281_v14, %v3280_v60  ;;  %v3345_v5 = vrot.slane %v3344_v15, 1 }
 0x550   :  { %v3353_v7 = vmul.f32 0.125, %v3340_v2  ;;  %v3361_v50 = vmul.f32 %v3289_v1, %v3289_v1  ;;  %v3290_v29 = vmul.f32 0.125, %v3282_v3  ;;  %v3346_v33 = vadd.f32 %v3345_v5, %v3344_v15 }
 0x552   :  { %v3369_v36 = vsub.f32 %v3353_v7, %v3361_v50  ;;  %v3354_v43 = vmul.f32 0.125, %v3346_v33  ;;  %v3362_v44 = vmul.f32 %v3290_v29, %v3290_v29  ;;  %v8907_v42 = vpop.eup %8906 }
 0x554   :  { %v3378_v46 = vadd.f32 1e-05, %v3369_v36  ;;  %v3370_v22 = vsub.f32 %v3354_v43, %v3362_v44  ;;  %v8909_v47 = vpop.eup %8908 }
 0x555   :  { %v3398_v27 = vcombine.low %v8909_v47, %v8907_v42 }
 0x556   :  { %v3379_v37 = vadd.f32 1e-05, %v3370_v22  ;;  %8910 = vrsqrt.f32 %v3378_v46  ;;  %v3447_v22 = vld [vmem:[#allocation22] sm:$0xff] }
 0x557   :  { %v3420_v54 = vrot.slane %v3398_v27, %v9454_v26 }
 0x558   :  { %8912 = vrsqrt.f32 %v3379_v37 }
 0x563   :  { %v8911_v28 = vpop.eup %8910 }
 0x565   :  { %v8913_v19 = vpop.eup %8912 }
 0x566   :  { %v3399_v51 = vcombine.low %v8911_v28, %v8913_v19 }
 0x568   :  { %v3427_v55 = vrot.slane %v3399_v51, %v9454_v26 }
 0x56a   :  { %v3429_v45 = vcombine.low %v3420_v54, %v3427_v55 }
 0x56c   :  { %v3443_v56 = vrot.slane %v3429_v45, %v9454_v26 }
 0x56e   :  { %v3444_v0 = vcombine.low %v3436_v62, %v3443_v56 }
 0x570   :  { %v3446_v4 = vmul.f32 %v3444_v0, %v3371_v59 }
 0x572   :  { %v3452_v60 = vrot.slane %v3446_v4, %v9440_v39  ;;  %v3456_v8 = vrot.slane %v3446_v4, %v9443_v41  ;;  %v3460_v10 = vrot.slane %v3446_v4, %v9482_v9  ;;  %v3464_v12 = vrot.slane %v3446_v4, %v9485_v11 }
 0x573   :  { %v3468_v13 = vrot.slane %v3446_v4, %v9631_v48  ;;  %v3472_v14 = vrot.slane %v3446_v4, %v9634_v18  ;;  %v3476_v20 = vrot.slane %v3446_v4, %v9653_v53  ;;  %v3480_v21 = vrot.slane %v3446_v4, %v9656_v49 }
 0x574   :  { %v3489_v30 = vmul.f32 %v3452_v60, %v9581_v25  ;;  %v3490_v15 = vmul.f32 %v3456_v8, %v9585_v34  ;;  %v3491_v17 = vmul.f32 %v3460_v10, %v9611_v31  ;;  %v3492_v2 = vmul.f32 %v3464_v12, %v9615_v40 }
 0x575   :  { %v3493_v3 = vmul.f32 %v3468_v13, %v9675_v24  ;;  %v3494_v5 = vmul.f32 %v3472_v14, %v9669_v32  ;;  %v3495_v6 = vmul.f32 %v3476_v20, %v3289_v1  ;;  %v3496_v7 = vmul.f32 %v3480_v21, %v3290_v29 }
 0x576   :  { %v3505_v50 = vcombine.low %v3489_v30, %v3490_v15  ;;  %v3506_v33 = vcombine.low %v3491_v17, %v3492_v2  ;;  %v3563_v35 = vmul.f32 %v3480_v21, %v9667_v23  ;;  %v3557_v36 = vmul.f32 %v3456_v8, %v9574_v63  ;;  %v8342_v21 = vld [vmem:[#allocation24 + $0x888] ss:$28 sps:$4 sm:$0xff]  }
 0x577   :  { %v3507_v43 = vcombine.low %v3493_v3, %v3494_v5  ;;  %v3508_v25 = vcombine.low %v3495_v6, %v3496_v7  ;;  %v3559_v34 = vmul.f32 %v3464_v12, %v9604_v61  ;;  %v3556_v31 = vmul.f32 %v3452_v60, %v9569_v58  ;;  %v8345_v30 = vld [vmem:[#allocation24 + $0xc08] ss:$28 sps:$4 sm:$0xff]   ;;  %v8350_v6 = vld [vmem:[#allocation24 + $0x854] ss:$28 sps:$4 sm:$0xff]  }
 0x578   :  { %v3515_v40 = vrot.slane %v3505_v50, %v9454_v26  ;;  %v3522_v24 = vrot.slane %v3506_v33, %v9454_v26  ;;  %v3558_v32 = vmul.f32 %v3460_v10, %v9599_v52  ;;  %v3562_v23 = vmul.f32 %v3476_v20, %v9662_v38  ;;  %v8353_v50 = vld [vmem:[#allocation24 + $0xbd4] ss:$28 sps:$4 sm:$0xff]  }
 0x579   :  { %v3529_v1 = vrot.slane %v3507_v43, %v9454_v26  ;;  %v3536_v29 = vrot.slane %v3508_v25, %v9454_v26  ;;  %v3561_v42 = vmul.f32 %v3472_v14, %v9642_v16  ;;  %v3560_v47 = vmul.f32 %v3468_v13, %v9640_v57  ;;  %v8351_v43 = vld [vmem:[#allocation24 + $0xbd0] ss:$28 sps:$4 sm:$0xff]  }
 0x57a   :  { %v3537_v44 = vcombine.low %v3515_v40, %v3522_v24  ;;  %v8354_v40 = vld [vmem:[#allocation24 + $0x818] ss:$28 sps:$4 sm:$0xff]  }
 0x57b   :  { %v3538_v63 = vcombine.low %v3529_v1, %v3536_v29  ;;  %v8357_v24 = vld [vmem:[#allocation24 + $0xb98] ss:$28 sps:$4 sm:$0xff]   ;;  %v8365_v1 = vld [vmem:[#allocation24 + $0xb64] ss:$28 sps:$4 sm:$0xff]  }
 0x57c   :  { %v3545_v46 = vrot.slane %v3537_v44, %v9454_v26  ;;  %v8360_v29 = vld [vmem:[#allocation24 + $0x7e0] ss:$28 sps:$4 sm:$0xff]   ;;  %v8368_v44 = vld [vmem:[#allocation24 + $0x7ac] ss:$28 sps:$4 sm:$0xff]  }
 0x57d   :  { %v3552_v61 = vrot.slane %v3538_v63, %v9454_v26  ;;  %v8371_v63 = vld [vmem:[#allocation24 + $0xb2c] ss:$28 sps:$4 sm:$0xff]  }
 0x57f   :  { %v3553_v58 = vcombine.low %v3545_v46, %v3552_v61  ;;  %v8366_v46 = vld [vmem:[#allocation24 + $0x7a8] ss:$28 sps:$4 sm:$0xff]  }
 0x580   :  { %v8369_v61 = vld [vmem:[#allocation24 + $0xb28] ss:$28 sps:$4 sm:$0xff]  }
 0x581   :  { %v3555_v37 = vsub.f32 %v3447_v22, %v3553_v58  ;;  %v8374_v22 = vld [vmem:[#allocation24 + $0x774] ss:$28 sps:$4 sm:$0xff]  }
 0x582   :  { %v8377_v58 = vld [vmem:[#allocation24 + $0xaf4] ss:$28 sps:$4 sm:$0xff]  }
 0x583   :  { %v3596_v52 = vrot.slane %v3555_v37, %v9656_v49  ;;  %v3572_v28 = vrot.slane %v3555_v37, %v9443_v41  ;;  %v3580_v27 = vrot.slane %v3555_v37, %v9485_v11  ;;  %v3568_v38 = vrot.slane %v3555_v37, %v9440_v39 }
 0x584   :  { %v3576_v19 = vrot.slane %v3555_v37, %v9482_v9  ;;  %v3588_v51 = vrot.slane %v3555_v37, %v9634_v18  ;;  %v3584_v26 = vrot.slane %v3555_v37, %v9631_v48  ;;  %v3592_v54 = vrot.slane %v3555_v37, %v9653_v53  ;;  %v8372_v37 = vld [vmem:[#allocation24 + $0x770] ss:$28 sps:$4 sm:$0xff]  }
 0x585   :  { %v3612_v55 = vadd.f32 %v3596_v52, %v3563_v35  ;;  %v3606_v16 = vadd.f32 %v3572_v28, %v3557_v36  ;;  %v3608_v45 = vadd.f32 %v3580_v27, %v3559_v34  ;;  %v3605_v57 = vadd.f32 %v3568_v38, %v3556_v31  ;;  %v8348_v36 = vld [vmem:[#allocation24 + $0x850] ss:$28 sps:$4 sm:$0xff]   ;;  %v8356_v34 = vld [vmem:[#allocation24 + $0x81c] ss:$28 sps:$4 sm:$0xff]   ;;  %v8386_v38 = vld [vmem:[#allocation24 + $0x704] ss:$28 sps:$4 sm:$0xff]  }
 0x586   :  { %v3607_v62 = vadd.f32 %v3576_v19, %v3558_v32  ;;  %v3610_v49 = vadd.f32 %v3588_v51, %v3561_v42  ;;  %v9725_v56 = vadd.f32 %v3584_v26, %v3560_v47  ;;  %v9727_v59 = vadd.f32 %v3592_v54, %v3562_v23  ;;  %v8359_v31 = vld [vmem:[#allocation24 + $0xb9c] ss:$28 sps:$4 sm:$0xff]   ;;  %v8362_v32 = vld [vmem:[#allocation24 + $0x7e4] ss:$28 sps:$4 sm:$0xff]   ;;  %v8375_v42 = vld [vmem:[#allocation24 + $0xaf0] ss:$28 sps:$4 sm:$0xff]  }
 0x587   :  { %vm3614_vm8 = vcmp.ge.f32.partialorder %v3606_v16, 0.0  ;;  %v3622_v0 = vmul.f32 0.2, %v3606_v16  ;;  %vm3616_vm9 = vcmp.ge.f32.partialorder %v3608_v45, 0.0  ;;  %v3624_v4 = vmul.f32 0.2, %v3608_v45 }
 0x588   :  { %vm3613_vm10 = vcmp.ge.f32.partialorder %v3605_v57, 0.0  ;;  %v3621_v60 = vmul.f32 0.2, %v3605_v57  ;;  %vm3615_vm11 = vcmp.ge.f32.partialorder %v3607_v62, 0.0  ;;  %v3623_v8 = vmul.f32 0.2, %v3607_v62 }
 0x589   :  { %v3630_v10 = vsel %vm3614_vm8, %v3606_v16, %v3622_v0  ;;  %v3632_v12 = vsel %vm3616_vm9, %v3608_v45, %v3624_v4  ;;  %vm3618_vm12 = vcmp.ge.f32.partialorder %v3610_v49, 0.0  ;;  %v3626_v13 = vmul.f32 0.2, %v3610_v49  ;;  %v8363_v23 = vld [vmem:[#allocation24 + $0xb60] ss:$28 sps:$4 sm:$0xff]  }
 0x58a   :  { %v9729_v14 = vpack.c.bf16 %v3630_v10, %v3630_v10  ;;  %v9731_v20 = vpack.c.bf16 %v3632_v12, %v3632_v12  ;;  %v3629_v15 = vsel %vm3613_vm10, %v3605_v57, %v3621_v60  ;;  %v3631_v17 = vsel %vm3615_vm11, %v3607_v62, %v3623_v8  ;;  %v8380_v47 = vld [vmem:[#allocation24 + $0x73c] ss:$28 sps:$4 sm:$0xff]   ;;  %v8389_v19 = vld [vmem:[#allocation24 + $0xa84] ss:$28 sps:$4 sm:$0xff]   ;;  %v8392_v54 = vld [vmem:[#allocation24 + $0xa4c] ss:$28 sps:$4 sm:$0xff]  }
 0x58b   :  { %v9733_v2 = vpack.c.bf16 %v3629_v15, %v3629_v15  ;;  %v9735_v3 = vpack.c.bf16 %v3631_v17, %v3631_v17  ;;  %v3634_v5 = vsel %vm3618_vm12, %v3610_v49, %v3626_v13  ;;  %vm3620_vm13 = vcmp.ge.f32.partialorder %v3612_v55, 0.0  ;;  %v8383_v52 = vld [vmem:[#allocation24 + $0xabc] ss:$28 sps:$4 sm:$0xff]   ;;  %v8390_v16 = vld [vmem:[#allocation24 + $0xa48] ss:$28 sps:$4 sm:$0xff]  }
 0x58c   :  { %6530 = vmatprep.mubr.bf16.mxu0 %v9729_v14  ;;  %6571 = vmatprep.mubr.bf16.mxu1 %v9731_v20  ;;  %v3628_v7 = vmul.f32 0.2, %v3612_v55  ;;  %v9741_v33 = vpack.c.bf16 %v3634_v5, %v3634_v5  ;;  %v8378_v28 = vld [vmem:[#allocation24 + $0x738] ss:$28 sps:$4 sm:$0xff]   ;;  %v8384_v51 = vld [vmem:[#allocation24 + $0x700] ss:$28 sps:$4 sm:$0xff]  }
 0x58d   :  { %6531 = vmatmul.mubr.bf16.vlgmr.msra.gmra.mxu0 %v9733_v2  ;;  %6572 = vmatmul.mubr.bf16.vlgmr.msra.gmra.mxu1 %v9735_v3  ;;  %v8381_v27 = vld [vmem:[#allocation24 + $0xab8] ss:$28 sps:$4 sm:$0xff]   ;;  %v8387_v26 = vld [vmem:[#allocation24 + $0xa80] ss:$28 sps:$4 sm:$0xff]   ;;  %v8393_v45 = vld [vmem:[#allocation24 + $0xdc8] ss:$28 sps:$4 sm:$0xff]  }
 0x58e   :  { %6581 = vmatpush1.bf16.msra.mxu0 %v8342_v21  ;;  %6622 = vmatpush1.bf16.msra.mxu1 %v8345_v30  ;;  %v3636_v35 = vsel %vm3620_vm13, %v3612_v55, %v3628_v7  ;;  %v8395_v55 = vld [vmem:[#allocation24 + $0xdcc] ss:$28 sps:$4 sm:$0xff]   ;;  %v8398_v57 = vld [vmem:[#allocation24 + $0xa14] ss:$28 sps:$4 sm:$0xff]   ;;  %v8404_v4 = vld [vmem:[#allocation24 + $0x9dc] ss:$28 sps:$4 sm:$0xff]  }
 0x58f   :  { %6612 = vmatprep.mubr.bf16.mxu0 %v9741_v33  ;;  %v9744_v25 = vpack.c.bf16 %v3636_v35, %v3636_v35  ;;  %6582 = vmatprep.subr.bf16.mxu0 %v8350_v6  ;;  %v8401_v62 = vld [vmem:[#allocation24 + $0xd94] ss:$28 sps:$4 sm:$0xff]   ;;  %v8407_v60 = vld [vmem:[#allocation24 + $0xd5c] ss:$28 sps:$4 sm:$0xff]   ;;  %v8410_v12 = vld [vmem:[#allocation24 + $0x9a4] ss:$28 sps:$4 sm:$0xff]  }
 0x590   :  { %6623 = vmatprep.subr.bf16.mxu1 %v8353_v50  ;;  %v8396_v49 = vld [vmem:[#allocation24 + $0xa10] ss:$28 sps:$4 sm:$0xff]   ;;  %v8402_v8 = vld [vmem:[#allocation24 + $0x9d8] ss:$28 sps:$4 sm:$0xff]   ;;  %v8413_v13 = vld [vmem:[#allocation24 + $0xd24] ss:$28 sps:$4 sm:$0xff]  }
 0x591   :  { %6653 = vmatprep.mubr.bf16.mxu1 %v9744_v25  ;;  %v8399_v0 = vld [vmem:[#allocation24 + $0xd90] ss:$28 sps:$4 sm:$0xff]   ;;  %v8405_v10 = vld [vmem:[#allocation24 + $0xd58] ss:$28 sps:$4 sm:$0xff]   ;;  %v8408_v21 = vld [vmem:[#allocation24 + $0x9a0] ss:$28 sps:$4 sm:$0xff]  }
 0x592   :  { %6583 = vmatpush1.bf16.msra.mxu0 %v8348_v36  ;;  %6624 = vmatpush1.bf16.msra.mxu1 %v8351_v43  ;;  %v8411_v30 = vld [vmem:[#allocation24 + $0xd20] ss:$28 sps:$4 sm:$0xff]   ;;  %v8416_v15 = vld [vmem:[#allocation24 + $0x96c] ss:$28 sps:$4 sm:$0xff]   ;;  %v8422_v7 = vld [vmem:[#allocation24 + $0x934] ss:$28 sps:$4 sm:$0xff]  }
 0x593   :  { %6584 = vmatprep.subr.bf16.mxu0 %v8356_v34  ;;  %6625 = vmatprep.subr.bf16.mxu1 %v8359_v31  ;;  %v8419_v17 = vld [vmem:[#allocation24 + $0xcec] ss:$28 sps:$4 sm:$0xff]   ;;  %v8425_v50 = vld [vmem:[#allocation24 + $0xcb4] ss:$28 sps:$4 sm:$0xff]   ;;  %v8428_v43 = vld [vmem:[#allocation24 + $0x8fc] ss:$28 sps:$4 sm:$0xff]  }
 0x594   :  { %v8414_v5 = vld [vmem:[#allocation24 + $0x968] ss:$28 sps:$4 sm:$0xff]   ;;  %v8420_v35 = vld [vmem:[#allocation24 + $0x930] ss:$28 sps:$4 sm:$0xff]   ;;  %v8431_v34 = vld [vmem:[#allocation24 + $0xc7c] ss:$28 sps:$4 sm:$0xff]  }
 0x595   :  { %v8417_v6 = vld [vmem:[#allocation24 + $0xce8] ss:$28 sps:$4 sm:$0xff]   ;;  %v8423_v36 = vld [vmem:[#allocation24 + $0xcb0] ss:$28 sps:$4 sm:$0xff]   ;;  %v8426_v31 = vld [vmem:[#allocation24 + $0x8f8] ss:$28 sps:$4 sm:$0xff]  }
 0x596   :  { %6585 = vmatpush1.bf16.msra.mxu0 %v8354_v40  ;;  %6626 = vmatpush1.bf16.msra.mxu1 %v8357_v24  ;;  %v8429_v40 = vld [vmem:[#allocation24 + $0xc78] ss:$28 sps:$4 sm:$0xff]   ;;  %v8434_v24 = vld [vmem:[#allocation24 + $0x8c4] ss:$28 sps:$4 sm:$0xff]   ;;  %vm3617_vm14 = vcmp.ge.f32.partialorder %v9725_v56, 0.0  ;;  %vm3619_vm15 = vcmp.ge.f32.partialorder %v9727_v59, 0.0 }
 0x597   :  { %6586 = vmatprep.subr.bf16.mxu0 %v8362_v32  ;;  %6627 = vmatprep.subr.bf16.mxu1 %v8365_v1  ;;  %v8437_v32 = vld [vmem:[#allocation24 + $0xc44] ss:$28 sps:$4 sm:$0xff]   ;;  %v3625_v1 = vmul.f32 0.2, %v9725_v56 }
 0x59a   :  { %6587 = vmatpush1.bf16.msra.mxu0 %v8360_v29  ;;  %6628 = vmatpush1.bf16.msra.mxu1 %v8363_v23  ;;  %v3627_v29 = vmul.f32 0.2, %v9727_v59  ;;  %v8432_v23 = vld [vmem:[#allocation24 + $0x8c0] ss:$28 sps:$4 sm:$0xff]  }
 0x59b   :  { %6588 = vmatprep.subr.bf16.mxu0 %v8368_v44  ;;  %6629 = vmatprep.subr.bf16.mxu1 %v8371_v63  ;;  %v8435_v44 = vld [vmem:[#allocation24 + $0xc40] ss:$28 sps:$4 sm:$0xff]   ;;  %v8440_v63 = vld [vmem:[#allocation24 + $0x194] ss:$28 sps:$4 sm:$0xff]  }
 0x59e   :  { %6589 = vmatpush1.bf16.msra.mxu0 %v8366_v46  ;;  %6630 = vmatpush1.bf16.msra.mxu1 %v8369_v61  ;;  %v8443_v46 = vld [vmem:[#allocation24 + $0x514] ss:$28 sps:$4 sm:$0xff]   ;;  %v3633_v61 = vsel %vm3617_vm14, %v9725_v56, %v3625_v1  ;;  %v8501_v1 = vld [vmem:[#allocation24 + $0x660] ss:$28 sps:$4 sm:$0xff]  }
 0x59f   :  { %6590 = vmatprep.subr.bf16.mxu0 %v8374_v22  ;;  %6631 = vmatprep.subr.bf16.mxu1 %v8377_v58  ;;  %v3635_v22 = vsel %vm3619_vm15, %v9727_v59, %v3627_v29  ;;  %v8438_v58 = vld [vmem:[#allocation24 + $0x190] ss:$28 sps:$4 sm:$0xff]   ;;  %v8444_v56 = vld [vmem:[#allocation24 + $0x158] ss:$28 sps:$4 sm:$0xff]  }
 0x5a0   :  { %v8447_v59 = vld [vmem:[#allocation24 + $0x4d8] ss:$28 sps:$4 sm:$0xff]   ;;  %v8506_v29 = vld [vmem:[#allocation24 + $0x2ac] ss:$28 sps:$4 sm:$0xff]  }
 0x5a2   :  { %6591 = vmatpush1.bf16.msra.mxu0 %v8372_v37  ;;  %6632 = vmatpush1.bf16.msra.mxu1 %v8375_v42  ;;  %v9753_v37 = vpack.c.bf16 %v3633_v61, %v3633_v61  ;;  %v9755_v42 = vpack.c.bf16 %v3635_v22, %v3635_v22  ;;  %v8515_v61 = vld [vmem:[#allocation24 + $0x5f4] ss:$28 sps:$4 sm:$0xff]  }
 0x5a3   :  { %6592 = vmatprep.subr.bf16.mxu0 %v8380_v47  ;;  %6633 = vmatprep.subr.bf16.mxu1 %v8383_v52  ;;  %v8441_v47 = vld [vmem:[#allocation24 + $0x510] ss:$28 sps:$4 sm:$0xff]   ;;  %v8446_v52 = vld [vmem:[#allocation24 + $0x15c] ss:$28 sps:$4 sm:$0xff]  }
 0x5a4   :  { %v8510_v22 = vld [vmem:[#allocation24 + $0x270] ss:$28 sps:$4 sm:$0xff]  }
 0x5a6   :  { %6593 = vmatpush1.bf16.msra.mxu0 %v8378_v28  ;;  %6634 = vmatpush1.bf16.msra.mxu1 %v8381_v27  ;;  %v8449_v28 = vld [vmem:[#allocation24 + $0x4dc] ss:$28 sps:$4 sm:$0xff]   ;;  %v8452_v27 = vld [vmem:[#allocation24 + $0x124] ss:$28 sps:$4 sm:$0xff]  }
 0x5a7   :  { %6594 = vmatprep.subr.bf16.mxu0 %v8386_v38  ;;  %6635 = vmatprep.subr.bf16.mxu1 %v8389_v19  ;;  %v8455_v38 = vld [vmem:[#allocation24 + $0x4a4] ss:$28 sps:$4 sm:$0xff]  }
 0x5a8   :  { %v8450_v19 = vld [vmem:[#allocation24 + $0x120] ss:$28 sps:$4 sm:$0xff]  }
 0x5aa   :  { %6595 = vmatpush1.bf16.msra.mxu0 %v8384_v51  ;;  %6636 = vmatpush1.bf16.msra.mxu1 %v8387_v26  ;;  %v8453_v51 = vld [vmem:[#allocation24 + $0x4a0] ss:$28 sps:$4 sm:$0xff]   ;;  %v8458_v26 = vld [vmem:[#allocation24 + $0xec] ss:$28 sps:$4 sm:$0xff]  }
 0x5ab   :  { %6596 = vmatprep.subr.bf16.mxu0 %v8392_v54  ;;  %6637 = vmatprep.subr.bf16.mxu1 %v8395_v55  ;;  %v8461_v54 = vld [vmem:[#allocation24 + $0x46c] ss:$28 sps:$4 sm:$0xff]  }
 0x5ac   :  { %v8456_v55 = vld [vmem:[#allocation24 + $0xe8] ss:$28 sps:$4 sm:$0xff]  }
 0x5ae   :  { %6597 = vmatpush2.bf16.msra.mxu0 %v8390_v16  ;;  %6638 = vmatpush2.bf16.msra.mxu1 %v8393_v45  ;;  %v8459_v16 = vld [vmem:[#allocation24 + $0x468] ss:$28 sps:$4 sm:$0xff]   ;;  %v8464_v45 = vld [vmem:[#allocation24 + $0xb4] ss:$28 sps:$4 sm:$0xff]  }
 0x5af   :  { %6598 = vmatprep.subr.bf16.mxu0 %v8398_v57  ;;  %6639 = vmatprep.subr.bf16.mxu1 %v8401_v62  ;;  %v8467_v57 = vld [vmem:[#allocation24 + $0x434] ss:$28 sps:$4 sm:$0xff]  }
 0x5b0   :  { %v8462_v62 = vld [vmem:[#allocation24 + $0xb0] ss:$28 sps:$4 sm:$0xff]  }
 0x5b2   :  { %6599 = vmatpush2.bf16.msra.mxu0 %v8396_v49  ;;  %6640 = vmatpush2.bf16.msra.mxu1 %v8399_v0  ;;  %v8465_v49 = vld [vmem:[#allocation24 + $0x430] ss:$28 sps:$4 sm:$0xff]   ;;  %v8470_v0 = vld [vmem:[#allocation24 + $0x7c] ss:$28 sps:$4 sm:$0xff]  }
 0x5b3   :  { %6600 = vmatprep.subr.bf16.mxu0 %v8404_v4  ;;  %6641 = vmatprep.subr.bf16.mxu1 %v8407_v60  ;;  %v8473_v4 = vld [vmem:[#allocation24 + $0x3fc] ss:$28 sps:$4 sm:$0xff]  }
 0x5b4   :  { %v8468_v60 = vld [vmem:[#allocation24 + $0x78] ss:$28 sps:$4 sm:$0xff]  }
 0x5b6   :  { %6601 = vmatpush2.bf16.msra.mxu0 %v8402_v8  ;;  %6642 = vmatpush2.bf16.msra.mxu1 %v8405_v10  ;;  %v8471_v8 = vld [vmem:[#allocation24 + $0x3f8] ss:$28 sps:$4 sm:$0xff]   ;;  %v8476_v10 = vld [vmem:[#allocation24 + $0x44] ss:$28 sps:$4 sm:$0xff]  }
 0x5b7   :  { %6602 = vmatprep.subr.bf16.mxu0 %v8410_v12  ;;  %6643 = vmatprep.subr.bf16.mxu1 %v8413_v13  ;;  %v8479_v12 = vld [vmem:[#allocation24 + $0x3c4] ss:$28 sps:$4 sm:$0xff]  }
 0x5b8   :  { %v8474_v13 = vld [vmem:[#allocation24 + $0x40] ss:$28 sps:$4 sm:$0xff]  }
 0x5ba   :  { %6603 = vmatpush2.bf16.msra.mxu0 %v8408_v21  ;;  %6644 = vmatpush2.bf16.msra.mxu1 %v8411_v30  ;;  %v8477_v21 = vld [vmem:[#allocation24 + $0x3c0] ss:$28 sps:$4 sm:$0xff]   ;;  %v8482_v30 = vld [vmem:[#allocation24 + $0xc] ss:$28 sps:$4 sm:$0xff]  }
 0x5bb   :  { %6604 = vmatprep.subr.bf16.mxu0 %v8416_v15  ;;  %6645 = vmatprep.subr.bf16.mxu1 %v8419_v17  ;;  %v8485_v15 = vld [vmem:[#allocation24 + $0x38c] ss:$28 sps:$4 sm:$0xff]  }
 0x5bc   :  { %v8480_v17 = vld [vmem:[#allocation24 + $0x8] ss:$28 sps:$4 sm:$0xff]  }
 0x5be   :  { %6605 = vmatpush2.bf16.msra.mxu0 %v8414_v5  ;;  %6646 = vmatpush2.bf16.msra.mxu1 %v8417_v6  ;;  %v8483_v5 = vld [vmem:[#allocation24 + $0x388] ss:$28 sps:$4 sm:$0xff]   ;;  %v8488_v6 = vld [vmem:[#allocation24 + $0x354] ss:$28 sps:$4 sm:$0xff]  }
 0x5bf   :  { %6606 = vmatprep.subr.bf16.mxu0 %v8422_v7  ;;  %6647 = vmatprep.subr.bf16.mxu1 %v8425_v50  ;;  %v8491_v7 = vld [vmem:[#allocation24 + $0x6d4] ss:$28 sps:$4 sm:$0xff]  }
 0x5c0   :  { %v8486_v50 = vld [vmem:[#allocation24 + $0x350] ss:$28 sps:$4 sm:$0xff]  }
 0x5c2   :  { %6607 = vmatpush2.bf16.msra.mxu0 %v8420_v35  ;;  %6648 = vmatpush2.bf16.msra.mxu1 %v8423_v36  ;;  %v8489_v35 = vld [vmem:[#allocation24 + $0x6d0] ss:$28 sps:$4 sm:$0xff]   ;;  %v8494_v36 = vld [vmem:[#allocation24 + $0x31c] ss:$28 sps:$4 sm:$0xff]  }
 0x5c3   :  { %6608 = vmatprep.subr.bf16.mxu0 %v8428_v43  ;;  %6649 = vmatprep.subr.bf16.mxu1 %v8431_v34  ;;  %v8497_v43 = vld [vmem:[#allocation24 + $0x69c] ss:$28 sps:$4 sm:$0xff]  }
 0x5c4   :  { %v8492_v34 = vld [vmem:[#allocation24 + $0x318] ss:$28 sps:$4 sm:$0xff]  }
 0x5c6   :  { %6609 = vmatpush2.bf16.msra.mxu0 %v8426_v31  ;;  %6650 = vmatpush2.bf16.msra.mxu1 %v8429_v40  ;;  %v8495_v31 = vld [vmem:[#allocation24 + $0x698] ss:$28 sps:$4 sm:$0xff]   ;;  %v8500_v40 = vld [vmem:[#allocation24 + $0x2e4] ss:$28 sps:$4 sm:$0xff]  }
 0x5c7   :  { %6610 = vmatprep.subr.bf16.mxu0 %v8434_v24  ;;  %6651 = vmatprep.subr.bf16.mxu1 %v8437_v32  ;;  %v8503_v24 = vld [vmem:[#allocation24 + $0x664] ss:$28 sps:$4 sm:$0xff]  }
 0x5c8   :  { %v8498_v32 = vld [vmem:[#allocation24 + $0x2e0] ss:$28 sps:$4 sm:$0xff]  }
 0x5ca   :  { %6611 = vmatpush2.bf16.msra.mxu0 %v8432_v23  ;;  %6652 = vmatpush2.bf16.msra.mxu1 %v8435_v44  ;;  %v8509_v23 = vld [vmem:[#allocation24 + $0x62c] ss:$28 sps:$4 sm:$0xff]  }
 0x5cb   :  { %6662 = vmatprep.subr.bf16.mxu0 %v8440_v63  ;;  %6703 = vmatprep.subr.bf16.mxu1 %v8443_v46  ;;  %v8504_v44 = vld [vmem:[#allocation24 + $0x2a8] ss:$28 sps:$4 sm:$0xff]   ;;  %v8512_v46 = vld [vmem:[#allocation24 + $0x274] ss:$28 sps:$4 sm:$0xff]  }
 0x5cc   :  { %v8507_v63 = vld [vmem:[#allocation24 + $0x628] ss:$28 sps:$4 sm:$0xff]  }
 0x5cd   :  { %6613 = vmatmul.mubr.bf16.vlgmr.msra.gmra.mxu0 %v9753_v37  ;;  %6654 = vmatmul.mubr.bf16.vlgmr.msra.gmra.mxu1 %v9755_v42 }
 0x5ce   :  { %6663 = vmatpush1.bf16.msra.mxu0 %v8438_v58  ;;  %6694 = vmatprep.mubr.bf16.mxu0 %v9729_v14  ;;  %v8513_v58 = vld [vmem:[#allocation24 + $0x5f0] ss:$28 sps:$4 sm:$0xff]  }
 0x5cf   :  { %6704 = vmatpush1.bf16.msra.mxu1 %v8441_v47  ;;  %6735 = vmatprep.mubr.bf16.mxu1 %v9731_v20  ;;  %v8518_v47 = vld [vmem:[#allocation24 + $0x23c] ss:$28 sps:$4 sm:$0xff]  }
 0x5d0   :  { %6664 = vmatprep.subr.bf16.mxu0 %v8446_v52  ;;  %6705 = vmatprep.subr.bf16.mxu1 %v8449_v28  ;;  %v8521_v52 = vld [vmem:[#allocation24 + $0x5bc] ss:$28 sps:$4 sm:$0xff]  }
 0x5d1   :  { %v8516_v28 = vld [vmem:[#allocation24 + $0x238] ss:$28 sps:$4 sm:$0xff]  }
 0x5d2   :  { %6665 = vmatpush1.bf16.msra.mxu0 %v8444_v56  ;;  %v8519_v56 = vld [vmem:[#allocation24 + $0x5b8] ss:$28 sps:$4 sm:$0xff]  }
 0x5d3   :  { %6706 = vmatpush1.bf16.msra.mxu1 %v8447_v59  ;;  %6666 = vmatprep.subr.bf16.mxu0 %v8452_v27  ;;  %v8524_v59 = vld [vmem:[#allocation24 + $0x204] ss:$28 sps:$4 sm:$0xff]  }
 0x5d4   :  { %6707 = vmatprep.subr.bf16.mxu1 %v8455_v38  ;;  %v8527_v27 = vld [vmem:[#allocation24 + $0x584] ss:$28 sps:$4 sm:$0xff]  }
 0x5d5   :  { %v8522_v38 = vld [vmem:[#allocation24 + $0x200] ss:$28 sps:$4 sm:$0xff]  }
 0x5d6   :  { %6667 = vmatpush1.bf16.msra.mxu0 %v8450_v19  ;;  %v8525_v19 = vld [vmem:[#allocation24 + $0x580] ss:$28 sps:$4 sm:$0xff]  }
 0x5d7   :  { %6708 = vmatpush1.bf16.msra.mxu1 %v8453_v51  ;;  %6668 = vmatprep.subr.bf16.mxu0 %v8458_v26  ;;  %v8530_v51 = vld [vmem:[#allocation24 + $0x1cc] ss:$28 sps:$4 sm:$0xff]  }
 0x5d8   :  { %6709 = vmatprep.subr.bf16.mxu1 %v8461_v54  ;;  %v8533_v26 = vld [vmem:[#allocation24 + $0x54c] ss:$28 sps:$4 sm:$0xff]  }
 0x5d9   :  { %v8528_v54 = vld [vmem:[#allocation24 + $0x1c8] ss:$28 sps:$4 sm:$0xff]  }
 0x5da   :  { %6669 = vmatpush1.bf16.msra.mxu0 %v8456_v55  ;;  %v8531_v55 = vld [vmem:[#allocation24 + $0x548] ss:$28 sps:$4 sm:$0xff]  }
 0x5db   :  { %6710 = vmatpush1.bf16.msra.mxu1 %v8459_v16  ;;  %6670 = vmatprep.subr.bf16.mxu0 %v8464_v45  ;;  %v8536_v16 = vld [vmem:[#allocation24 + $0x894] ss:$28 sps:$4 sm:$0xff]  }
 0x5dc   :  { %6711 = vmatprep.subr.bf16.mxu1 %v8467_v57  ;;  %v8539_v45 = vld [vmem:[#allocation24 + $0xc14] ss:$28 sps:$4 sm:$0xff]  }
 0x5dd   :  { %v8534_v57 = vld [vmem:[#allocation24 + $0x890] ss:$28 sps:$4 sm:$0xff]  }
 0x5de   :  { %6671 = vmatpush1.bf16.msra.mxu0 %v8462_v62  ;;  %v8537_v62 = vld [vmem:[#allocation24 + $0xc10] ss:$28 sps:$4 sm:$0xff]  }
 0x5df   :  { %6712 = vmatpush1.bf16.msra.mxu1 %v8465_v49  ;;  %6672 = vmatprep.subr.bf16.mxu0 %v8470_v0  ;;  %v8542_v49 = vld [vmem:[#allocation24 + $0x85c] ss:$28 sps:$4 sm:$0xff]  }
 0x5e0   :  { %6713 = vmatprep.subr.bf16.mxu1 %v8473_v4  ;;  %v8545_v0 = vld [vmem:[#allocation24 + $0xbdc] ss:$28 sps:$4 sm:$0xff]  }
 0x5e1   :  { %v8540_v4 = vld [vmem:[#allocation24 + $0x858] ss:$28 sps:$4 sm:$0xff]  }
 0x5e2   :  { %6673 = vmatpush1.bf16.msra.mxu0 %v8468_v60  ;;  %v8543_v60 = vld [vmem:[#allocation24 + $0xbd8] ss:$28 sps:$4 sm:$0xff]  }
 0x5e3   :  { %6714 = vmatpush1.bf16.msra.mxu1 %v8471_v8  ;;  %6674 = vmatprep.subr.bf16.mxu0 %v8476_v10  ;;  %v8548_v8 = vld [vmem:[#allocation24 + $0x824] ss:$28 sps:$4 sm:$0xff]  }
 0x5e4   :  { %6715 = vmatprep.subr.bf16.mxu1 %v8479_v12  ;;  %v8551_v10 = vld [vmem:[#allocation24 + $0xba4] ss:$28 sps:$4 sm:$0xff]  }
 0x5e5   :  { %v8546_v12 = vld [vmem:[#allocation24 + $0x820] ss:$28 sps:$4 sm:$0xff]  }
 0x5e6   :  { %6675 = vmatpush1.bf16.msra.mxu0 %v8474_v13  ;;  %v8549_v13 = vld [vmem:[#allocation24 + $0xba0] ss:$28 sps:$4 sm:$0xff]  }
 0x5e7   :  { %6716 = vmatpush1.bf16.msra.mxu1 %v8477_v21  ;;  %6676 = vmatprep.subr.bf16.mxu0 %v8482_v30  ;;  %v8554_v21 = vld [vmem:[#allocation24 + $0x7ec] ss:$28 sps:$4 sm:$0xff]  }
 0x5e8   :  { %6717 = vmatprep.subr.bf16.mxu1 %v8485_v15  ;;  %v8557_v30 = vld [vmem:[#allocation24 + $0xb6c] ss:$28 sps:$4 sm:$0xff]  }
 0x5e9   :  { %v8552_v15 = vld [vmem:[#allocation24 + $0x7e8] ss:$28 sps:$4 sm:$0xff]  }
 0x5ea   :  { %6677 = vmatpush1.bf16.msra.mxu0 %v8480_v17  ;;  %v8555_v17 = vld [vmem:[#allocation24 + $0xb68] ss:$28 sps:$4 sm:$0xff]  }
 0x5eb   :  { %6718 = vmatpush1.bf16.msra.mxu1 %v8483_v5  ;;  %6678 = vmatprep.subr.bf16.mxu0 %v8488_v6  ;;  %v8560_v5 = vld [vmem:[#allocation24 + $0x7b4] ss:$28 sps:$4 sm:$0xff]  }
 0x5ec   :  { %6719 = vmatprep.subr.bf16.mxu1 %v8491_v7  ;;  %v8563_v6 = vld [vmem:[#allocation24 + $0xb34] ss:$28 sps:$4 sm:$0xff]  }
 0x5ed   :  { %v8558_v7 = vld [vmem:[#allocation24 + $0x7b0] ss:$28 sps:$4 sm:$0xff]  }
 0x5ee   :  { %6679 = vmatpush2.bf16.msra.mxu0 %v8486_v50  ;;  %v8561_v50 = vld [vmem:[#allocation24 + $0xb30] ss:$28 sps:$4 sm:$0xff]  }
 0x5ef   :  { %6720 = vmatpush2.bf16.msra.mxu1 %v8489_v35  ;;  %6680 = vmatprep.subr.bf16.mxu0 %v8494_v36  ;;  %v8566_v35 = vld [vmem:[#allocation24 + $0x77c] ss:$28 sps:$4 sm:$0xff]  }
 0x5f0   :  { %6721 = vmatprep.subr.bf16.mxu1 %v8497_v43  ;;  %v8569_v36 = vld [vmem:[#allocation24 + $0xafc] ss:$28 sps:$4 sm:$0xff]  }
 0x5f1   :  { %v8564_v43 = vld [vmem:[#allocation24 + $0x778] ss:$28 sps:$4 sm:$0xff]  }
 0x5f2   :  { %6681 = vmatpush2.bf16.msra.mxu0 %v8492_v34  ;;  %v8567_v34 = vld [vmem:[#allocation24 + $0xaf8] ss:$28 sps:$4 sm:$0xff]  }
 0x5f3   :  { %6722 = vmatpush2.bf16.msra.mxu1 %v8495_v31  ;;  %6682 = vmatprep.subr.bf16.mxu0 %v8500_v40  ;;  %v8572_v31 = vld [vmem:[#allocation24 + $0x744] ss:$28 sps:$4 sm:$0xff]  }
 0x5f4   :  { %6723 = vmatprep.subr.bf16.mxu1 %v8503_v24  ;;  %v8575_v40 = vld [vmem:[#allocation24 + $0xac4] ss:$28 sps:$4 sm:$0xff]  }
 0x5f5   :  { %v8570_v24 = vld [vmem:[#allocation24 + $0x740] ss:$28 sps:$4 sm:$0xff]  }
 0x5f6   :  { %6683 = vmatpush2.bf16.msra.mxu0 %v8498_v32  ;;  %v8573_v32 = vld [vmem:[#allocation24 + $0xac0] ss:$28 sps:$4 sm:$0xff]  }
 0x5f7   :  { %6724 = vmatpush2.bf16.msra.mxu1 %v8501_v1  ;;  %6684 = vmatprep.subr.bf16.mxu0 %v8506_v29  ;;  %v8578_v1 = vld [vmem:[#allocation24 + $0x70c] ss:$28 sps:$4 sm:$0xff]  }
 0x5f8   :  { %6725 = vmatprep.subr.bf16.mxu1 %v8509_v23  ;;  %v8581_v29 = vld [vmem:[#allocation24 + $0xa8c] ss:$28 sps:$4 sm:$0xff]  }
 0x5f9   :  { %v8576_v23 = vld [vmem:[#allocation24 + $0x708] ss:$28 sps:$4 sm:$0xff]  }
 0x5fa   :  { %6685 = vmatpush2.bf16.msra.mxu0 %v8504_v44  ;;  %v8579_v44 = vld [vmem:[#allocation24 + $0xa88] ss:$28 sps:$4 sm:$0xff]  }
 0x5fb   :  { %6726 = vmatpush2.bf16.msra.mxu1 %v8507_v63  ;;  %6686 = vmatprep.subr.bf16.mxu0 %v8512_v46  ;;  %v8584_v63 = vld [vmem:[#allocation24 + $0xa54] ss:$28 sps:$4 sm:$0xff]  }
 0x5fc   :  { %6727 = vmatprep.subr.bf16.mxu1 %v8515_v61  ;;  %v8587_v46 = vld [vmem:[#allocation24 + $0xdd4] ss:$28 sps:$4 sm:$0xff]  }
 0x5fd   :  { %v8582_v61 = vld [vmem:[#allocation24 + $0xa50] ss:$28 sps:$4 sm:$0xff]  }
 0x5fe   :  { %6687 = vmatpush2.bf16.msra.mxu0 %v8510_v22  ;;  %v8585_v22 = vld [vmem:[#allocation24 + $0xdd0] ss:$28 sps:$4 sm:$0xff]  }
 0x5ff   :  { %6728 = vmatpush2.bf16.msra.mxu1 %v8513_v58  ;;  %6688 = vmatprep.subr.bf16.mxu0 %v8518_v47  ;;  %v8590_v58 = vld [vmem:[#allocation24 + $0xa1c] ss:$28 sps:$4 sm:$0xff]  }
 0x600   :  { %6729 = vmatprep.subr.bf16.mxu1 %v8521_v52  ;;  %v8593_v47 = vld [vmem:[#allocation24 + $0xd9c] ss:$28 sps:$4 sm:$0xff]  }
 0x601   :  { %v8588_v52 = vld [vmem:[#allocation24 + $0xa18] ss:$28 sps:$4 sm:$0xff]  }
 0x602   :  { %6689 = vmatpush2.bf16.msra.mxu0 %v8516_v28  ;;  %v8591_v28 = vld [vmem:[#allocation24 + $0xd98] ss:$28 sps:$4 sm:$0xff]  }
 0x603   :  { %6730 = vmatpush2.bf16.msra.mxu1 %v8519_v56  ;;  %6690 = vmatprep.subr.bf16.mxu0 %v8524_v59  ;;  %v8596_v56 = vld [vmem:[#allocation24 + $0x9e4] ss:$28 sps:$4 sm:$0xff]  }
 0x604   :  { %6731 = vmatprep.subr.bf16.mxu1 %v8527_v27  ;;  %v8599_v59 = vld [vmem:[#allocation24 + $0xd64] ss:$28 sps:$4 sm:$0xff]  }
 0x605   :  { %v8594_v27 = vld [vmem:[#allocation24 + $0x9e0] ss:$28 sps:$4 sm:$0xff]  }
 0x606   :  { %6691 = vmatpush2.bf16.msra.mxu0 %v8522_v38  ;;  %v8597_v38 = vld [vmem:[#allocation24 + $0xd60] ss:$28 sps:$4 sm:$0xff]  }
 0x607   :  { %6732 = vmatpush2.bf16.msra.mxu1 %v8525_v19  ;;  %6692 = vmatprep.subr.bf16.mxu0 %v8530_v51  ;;  %v8602_v19 = vld [vmem:[#allocation24 + $0x9ac] ss:$28 sps:$4 sm:$0xff]  }
 0x608   :  { %6733 = vmatprep.subr.bf16.mxu1 %v8533_v26  ;;  %v8605_v51 = vld [vmem:[#allocation24 + $0xd2c] ss:$28 sps:$4 sm:$0xff]  }
 0x609   :  { %v8600_v26 = vld [vmem:[#allocation24 + $0x9a8] ss:$28 sps:$4 sm:$0xff]  }
 0x60a   :  { %6693 = vmatpush2.bf16.msra.mxu0 %v8528_v54  ;;  %v8603_v54 = vld [vmem:[#allocation24 + $0xd28] ss:$28 sps:$4 sm:$0xff]  }
 0x60b   :  { %6734 = vmatpush2.bf16.msra.mxu1 %v8531_v55  ;;  %6744 = vmatprep.subr.bf16.mxu0 %v8536_v16  ;;  %v8608_v55 = vld [vmem:[#allocation24 + $0x974] ss:$28 sps:$4 sm:$0xff]  }
 0x60c   :  { %6785 = vmatprep.subr.bf16.mxu1 %v8539_v45  ;;  %v8611_v16 = vld [vmem:[#allocation24 + $0xcf4] ss:$28 sps:$4 sm:$0xff]  }
 0x60d   :  { %6695 = vmatmul.mubr.bf16.vlgmr.msra.gmra.mxu0 %v9733_v2  ;;  %v8606_v45 = vld [vmem:[#allocation24 + $0x970] ss:$28 sps:$4 sm:$0xff]  }
 0x60e   :  { %6736 = vmatmul.mubr.bf16.vlgmr.msra.gmra.mxu1 %v9735_v3  ;;  %6745 = vmatpush1.bf16.msra.mxu0 %v8534_v57  ;;  %v8609_v57 = vld [vmem:[#allocation24 + $0xcf0] ss:$28 sps:$4 sm:$0xff]  }
 0x60f   :  { %6776 = vmatprep.mubr.bf16.mxu0 %v9741_v33  ;;  %6786 = vmatpush1.bf16.msra.mxu1 %v8537_v62  ;;  %v8614_v62 = vld [vmem:[#allocation24 + $0x93c] ss:$28 sps:$4 sm:$0xff]  }
 0x610   :  { %6817 = vmatprep.mubr.bf16.mxu1 %v9744_v25  ;;  %6746 = vmatprep.subr.bf16.mxu0 %v8542_v49  ;;  %v8617_v49 = vld [vmem:[#allocation24 + $0xcbc] ss:$28 sps:$4 sm:$0xff]  }
 0x611   :  { %6787 = vmatprep.subr.bf16.mxu1 %v8545_v0  ;;  %v8612_v0 = vld [vmem:[#allocation24 + $0x938] ss:$28 sps:$4 sm:$0xff]  }
 0x612   :  { %6747 = vmatpush1.bf16.msra.mxu0 %v8540_v4  ;;  %v8615_v4 = vld [vmem:[#allocation24 + $0xcb8] ss:$28 sps:$4 sm:$0xff]  }
 0x613   :  { %6788 = vmatpush1.bf16.msra.mxu1 %v8543_v60  ;;  %6748 = vmatprep.subr.bf16.mxu0 %v8548_v8  ;;  %v8620_v60 = vld [vmem:[#allocation24 + $0x904] ss:$28 sps:$4 sm:$0xff]  }
 0x614   :  { %6789 = vmatprep.subr.bf16.mxu1 %v8551_v10  ;;  %v8623_v8 = vld [vmem:[#allocation24 + $0xc84] ss:$28 sps:$4 sm:$0xff]  }
 0x615   :  { %v8618_v10 = vld [vmem:[#allocation24 + $0x900] ss:$28 sps:$4 sm:$0xff]  }
 0x616   :  { %6749 = vmatpush1.bf16.msra.mxu0 %v8546_v12  ;;  %v8621_v12 = vld [vmem:[#allocation24 + $0xc80] ss:$28 sps:$4 sm:$0xff]  }
 0x617   :  { %6790 = vmatpush1.bf16.msra.mxu1 %v8549_v13  ;;  %6750 = vmatprep.subr.bf16.mxu0 %v8554_v21  ;;  %v8626_v13 = vld [vmem:[#allocation24 + $0x8cc] ss:$28 sps:$4 sm:$0xff]  }
 0x618   :  { %6791 = vmatprep.subr.bf16.mxu1 %v8557_v30  ;;  %v8629_v21 = vld [vmem:[#allocation24 + $0xc4c] ss:$28 sps:$4 sm:$0xff]  }
 0x619   :  { %v8624_v30 = vld [vmem:[#allocation24 + $0x8c8] ss:$28 sps:$4 sm:$0xff]  }
 0x61a   :  { %6751 = vmatpush1.bf16.msra.mxu0 %v8552_v15  ;;  %v8627_v15 = vld [vmem:[#allocation24 + $0xc48] ss:$28 sps:$4 sm:$0xff]  }
 0x61b   :  { %6792 = vmatpush1.bf16.msra.mxu1 %v8555_v17  ;;  %6752 = vmatprep.subr.bf16.mxu0 %v8560_v5  ;;  %v8632_v17 = vld [vmem:[#allocation24 + $0x19c] ss:$28 sps:$4 sm:$0xff]  }
 0x61c   :  { %6793 = vmatprep.subr.bf16.mxu1 %v8563_v6  ;;  %v8635_v5 = vld [vmem:[#allocation24 + $0x51c] ss:$28 sps:$4 sm:$0xff]  }
 0x61d   :  { %v8630_v6 = vld [vmem:[#allocation24 + $0x198] ss:$28 sps:$4 sm:$0xff]  }
 0x61e   :  { %6753 = vmatpush1.bf16.msra.mxu0 %v8558_v7  ;;  %v8633_v7 = vld [vmem:[#allocation24 + $0x518] ss:$28 sps:$4 sm:$0xff]  }
 0x61f   :  { %6794 = vmatpush1.bf16.msra.mxu1 %v8561_v50  ;;  %6754 = vmatprep.subr.bf16.mxu0 %v8566_v35  ;;  %v8638_v50 = vld [vmem:[#allocation24 + $0x164] ss:$28 sps:$4 sm:$0xff]  }
 0x620   :  { %6795 = vmatprep.subr.bf16.mxu1 %v8569_v36 }
 0x622   :  { %6755 = vmatpush1.bf16.msra.mxu0 %v8564_v43  ;;  %v8641_v43 = vld [vmem:[#allocation24 + $0x4e4] ss:$28 sps:$4 sm:$0xff]  }
 0x623   :  { %6796 = vmatpush1.bf16.msra.mxu1 %v8567_v34  ;;  %6756 = vmatprep.subr.bf16.mxu0 %v8572_v31  ;;  %v8636_v34 = vld [vmem:[#allocation24 + $0x160] ss:$28 sps:$4 sm:$0xff]  }
 0x624   :  { %6797 = vmatprep.subr.bf16.mxu1 %v8575_v40 }
 0x626   :  { %6757 = vmatpush1.bf16.msra.mxu0 %v8570_v24  ;;  %v8639_v24 = vld [vmem:[#allocation24 + $0x4e0] ss:$28 sps:$4 sm:$0xff]  }
 0x627   :  { %6798 = vmatpush1.bf16.msra.mxu1 %v8573_v32  ;;  %6758 = vmatprep.subr.bf16.mxu0 %v8578_v1  ;;  %v8644_v32 = vld [vmem:[#allocation24 + $0x12c] ss:$28 sps:$4 sm:$0xff]  }
 0x628   :  { %6799 = vmatprep.subr.bf16.mxu1 %v8581_v29  ;;  %v8647_v1 = vld [vmem:[#allocation24 + $0x4ac] ss:$28 sps:$4 sm:$0xff]  }
 0x62a   :  { %6759 = vmatpush1.bf16.msra.mxu0 %v8576_v23 }
 0x62b   :  { %6800 = vmatpush1.bf16.msra.mxu1 %v8579_v44  ;;  %6760 = vmatprep.subr.bf16.mxu0 %v8584_v63  ;;  %v8642_v44 = vld [vmem:[#allocation24 + $0x128] ss:$28 sps:$4 sm:$0xff]  }
 0x62c   :  { %6801 = vmatprep.subr.bf16.mxu1 %v8587_v46 }
 0x62e   :  { %6761 = vmatpush2.bf16.msra.mxu0 %v8582_v61  ;;  %v8645_v61 = vld [vmem:[#allocation24 + $0x4a8] ss:$28 sps:$4 sm:$0xff]  }
 0x62f   :  { %6802 = vmatpush2.bf16.msra.mxu1 %v8585_v22  ;;  %6762 = vmatprep.subr.bf16.mxu0 %v8590_v58  ;;  %v8650_v22 = vld [vmem:[#allocation24 + $0xf4] ss:$28 sps:$4 sm:$0xff]  }
 0x630   :  { %6803 = vmatprep.subr.bf16.mxu1 %v8593_v47  ;;  %v8653_v58 = vld [vmem:[#allocation24 + $0x474] ss:$28 sps:$4 sm:$0xff]  }
 0x631   :  { %v8648_v47 = vld [vmem:[#allocation24 + $0xf0] ss:$28 sps:$4 sm:$0xff]  }
 0x632   :  { %6763 = vmatpush2.bf16.msra.mxu0 %v8588_v52  ;;  %v8651_v52 = vld [vmem:[#allocation24 + $0x470] ss:$28 sps:$4 sm:$0xff]  }
 0x633   :  { %6804 = vmatpush2.bf16.msra.mxu1 %v8591_v28  ;;  %6764 = vmatprep.subr.bf16.mxu0 %v8596_v56  ;;  %v8656_v28 = vld [vmem:[#allocation24 + $0xbc] ss:$28 sps:$4 sm:$0xff]  }
 0x634   :  { %6805 = vmatprep.subr.bf16.mxu1 %v8599_v59  ;;  %v8659_v56 = vld [vmem:[#allocation24 + $0x43c] ss:$28 sps:$4 sm:$0xff]  }
 0x635   :  { %v8654_v59 = vld [vmem:[#allocation24 + $0xb8] ss:$28 sps:$4 sm:$0xff]  }
 0x636   :  { %6765 = vmatpush2.bf16.msra.mxu0 %v8594_v27  ;;  %v8657_v27 = vld [vmem:[#allocation24 + $0x438] ss:$28 sps:$4 sm:$0xff]  }
 0x637   :  { %6806 = vmatpush2.bf16.msra.mxu1 %v8597_v38  ;;  %6766 = vmatprep.subr.bf16.mxu0 %v8602_v19  ;;  %v8662_v38 = vld [vmem:[#allocation24 + $0x84] ss:$28 sps:$4 sm:$0xff]  }
 0x638   :  { %6807 = vmatprep.subr.bf16.mxu1 %v8605_v51  ;;  %v8665_v19 = vld [vmem:[#allocation24 + $0x404] ss:$28 sps:$4 sm:$0xff]  }
 0x639   :  { %v8660_v51 = vld [vmem:[#allocation24 + $0x80] ss:$28 sps:$4 sm:$0xff]  }
 0x63a   :  { %6767 = vmatpush2.bf16.msra.mxu0 %v8600_v26  ;;  %v8663_v26 = vld [vmem:[#allocation24 + $0x400] ss:$28 sps:$4 sm:$0xff]  }
 0x63b   :  { %6808 = vmatpush2.bf16.msra.mxu1 %v8603_v54  ;;  %6768 = vmatprep.subr.bf16.mxu0 %v8608_v55  ;;  %v8668_v54 = vld [vmem:[#allocation24 + $0x4c] ss:$28 sps:$4 sm:$0xff]  }
 0x63c   :  { %6809 = vmatprep.subr.bf16.mxu1 %v8611_v16  ;;  %v8671_v55 = vld [vmem:[#allocation24 + $0x3cc] ss:$28 sps:$4 sm:$0xff]  }
 0x63d   :  { %v8666_v16 = vld [vmem:[#allocation24 + $0x48] ss:$28 sps:$4 sm:$0xff]  }
 0x63e   :  { %6769 = vmatpush2.bf16.msra.mxu0 %v8606_v45  ;;  %v8669_v45 = vld [vmem:[#allocation24 + $0x3c8] ss:$28 sps:$4 sm:$0xff]  }
 0x63f   :  { %6810 = vmatpush2.bf16.msra.mxu1 %v8609_v57  ;;  %6770 = vmatprep.subr.bf16.mxu0 %v8614_v62  ;;  %v8674_v57 = vld [vmem:[#allocation24 + $0x14] ss:$28 sps:$4 sm:$0xff]  }
 0x640   :  { %6811 = vmatprep.subr.bf16.mxu1 %v8617_v49  ;;  %v8677_v62 = vld [vmem:[#allocation24 + $0x394] ss:$28 sps:$4 sm:$0xff]  }
 0x641   :  { %v8672_v49 = vld [vmem:[#allocation24 + $0x10] ss:$28 sps:$4 sm:$0xff]  }
 0x642   :  { %6771 = vmatpush2.bf16.msra.mxu0 %v8612_v0  ;;  %v8675_v0 = vld [vmem:[#allocation24 + $0x390] ss:$28 sps:$4 sm:$0xff]  }
 0x643   :  { %6812 = vmatpush2.bf16.msra.mxu1 %v8615_v4  ;;  %6772 = vmatprep.subr.bf16.mxu0 %v8620_v60  ;;  %v8680_v4 = vld [vmem:[#allocation24 + $0x35c] ss:$28 sps:$4 sm:$0xff]  }
 0x644   :  { %6813 = vmatprep.subr.bf16.mxu1 %v8623_v8  ;;  %v8683_v60 = vld [vmem:[#allocation24 + $0x6dc] ss:$28 sps:$4 sm:$0xff]  }
 0x645   :  { %v8678_v8 = vld [vmem:[#allocation24 + $0x358] ss:$28 sps:$4 sm:$0xff]  }
 0x646   :  { %6773 = vmatpush2.bf16.msra.mxu0 %v8618_v10  ;;  %v8681_v10 = vld [vmem:[#allocation24 + $0x6d8] ss:$28 sps:$4 sm:$0xff]  }
 0x647   :  { %6814 = vmatpush2.bf16.msra.mxu1 %v8621_v12  ;;  %6774 = vmatprep.subr.bf16.mxu0 %v8626_v13  ;;  %v8686_v12 = vld [vmem:[#allocation24 + $0x324] ss:$28 sps:$4 sm:$0xff]  }
 0x648   :  { %6815 = vmatprep.subr.bf16.mxu1 %v8629_v21  ;;  %v8689_v13 = vld [vmem:[#allocation24 + $0x6a4] ss:$28 sps:$4 sm:$0xff]  }
 0x649   :  { %v8684_v21 = vld [vmem:[#allocation24 + $0x320] ss:$28 sps:$4 sm:$0xff]  }
 0x64a   :  { %6775 = vmatpush2.bf16.msra.mxu0 %v8624_v30  ;;  %v8687_v30 = vld [vmem:[#allocation24 + $0x6a0] ss:$28 sps:$4 sm:$0xff]  }
 0x64b   :  { %6816 = vmatpush2.bf16.msra.mxu1 %v8627_v15  ;;  %6826 = vmatprep.subr.bf16.mxu0 %v8632_v17  ;;  %v8692_v15 = vld [vmem:[#allocation24 + $0x2ec] ss:$28 sps:$4 sm:$0xff]  }
 0x64c   :  { %6867 = vmatprep.subr.bf16.mxu1 %v8635_v5  ;;  %v8695_v17 = vld [vmem:[#allocation24 + $0x66c] ss:$28 sps:$4 sm:$0xff]  }
 0x64d   :  { %6777 = vmatmul.mubr.bf16.vlgmr.msra.gmra.mxu0 %v9753_v37  ;;  %v9766_v35 = vpop.f32.mrf.mxu0  ;;  %v9768_v36 = vpop.f32.mrf.mxu1  ;;  %v8690_v5 = vld [vmem:[#allocation24 + $0x2e8] ss:$28 sps:$4 sm:$0xff]  }
 0x64e   :  { %6818 = vmatmul.mubr.bf16.vlgmr.msra.gmra.mxu1 %v9755_v42  ;;  %6827 = vmatpush1.bf16.msra.mxu0 %v8630_v6  ;;  %v8693_v6 = vld [vmem:[#allocation24 + $0x668] ss:$28 sps:$4 sm:$0xff]  }
 0x64f   :  { %6858 = vmatprep.mubr.bf16.mxu0 %v9729_v14  ;;  %6868 = vmatpush1.bf16.msra.mxu1 %v8633_v7  ;;  %v9772_v31 = vpop.f32.mrf.mxu0  ;;  %v9774_v40 = vpop.f32.mrf.mxu1  ;;  %v8698_v7 = vld [vmem:[#allocation24 + $0x2b4] ss:$28 sps:$4 sm:$0xff]  }
 0x650   :  { %6899 = vmatprep.mubr.bf16.mxu1 %v9731_v20  ;;  %6828 = vmatprep.subr.bf16.mxu0 %v8638_v50  ;;  %v8701_v50 = vld [vmem:[#allocation24 + $0x634] ss:$28 sps:$4 sm:$0xff]  }
 0x651   :  { %6869 = vmatprep.subr.bf16.mxu1 %v8641_v43  ;;  %v6536_v29 = vpop.f32.mrf.mxu0  ;;  %v6577_v23 = vpop.f32.mrf.mxu1  ;;  %v8696_v43 = vld [vmem:[#allocation24 + $0x2b0] ss:$28 sps:$4 sm:$0xff]  }
 0x652   :  { %6829 = vmatpush1.bf16.msra.mxu0 %v8636_v34  ;;  %v8699_v34 = vld [vmem:[#allocation24 + $0x630] ss:$28 sps:$4 sm:$0xff]   ;;  %v8705_v29 = vld [vmem:[#allocation24 + $0x5f8] ss:$28 sps:$4 sm:$0xff]   ;;  %v8710_v23 = vld [vmem:[#allocation24 + $0x244] ss:$28 sps:$4 sm:$0xff]  }
 0x653   :  { %6870 = vmatpush1.bf16.msra.mxu1 %v8639_v24  ;;  %v6537_v63 = vpop.f32.mrf.mxu0  ;;  %v6578_v46 = vpop.f32.mrf.mxu1  ;;  %6830 = vmatprep.subr.bf16.mxu0 %v8644_v32  ;;  %v8704_v24 = vld [vmem:[#allocation24 + $0x27c] ss:$28 sps:$4 sm:$0xff]  }
 0x654   :  { %6871 = vmatprep.subr.bf16.mxu1 %v8647_v1  ;;  %v8707_v32 = vld [vmem:[#allocation24 + $0x5fc] ss:$28 sps:$4 sm:$0xff]  }
 0x655   :  { %v8702_v1 = vld [vmem:[#allocation24 + $0x278] ss:$28 sps:$4 sm:$0xff]   ;;  %v8708_v63 = vld [vmem:[#allocation24 + $0x240] ss:$28 sps:$4 sm:$0xff]  }
 0x656   :  { %6831 = vmatpush1.bf16.msra.mxu0 %v8642_v44  ;;  %v8713_v44 = vld [vmem:[#allocation24 + $0x5c4] ss:$28 sps:$4 sm:$0xff]  }
 0x657   :  { %6872 = vmatpush1.bf16.msra.mxu1 %v8645_v61  ;;  %6832 = vmatprep.subr.bf16.mxu0 %v8650_v22  ;;  %v8711_v46 = vld [vmem:[#allocation24 + $0x5c0] ss:$28 sps:$4 sm:$0xff]   ;;  %v8716_v61 = vld [vmem:[#allocation24 + $0x20c] ss:$28 sps:$4 sm:$0xff]  }
 0x658   :  { %6873 = vmatprep.subr.bf16.mxu1 %v8653_v58  ;;  %v8719_v22 = vld [vmem:[#allocation24 + $0x58c] ss:$28 sps:$4 sm:$0xff]   ;;  %v9777_v58 = vld [vmem:[#allocation25] sm:$0xff] }
 0x65a   :  { %6833 = vmatpush1.bf16.msra.mxu0 %v8648_v47  ;;  %v8714_v47 = vld [vmem:[#allocation24 + $0x208] ss:$28 sps:$4 sm:$0xff]  }
 0x65b   :  { %6874 = vmatpush1.bf16.msra.mxu1 %v8651_v52  ;;  %6834 = vmatprep.subr.bf16.mxu0 %v8656_v28  ;;  %v8717_v52 = vld [vmem:[#allocation24 + $0x588] ss:$28 sps:$4 sm:$0xff]   ;;  %v8722_v28 = vld [vmem:[#allocation24 + $0x1d4] ss:$28 sps:$4 sm:$0xff]  }
 0x65c   :  { %6875 = vmatprep.subr.bf16.mxu1 %v8659_v56  ;;  %v4162_v56 = vrot.slane %v9777_v58, %v9440_v39  ;;  %v8729_v39 = vld [vmem:[#allocation24 + $0xc18] ss:$28 sps:$4 sm:$0xff]  }
 0x65e   :  { %6835 = vmatpush1.bf16.msra.mxu0 %v8654_v59  ;;  %v8725_v59 = vld [vmem:[#allocation24 + $0x554] ss:$28 sps:$4 sm:$0xff]  }
 0x65f   :  { %6876 = vmatpush1.bf16.msra.mxu1 %v8657_v27  ;;  %6836 = vmatprep.subr.bf16.mxu0 %v8662_v38  ;;  %v4166_v27 = vrot.slane %v9777_v58, %v9443_v41  ;;  %v8720_v38 = vld [vmem:[#allocation24 + $0x1d0] ss:$28 sps:$4 sm:$0xff]   ;;  %v8734_v41 = vld [vmem:[#allocation24 + $0x864] ss:$28 sps:$4 sm:$0xff]  }
 0x660   :  { %6877 = vmatprep.subr.bf16.mxu1 %v8665_v19  ;;  %v8723_v19 = vld [vmem:[#allocation24 + $0x550] ss:$28 sps:$4 sm:$0xff]  }
 0x662   :  { %6837 = vmatpush1.bf16.msra.mxu0 %v8660_v51  ;;  %v8728_v51 = vld [vmem:[#allocation24 + $0x89c] ss:$28 sps:$4 sm:$0xff]  }
 0x663   :  { %6878 = vmatpush1.bf16.msra.mxu1 %v8663_v26  ;;  %6838 = vmatprep.subr.bf16.mxu0 %v8668_v54  ;;  %v6533_v26 = vadd.f32 %v9766_v35, %v4162_v56  ;;  %v8731_v54 = vld [vmem:[#allocation24 + $0xc1c] ss:$28 sps:$4 sm:$0xff]   ;;  %v8765_v56 = vld [vmem:[#allocation24 + $0xac8] ss:$28 sps:$4 sm:$0xff]  }
 0x664   :  { %6879 = vmatprep.subr.bf16.mxu1 %v8671_v55  ;;  %v6535_v55 = vadd.f32 %v9772_v31, %v4166_v27  ;;  %v8732_v31 = vld [vmem:[#allocation24 + $0x860] ss:$28 sps:$4 sm:$0xff]   ;;  %v8773_v27 = vld [vmem:[#allocation24 + $0xa94] ss:$28 sps:$4 sm:$0xff]  }
 0x666   :  { %6839 = vmatpush1.bf16.msra.mxu0 %v8666_v16  ;;  %v8726_v16 = vld [vmem:[#allocation24 + $0x898] ss:$28 sps:$4 sm:$0xff]   ;;  %v6576_v35 = vadd.f32 %v9774_v40, %v6535_v55 }
 0x667   :  { %6880 = vmatpush1.bf16.msra.mxu1 %v8669_v45  ;;  %6840 = vmatprep.subr.bf16.mxu0 %v8674_v57  ;;  %v6574_v45 = vadd.f32 %v9768_v36, %v6533_v26  ;;  %v8735_v36 = vld [vmem:[#allocation24 + $0xbe0] ss:$28 sps:$4 sm:$0xff]   ;;  %v8777_v55 = vld [vmem:[#allocation24 + $0xdd8] ss:$28 sps:$4 sm:$0xff]  }
 0x668   :  { %6881 = vmatprep.subr.bf16.mxu1 %v8677_v62  ;;  %v8779_v26 = vld [vmem:[#allocation24 + $0xddc] ss:$28 sps:$4 sm:$0xff]  }
 0x66a   :  { %6841 = vmatpush1.bf16.msra.mxu0 %v8672_v49  ;;  %v8737_v49 = vld [vmem:[#allocation24 + $0xbe4] ss:$28 sps:$4 sm:$0xff]  }
 0x66b   :  { %6882 = vmatpush1.bf16.msra.mxu1 %v8675_v0  ;;  %6842 = vmatprep.subr.bf16.mxu0 %v8680_v4 }
 0x66c   :  { %6883 = vmatprep.subr.bf16.mxu1 %v8683_v60 }
 0x66e   :  { %6843 = vmatpush2.bf16.msra.mxu0 %v8678_v8  ;;  %v8740_v8 = vld [vmem:[#allocation24 + $0x82c] ss:$28 sps:$4 sm:$0xff]  }
 0x66f   :  { %6884 = vmatpush2.bf16.msra.mxu1 %v8681_v10  ;;  %6844 = vmatprep.subr.bf16.mxu0 %v8686_v12 }
 0x670   :  { %6885 = vmatprep.subr.bf16.mxu1 %v8689_v13  ;;  %v8743_v13 = vld [vmem:[#allocation24 + $0xbac] ss:$28 sps:$4 sm:$0xff]  }
 0x672   :  { %6845 = vmatpush2.bf16.msra.mxu0 %v8684_v21 }
 0x673   :  { %6886 = vmatpush2.bf16.msra.mxu1 %v8687_v30  ;;  %6846 = vmatprep.subr.bf16.mxu0 %v8692_v15  ;;  %v8738_v15 = vld [vmem:[#allocation24 + $0x828] ss:$28 sps:$4 sm:$0xff]  }
 0x674   :  { %6887 = vmatprep.subr.bf16.mxu1 %v8695_v17 }
 0x676   :  { %6847 = vmatpush2.bf16.msra.mxu0 %v8690_v5 }
 0x677   :  { %6888 = vmatpush2.bf16.msra.mxu1 %v8693_v6  ;;  %6848 = vmatprep.subr.bf16.mxu0 %v8698_v7  ;;  %v8741_v6 = vld [vmem:[#allocation24 + $0xba8] ss:$28 sps:$4 sm:$0xff]   ;;  %v8746_v7 = vld [vmem:[#allocation24 + $0x7f4] ss:$28 sps:$4 sm:$0xff]  }
 0x678   :  { %6889 = vmatprep.subr.bf16.mxu1 %v8701_v50  ;;  %v8749_v50 = vld [vmem:[#allocation24 + $0xb74] ss:$28 sps:$4 sm:$0xff]  }
 0x67a   :  { %6849 = vmatpush2.bf16.msra.mxu0 %v8696_v43  ;;  %v8744_v43 = vld [vmem:[#allocation24 + $0x7f0] ss:$28 sps:$4 sm:$0xff]  }
 0x67b   :  { %6890 = vmatpush2.bf16.msra.mxu1 %v8699_v34  ;;  %6850 = vmatprep.subr.bf16.mxu0 %v8704_v24  ;;  %v8747_v34 = vld [vmem:[#allocation24 + $0xb70] ss:$28 sps:$4 sm:$0xff]   ;;  %v8752_v24 = vld [vmem:[#allocation24 + $0x7bc] ss:$28 sps:$4 sm:$0xff]  }
 0x67c   :  { %6891 = vmatprep.subr.bf16.mxu1 %v8707_v32  ;;  %v8755_v32 = vld [vmem:[#allocation24 + $0xb3c] ss:$28 sps:$4 sm:$0xff]  }
 0x67e   :  { %6851 = vmatpush2.bf16.msra.mxu0 %v8702_v1  ;;  %v8750_v1 = vld [vmem:[#allocation24 + $0x7b8] ss:$28 sps:$4 sm:$0xff]  }
 0x67f   :  { %6892 = vmatpush2.bf16.msra.mxu1 %v8705_v29  ;;  %6852 = vmatprep.subr.bf16.mxu0 %v8710_v23  ;;  %v8753_v29 = vld [vmem:[#allocation24 + $0xb38] ss:$28 sps:$4 sm:$0xff]   ;;  %v8758_v23 = vld [vmem:[#allocation24 + $0x784] ss:$28 sps:$4 sm:$0xff]  }
 0x680   :  { %6893 = vmatprep.subr.bf16.mxu1 %v8713_v44  ;;  %v8761_v44 = vld [vmem:[#allocation24 + $0xb04] ss:$28 sps:$4 sm:$0xff]  }
 0x682   :  { %6853 = vmatpush2.bf16.msra.mxu0 %v8708_v63  ;;  %v8756_v63 = vld [vmem:[#allocation24 + $0x780] ss:$28 sps:$4 sm:$0xff]  }
 0x683   :  { %6894 = vmatpush2.bf16.msra.mxu1 %v8711_v46  ;;  %6854 = vmatprep.subr.bf16.mxu0 %v8716_v61  ;;  %v8759_v61 = vld [vmem:[#allocation24 + $0xb00] ss:$28 sps:$4 sm:$0xff]  }
 0x684   :  { %6895 = vmatprep.subr.bf16.mxu1 %v8719_v22  ;;  %v8764_v22 = vld [vmem:[#allocation24 + $0x74c] ss:$28 sps:$4 sm:$0xff]  }
 0x686   :  { %6855 = vmatpush2.bf16.msra.mxu0 %v8714_v47  ;;  %v8767_v47 = vld [vmem:[#allocation24 + $0xacc] ss:$28 sps:$4 sm:$0xff]  }
 0x687   :  { %6896 = vmatpush2.bf16.msra.mxu1 %v8717_v52  ;;  %6856 = vmatprep.subr.bf16.mxu0 %v8722_v28  ;;  %v8762_v28 = vld [vmem:[#allocation24 + $0x748] ss:$28 sps:$4 sm:$0xff]  }
 0x688   :  { %6897 = vmatprep.subr.bf16.mxu1 %v8725_v59  ;;  %v8770_v59 = vld [vmem:[#allocation24 + $0x714] ss:$28 sps:$4 sm:$0xff]  }
 0x68a   :  { %6857 = vmatpush2.bf16.msra.mxu0 %v8720_v38  ;;  %v8768_v38 = vld [vmem:[#allocation24 + $0x710] ss:$28 sps:$4 sm:$0xff]  }
 0x68b   :  { %6898 = vmatpush2.bf16.msra.mxu1 %v8723_v19  ;;  %6908 = vmatprep.subr.bf16.mxu0 %v8728_v51  ;;  %v8771_v19 = vld [vmem:[#allocation24 + $0xa90] ss:$28 sps:$4 sm:$0xff]   ;;  %v8776_v51 = vld [vmem:[#allocation24 + $0xa5c] ss:$28 sps:$4 sm:$0xff]  }
 0x68c   :  { %6949 = vmatprep.subr.bf16.mxu1 %v8731_v54  ;;  %v8774_v54 = vld [vmem:[#allocation24 + $0xa58] ss:$28 sps:$4 sm:$0xff]  }
 0x68d   :  { %v6614_v57 = vpop.f32.mrf.mxu0  ;;  %v6655_v62 = vpop.f32.mrf.mxu1  ;;  %6859 = vmatmul.mubr.bf16.vlgmr.msra.gmra.mxu0 %v9733_v2 }
 0x68e   :  { %v6615_v0 = vadd.f32 %v6614_v57, %v6574_v45  ;;  %6900 = vmatmul.mubr.bf16.vlgmr.msra.gmra.mxu1 %v9735_v3  ;;  %6909 = vmatpush1.bf16.msra.mxu0 %v8726_v16  ;;  %v8782_v16 = vld [vmem:[#allocation24 + $0xa24] ss:$28 sps:$4 sm:$0xff]   ;;  %v8788_v57 = vld [vmem:[#allocation24 + $0x9ec] ss:$28 sps:$4 sm:$0xff]  }
 0x68f   :  { %6940 = vmatprep.mubr.bf16.mxu0 %v9741_v33  ;;  %6950 = vmatpush1.bf16.msra.mxu1 %v8729_v39  ;;  %v6616_v4 = vpop.f32.mrf.mxu0  ;;  %v6657_v60 = vpop.f32.mrf.mxu1  ;;  %v8785_v39 = vld [vmem:[#allocation24 + $0xda4] ss:$28 sps:$4 sm:$0xff]  }
 0x690   :  { %v6656_v10 = vadd.f32 %v6655_v62, %v6615_v0  ;;  %6981 = vmatprep.mubr.bf16.mxu1 %v9744_v25  ;;  %v6617_v12 = vadd.f32 %v6616_v4, %v6576_v35  ;;  %6910 = vmatprep.subr.bf16.mxu0 %v8734_v41  ;;  %v8780_v45 = vld [vmem:[#allocation24 + $0xa20] ss:$28 sps:$4 sm:$0xff]   ;;  %v8791_v62 = vld [vmem:[#allocation24 + $0xd6c] ss:$28 sps:$4 sm:$0xff]   ;;  %v8794_v0 = vld [vmem:[#allocation24 + $0x9b4] ss:$28 sps:$4 sm:$0xff]  }
 0x691   :  { %v6618_v21 = vpop.f32.mrf.mxu0  ;;  %v6659_v40 = vpop.f32.mrf.mxu1  ;;  %6951 = vmatprep.subr.bf16.mxu1 %v8737_v49  ;;  %v8783_v41 = vld [vmem:[#allocation24 + $0xda0] ss:$28 sps:$4 sm:$0xff]   ;;  %v8786_v49 = vld [vmem:[#allocation24 + $0x9e8] ss:$28 sps:$4 sm:$0xff]   ;;  %v8792_v4 = vld [vmem:[#allocation24 + $0x9b0] ss:$28 sps:$4 sm:$0xff]  }
 0x692   :  { %8914 = vtanh.f32 %v6656_v10  ;;  %v6658_v30 = vadd.f32 %v6657_v60, %v6617_v12  ;;  %6911 = vmatpush1.bf16.msra.mxu0 %v8732_v31  ;;  %v8789_v35 = vld [vmem:[#allocation24 + $0xd68] ss:$28 sps:$4 sm:$0xff]   ;;  %v8797_v31 = vld [vmem:[#allocation24 + $0xd34] ss:$28 sps:$4 sm:$0xff]   ;;  %v8804_v40 = vld [vmem:[#allocation24 + $0x940] ss:$28 sps:$4 sm:$0xff]  }
 0x693   :  { %6952 = vmatpush1.bf16.msra.mxu1 %v8735_v36  ;;  %v6619_v17 = vpop.f32.mrf.mxu0  ;;  %v6660_v5 = vpop.f32.mrf.mxu1  ;;  %6912 = vmatprep.subr.bf16.mxu0 %v8740_v8  ;;  %v8795_v60 = vld [vmem:[#allocation24 + $0xd30] ss:$28 sps:$4 sm:$0xff]   ;;  %v8800_v36 = vld [vmem:[#allocation24 + $0x97c] ss:$28 sps:$4 sm:$0xff]   ;;  %v8809_v21 = vld [vmem:[#allocation24 + $0xcc4] ss:$28 sps:$4 sm:$0xff]  }
 0x694   :  { %8916 = vtanh.f32 %v6658_v30  ;;  %6953 = vmatprep.subr.bf16.mxu1 %v8743_v13  ;;  %v8803_v8 = vld [vmem:[#allocation24 + $0xcfc] ss:$28 sps:$4 sm:$0xff]   ;;  %v8806_v13 = vld [vmem:[#allocation24 + $0x944] ss:$28 sps:$4 sm:$0xff]   ;;  %v8815_v17 = vld [vmem:[#allocation24 + $0xc8c] ss:$28 sps:$4 sm:$0xff]  }
 0x695   :  { %v8798_v10 = vld [vmem:[#allocation24 + $0x978] ss:$28 sps:$4 sm:$0xff]   ;;  %v8807_v30 = vld [vmem:[#allocation24 + $0xcc0] ss:$28 sps:$4 sm:$0xff]   ;;  %v8810_v5 = vld [vmem:[#allocation24 + $0x908] ss:$28 sps:$4 sm:$0xff]  }
 0x696   :  { %6913 = vmatpush1.bf16.msra.mxu0 %v8738_v15  ;;  %v8801_v12 = vld [vmem:[#allocation24 + $0xcf8] ss:$28 sps:$4 sm:$0xff]   ;;  %v8812_v15 = vld [vmem:[#allocation24 + $0x90c] ss:$28 sps:$4 sm:$0xff]  }
 0x697   :  { %6954 = vmatpush1.bf16.msra.mxu1 %v8741_v6  ;;  %6914 = vmatprep.subr.bf16.mxu0 %v8746_v7  ;;  %v8813_v6 = vld [vmem:[#allocation24 + $0xc88] ss:$28 sps:$4 sm:$0xff]   ;;  %v8818_v7 = vld [vmem:[#allocation24 + $0x8d4] ss:$28 sps:$4 sm:$0xff]  }
 0x698   :  { %6955 = vmatprep.subr.bf16.mxu1 %v8749_v50  ;;  %v8821_v50 = vld [vmem:[#allocation24 + $0xc54] ss:$28 sps:$4 sm:$0xff]  }
 0x69a   :  { %6915 = vmatpush1.bf16.msra.mxu0 %v8744_v43  ;;  %v8816_v43 = vld [vmem:[#allocation24 + $0x8d0] ss:$28 sps:$4 sm:$0xff]  }
 0x69b   :  { %6956 = vmatpush1.bf16.msra.mxu1 %v8747_v34  ;;  %6916 = vmatprep.subr.bf16.mxu0 %v8752_v24  ;;  %v8819_v34 = vld [vmem:[#allocation24 + $0xc50] ss:$28 sps:$4 sm:$0xff]   ;;  %v8822_v24 = vld [vmem:[#allocation24 + $0x360] ss:$28 sps:$4 sm:$0xff]  }
 0x69c   :  { %6957 = vmatprep.subr.bf16.mxu1 %v8755_v32  ;;  %v8823_v32 = vld [vmem:[#allocation24 + $0x6e0] ss:$28 sps:$4 sm:$0xff]  }
 0x69e   :  { %6917 = vmatpush1.bf16.msra.mxu0 %v8750_v1  ;;  %v8824_v1 = vld [vmem:[#allocation24 + $0x1a0] ss:$28 sps:$4 sm:$0xff]  }
 0x69f   :  { %v8915_v46 = vpop.eup %8914  ;;  %6958 = vmatpush1.bf16.msra.mxu1 %v8753_v29  ;;  %6918 = vmatprep.subr.bf16.mxu0 %v8758_v23  ;;  %v8825_v29 = vld [vmem:[#allocation24 + $0x520] ss:$28 sps:$4 sm:$0xff]   ;;  %v8826_v23 = vld [vmem:[#allocation24 + $0x328] ss:$28 sps:$4 sm:$0xff]  }
 0x6a0   :  { %7157 = vst [vmem:[%s9861_s17] sm:$0xff] %v8915_v46  ;;  %6959 = vmatprep.subr.bf16.mxu1 %v8761_v44 }
 0x6a1   :  { %v8917_v52 = vpop.eup %8916 }
 0x6a2   :  { %7158 = vst [vmem:[%s9861_s17 + $0x8] sm:$0xff] %v8917_v52  ;;  %6919 = vmatpush1.bf16.msra.mxu0 %v8756_v63  ;;  %v8827_v63 = vld [vmem:[#allocation24 + $0x6a8] ss:$28 sps:$4 sm:$0xff]   ;;  %v8830_v52 = vld [vmem:[#allocation24 + $0x2f0] ss:$28 sps:$4 sm:$0xff]  }
 0x6a3   :  { %6960 = vmatpush1.bf16.msra.mxu1 %v8759_v61  ;;  %6920 = vmatprep.subr.bf16.mxu0 %v8764_v22  ;;  %v8828_v61 = vld [vmem:[#allocation24 + $0x168] ss:$28 sps:$4 sm:$0xff]  }
 0x6a4   :  { %6961 = vmatprep.subr.bf16.mxu1 %v8767_v47  ;;  %v8829_v47 = vld [vmem:[#allocation24 + $0x4e8] ss:$28 sps:$4 sm:$0xff]  }
 0x6a6   :  { %6921 = vmatpush1.bf16.msra.mxu0 %v8762_v28 }
 0x6a7   :  { %6962 = vmatpush1.bf16.msra.mxu1 %v8765_v56  ;;  %6922 = vmatprep.subr.bf16.mxu0 %v8770_v59  ;;  %v8831_v56 = vld [vmem:[#allocation24 + $0x670] ss:$28 sps:$4 sm:$0xff]  }
 0x6a8   :  { %6963 = vmatprep.subr.bf16.mxu1 %v8773_v27 }
 0x6aa   :  { %6923 = vmatpush1.bf16.msra.mxu0 %v8768_v38  ;;  %v8832_v38 = vld [vmem:[#allocation24 + $0x130] ss:$28 sps:$4 sm:$0xff]  }
 0x6ab   :  { %6964 = vmatpush1.bf16.msra.mxu1 %v8771_v19  ;;  %6924 = vmatprep.subr.bf16.mxu0 %v8776_v51  ;;  %v8834_v51 = vld [vmem:[#allocation24 + $0x2b8] ss:$28 sps:$4 sm:$0xff]  }
 0x6ac   :  { %6965 = vmatprep.subr.bf16.mxu1 %v8779_v26 }
 0x6ae   :  { %6925 = vmatpush2.bf16.msra.mxu0 %v8774_v54  ;;  %v8835_v54 = vld [vmem:[#allocation24 + $0x638] ss:$28 sps:$4 sm:$0xff]  }
 0x6af   :  { %6966 = vmatpush2.bf16.msra.mxu1 %v8777_v55  ;;  %6926 = vmatprep.subr.bf16.mxu0 %v8782_v16  ;;  %v8836_v55 = vld [vmem:[#allocation24 + $0xf8] ss:$28 sps:$4 sm:$0xff]   ;;  %v8838_v16 = vld [vmem:[#allocation24 + $0x280] ss:$28 sps:$4 sm:$0xff]  }
 0x6b0   :  { %6967 = vmatprep.subr.bf16.mxu1 %v8785_v39  ;;  %v8839_v39 = vld [vmem:[#allocation24 + $0x600] ss:$28 sps:$4 sm:$0xff]  }
 0x6b2   :  { %6927 = vmatpush2.bf16.msra.mxu0 %v8780_v45  ;;  %v8840_v45 = vld [vmem:[#allocation24 + $0xc0] ss:$28 sps:$4 sm:$0xff]  }
 0x6b3   :  { %6968 = vmatpush2.bf16.msra.mxu1 %v8783_v41  ;;  %6928 = vmatprep.subr.bf16.mxu0 %v8788_v57  ;;  %v8841_v41 = vld [vmem:[#allocation24 + $0x440] ss:$28 sps:$4 sm:$0xff]   ;;  %v8842_v57 = vld [vmem:[#allocation24 + $0x248] ss:$28 sps:$4 sm:$0xff]  }
 0x6b4   :  { %6969 = vmatprep.subr.bf16.mxu1 %v8791_v62  ;;  %v8843_v62 = vld [vmem:[#allocation24 + $0x5c8] ss:$28 sps:$4 sm:$0xff]  }
 0x6b6   :  { %6929 = vmatpush2.bf16.msra.mxu0 %v8786_v49  ;;  %v8844_v49 = vld [vmem:[#allocation24 + $0x88] ss:$28 sps:$4 sm:$0xff]  }
 0x6b7   :  { %6970 = vmatpush2.bf16.msra.mxu1 %v8789_v35  ;;  %6930 = vmatprep.subr.bf16.mxu0 %v8794_v0  ;;  %v8845_v35 = vld [vmem:[#allocation24 + $0x408] ss:$28 sps:$4 sm:$0xff]   ;;  %v8846_v0 = vld [vmem:[#allocation24 + $0x210] ss:$28 sps:$4 sm:$0xff]  }
 0x6b8   :  { %6971 = vmatprep.subr.bf16.mxu1 %v8797_v31  ;;  %v8847_v31 = vld [vmem:[#allocation24 + $0x590] ss:$28 sps:$4 sm:$0xff]  }
 0x6ba   :  { %6931 = vmatpush2.bf16.msra.mxu0 %v8792_v4  ;;  %v8848_v4 = vld [vmem:[#allocation24 + $0x50] ss:$28 sps:$4 sm:$0xff]  }
 0x6bb   :  { %6972 = vmatpush2.bf16.msra.mxu1 %v8795_v60  ;;  %6932 = vmatprep.subr.bf16.mxu0 %v8800_v36  ;;  %v8849_v60 = vld [vmem:[#allocation24 + $0x3d0] ss:$28 sps:$4 sm:$0xff]   ;;  %v8850_v36 = vld [vmem:[#allocation24 + $0x1d8] ss:$28 sps:$4 sm:$0xff]  }
 0x6bc   :  { %6973 = vmatprep.subr.bf16.mxu1 %v8803_v8  ;;  %v8851_v8 = vld [vmem:[#allocation24 + $0x558] ss:$28 sps:$4 sm:$0xff]  }
 0x6be   :  { %6933 = vmatpush2.bf16.msra.mxu0 %v8798_v10  ;;  %v8852_v10 = vld [vmem:[#allocation24 + $0x18] ss:$28 sps:$4 sm:$0xff]  }
 0x6bf   :  { %6974 = vmatpush2.bf16.msra.mxu1 %v8801_v12  ;;  %6934 = vmatprep.subr.bf16.mxu0 %v8806_v13  ;;  %v8853_v12 = vld [vmem:[#allocation24 + $0x398] ss:$28 sps:$4 sm:$0xff]   ;;  %v8854_v13 = vld [vmem:[#allocation24 + $0xa60] ss:$28 sps:$4 sm:$0xff]  }
 0x6c0   :  { %6975 = vmatprep.subr.bf16.mxu1 %v8809_v21  ;;  %v8855_v21 = vld [vmem:[#allocation24 + $0xde0] ss:$28 sps:$4 sm:$0xff]  }
 0x6c2   :  { %6935 = vmatpush2.bf16.msra.mxu0 %v8804_v40  ;;  %v8856_v40 = vld [vmem:[#allocation24 + $0x8a0] ss:$28 sps:$4 sm:$0xff]  }
 0x6c3   :  { %6976 = vmatpush2.bf16.msra.mxu1 %v8807_v30  ;;  %6936 = vmatprep.subr.bf16.mxu0 %v8812_v15  ;;  %v8857_v30 = vld [vmem:[#allocation24 + $0xc20] ss:$28 sps:$4 sm:$0xff]   ;;  %v8858_v15 = vld [vmem:[#allocation24 + $0xa28] ss:$28 sps:$4 sm:$0xff]  }
 0x6c4   :  { %6977 = vmatprep.subr.bf16.mxu1 %v8815_v17  ;;  %v8859_v17 = vld [vmem:[#allocation24 + $0xda8] ss:$28 sps:$4 sm:$0xff]  }
 0x6c6   :  { %6937 = vmatpush2.bf16.msra.mxu0 %v8810_v5  ;;  %v8860_v5 = vld [vmem:[#allocation24 + $0x868] ss:$28 sps:$4 sm:$0xff]  }
 0x6c7   :  { %6978 = vmatpush2.bf16.msra.mxu1 %v8813_v6  ;;  %6938 = vmatprep.subr.bf16.mxu0 %v8818_v7  ;;  %v8861_v6 = vld [vmem:[#allocation24 + $0xbe8] ss:$28 sps:$4 sm:$0xff]   ;;  %v8862_v7 = vld [vmem:[#allocation24 + $0x9f0] ss:$28 sps:$4 sm:$0xff]  }
 0x6c8   :  { %6979 = vmatprep.subr.bf16.mxu1 %v8821_v50  ;;  %v8863_v50 = vld [vmem:[#allocation24 + $0xd70] ss:$28 sps:$4 sm:$0xff]  }
 0x6ca   :  { %6939 = vmatpush2.bf16.msra.mxu0 %v8816_v43  ;;  %v8864_v43 = vld [vmem:[#allocation24 + $0x830] ss:$28 sps:$4 sm:$0xff]  }
 0x6cb   :  { %6980 = vmatpush2.bf16.msra.mxu1 %v8819_v34  ;;  %7980 = vmatprep.subr.bf16.mxu0 %v8822_v24  ;;  %v8866_v34 = vld [vmem:[#allocation24 + $0x9b8] ss:$28 sps:$4 sm:$0xff]  }
 0x6cc   :  { %8002 = vmatprep.subr.bf16.mxu1 %v8823_v32  ;;  %v8868_v24 = vld [vmem:[#allocation24 + $0x7f8] ss:$28 sps:$4 sm:$0xff]   ;;  %v8870_v32 = vld [vmem:[#allocation24 + $0x980] ss:$28 sps:$4 sm:$0xff]  }
 0x6cd   :  { %v9797_v44 = vpop.f32.mrf.mxu0  ;;  %6941 = vmatmul.mubr.bf16.vlgmr.msra.gmra.mxu0 %v9753_v37 }
 0x6ce   :  { %v9800_v46 = vpop.f32.mrf.mxu1  ;;  %6982 = vmatmul.mubr.bf16.vlgmr.msra.gmra.mxu1 %v9755_v42  ;;  %7981 = vmatpush3.bf16.msra.mxu0 %v8824_v1  ;;  %v8871_v1 = vld [vmem:[#allocation24 + $0xd00] ss:$28 sps:$4 sm:$0xff]  }
 0x6cf   :  { %7022 = vmatprep.mubr.bf16.mxu0 %v9729_v14  ;;  %8003 = vmatpush3.bf16.msra.mxu1 %v8825_v29  ;;  %v9804_v22 = vpop.f32.mrf.mxu0  ;;  %v8833_v14 = vld [vmem:[#allocation24 + $0x4b0] ss:$28 sps:$4 sm:$0xff]   ;;  %v8873_v29 = vld [vmem:[#allocation24 + $0xb40] ss:$28 sps:$4 sm:$0xff]  }
 0x6d0   :  { %7062 = vmatprep.mubr.bf16.mxu1 %v9731_v20  ;;  %v9807_v28 = vpop.f32.mrf.mxu1  ;;  %7982 = vmatprep.subr.bf16.mxu0 %v8826_v23  ;;  %v8837_v20 = vld [vmem:[#allocation24 + $0x478] ss:$28 sps:$4 sm:$0xff]   ;;  %v8874_v23 = vld [vmem:[#allocation24 + $0x948] ss:$28 sps:$4 sm:$0xff]  }
 0x6d1   :  { %v6700_v59 = vpop.f32.mrf.mxu0  ;;  %8004 = vmatprep.subr.bf16.mxu1 %v8827_v63  ;;  %v8875_v63 = vld [vmem:[#allocation24 + $0xcc8] ss:$28 sps:$4 sm:$0xff]  }
 0x6d2   :  { %v6741_v27 = vpop.f32.mrf.mxu1  ;;  %7983 = vmatpush3.bf16.msra.mxu0 %v8828_v61  ;;  %v8876_v61 = vld [vmem:[#allocation24 + $0x788] ss:$28 sps:$4 sm:$0xff]   ;;  %v8880_v59 = vld [vmem:[#allocation24 + $0x750] ss:$28 sps:$4 sm:$0xff]  }
 0x6d3   :  { %8005 = vmatpush3.bf16.msra.mxu1 %v8829_v47  ;;  %v6701_v19 = vpop.f32.mrf.mxu0  ;;  %7984 = vmatprep.subr.bf16.mxu0 %v8830_v52  ;;  %v8877_v47 = vld [vmem:[#allocation24 + $0xb08] ss:$28 sps:$4 sm:$0xff]   ;;  %v8878_v52 = vld [vmem:[#allocation24 + $0x910] ss:$28 sps:$4 sm:$0xff]  }
 0x6d4   :  { %v6742_v26 = vpop.f32.mrf.mxu1  ;;  %8006 = vmatprep.subr.bf16.mxu1 %v8831_v56  ;;  %v8879_v56 = vld [vmem:[#allocation24 + $0xc90] ss:$28 sps:$4 sm:$0xff]   ;;  %v4170_v19 = vrot.slane %v9777_v58, %v9482_v9 }
 0x6d5   :  { %v8881_v27 = vld [vmem:[#allocation24 + $0xad0] ss:$28 sps:$4 sm:$0xff]   ;;  %v8884_v26 = vld [vmem:[#allocation24 + $0x718] ss:$28 sps:$4 sm:$0xff]  }
 0x6d6   :  { %7985 = vmatpush3.bf16.msra.mxu0 %v8832_v38  ;;  %v8882_v38 = vld [vmem:[#allocation24 + $0x8d8] ss:$28 sps:$4 sm:$0xff]  }
 0x6d7   :  { %8007 = vmatpush3.bf16.msra.mxu1 %v8833_v14  ;;  %7986 = vmatprep.subr.bf16.mxu0 %v8834_v51  ;;  %v8883_v14 = vld [vmem:[#allocation24 + $0xc58] ss:$28 sps:$4 sm:$0xff]   ;;  %v4174_v51 = vrot.slane %v9777_v58, %v9485_v11 }
 0x6d8   :  { %8008 = vmatprep.subr.bf16.mxu1 %v8835_v54  ;;  %v8885_v54 = vld [vmem:[#allocation24 + $0xa98] ss:$28 sps:$4 sm:$0xff]  }
 0x6da   :  { %7987 = vmatpush3.bf16.msra.mxu0 %v8836_v55  ;;  %v6697_v55 = vadd.f32 %v9797_v44, %v4170_v19 }
 0x6db   :  { %8009 = vmatpush3.bf16.msra.mxu1 %v8837_v20  ;;  %7988 = vmatprep.subr.bf16.mxu0 %v8838_v16  ;;  %v6699_v20 = vadd.f32 %v9804_v22, %v4174_v51 }
 0x6dc   :  { %8010 = vmatprep.subr.bf16.mxu1 %v8839_v39  ;;  %v6738_v16 = vadd.f32 %v9800_v46, %v6697_v55 }
 0x6dd   :  { %v6740_v39 = vadd.f32 %v9807_v28, %v6699_v20 }
 0x6de   :  { %7989 = vmatpush3.bf16.msra.mxu0 %v8840_v45 }
 0x6df   :  { %8011 = vmatpush3.bf16.msra.mxu1 %v8841_v41  ;;  %7990 = vmatprep.subr.bf16.mxu0 %v8842_v57 }
 0x6e0   :  { %8012 = vmatprep.subr.bf16.mxu1 %v8843_v62 }
 0x6e2   :  { %7991 = vmatpush3.bf16.msra.mxu0 %v8844_v49 }
 0x6e3   :  { %8013 = vmatpush3.bf16.msra.mxu1 %v8845_v35  ;;  %7992 = vmatprep.subr.bf16.mxu0 %v8846_v0 }
 0x6e4   :  { %8014 = vmatprep.subr.bf16.mxu1 %v8847_v31 }
 0x6e6   :  { %7993 = vmatpush3.bf16.msra.mxu0 %v8848_v4 }
 0x6e7   :  { %8015 = vmatpush3.bf16.msra.mxu1 %v8849_v60  ;;  %7994 = vmatprep.subr.bf16.mxu0 %v8850_v36 }
 0x6e8   :  { %8016 = vmatprep.subr.bf16.mxu1 %v8851_v8 }
 0x6ea   :  { %7995 = vmatpush3.bf16.msra.mxu0 %v8852_v10 }
 0x6eb   :  { %8017 = vmatpush3.bf16.msra.mxu1 %v8853_v12  ;;  %8024 = vmatprep.subr.bf16.mxu0 %v8854_v13  ;;  %v4178_v13 = vrot.slane %v9777_v58, %v9631_v48 }
 0x6ec   :  { %8046 = vmatprep.subr.bf16.mxu1 %v8855_v21  ;;  %v4182_v21 = vrot.slane %v9777_v58, %v9634_v18 }
 0x6ed   :  { %7023 = vmatmul.mubr.bf16.vlgmr.msra.gmra.mxu0 %v9733_v2  ;;  %v8865_v2 = vld [vmem:[#allocation24 + $0xbb0] ss:$28 sps:$4 sm:$0xff]  }
 0x6ee   :  { %7063 = vmatmul.mubr.bf16.vlgmr.msra.gmra.mxu1 %v9735_v3  ;;  %8025 = vmatpush3.bf16.msra.mxu0 %v8856_v40  ;;  %v8867_v3 = vld [vmem:[#allocation24 + $0xd38] ss:$28 sps:$4 sm:$0xff]  }
 0x6ef   :  { %7102 = vmatprep.mubr.bf16.mxu0 %v9741_v33  ;;  %8047 = vmatpush3.bf16.msra.mxu1 %v8857_v30  ;;  %v8869_v33 = vld [vmem:[#allocation24 + $0xb78] ss:$28 sps:$4 sm:$0xff]  }
 0x6f0   :  { %7142 = vmatprep.mubr.bf16.mxu1 %v9744_v25  ;;  %8026 = vmatprep.subr.bf16.mxu0 %v8858_v15  ;;  %v8872_v25 = vld [vmem:[#allocation24 + $0x7c0] ss:$28 sps:$4 sm:$0xff]  }
 0x6f1   :  { %8048 = vmatprep.subr.bf16.mxu1 %v8859_v17 }
 0x6f2   :  { %8027 = vmatpush3.bf16.msra.mxu0 %v8860_v5 }
 0x6f3   :  { %8049 = vmatpush3.bf16.msra.mxu1 %v8861_v6  ;;  %8028 = vmatprep.subr.bf16.mxu0 %v8862_v7 }
 0x6f4   :  { %8050 = vmatprep.subr.bf16.mxu1 %v8863_v50 }
 0x6f6   :  { %8029 = vmatpush3.bf16.msra.mxu0 %v8864_v43 }
 0x6f7   :  { %8051 = vmatpush3.bf16.msra.mxu1 %v8865_v2  ;;  %8030 = vmatprep.subr.bf16.mxu0 %v8866_v34 }
 0x6f8   :  { %8052 = vmatprep.subr.bf16.mxu1 %v8867_v3 }
 0x6fa   :  { %8031 = vmatpush3.bf16.msra.mxu0 %v8868_v24 }
 0x6fb   :  { %8053 = vmatpush3.bf16.msra.mxu1 %v8869_v33  ;;  %8032 = vmatprep.subr.bf16.mxu0 %v8870_v32 }
 0x6fc   :  { %8054 = vmatprep.subr.bf16.mxu1 %v8871_v1 }
 0x6fe   :  { %8033 = vmatpush3.bf16.msra.mxu0 %v8872_v25 }
 0x6ff   :  { %8055 = vmatpush3.bf16.msra.mxu1 %v8873_v29  ;;  %8034 = vmatprep.subr.bf16.mxu0 %v8874_v23 }
 0x700   :  { %8056 = vmatprep.subr.bf16.mxu1 %v8875_v63 }
 0x702   :  { %8035 = vmatpush3.bf16.msra.mxu0 %v8876_v61 }
 0x703   :  { %8057 = vmatpush3.bf16.msra.mxu1 %v8877_v47  ;;  %8036 = vmatprep.subr.bf16.mxu0 %v8878_v52 }
 0x704   :  { %8058 = vmatprep.subr.bf16.mxu1 %v8879_v56 }
 0x706   :  { %8037 = vmatpush3.bf16.msra.mxu0 %v8880_v59  ;;  %v4186_v59 = vrot.slane %v9777_v58, %v9653_v53 }
 0x707   :  { %8059 = vmatpush3.bf16.msra.mxu1 %v8881_v27  ;;  %8038 = vmatprep.subr.bf16.mxu0 %v8882_v38 }
 0x708   :  { %8060 = vmatprep.subr.bf16.mxu1 %v8883_v14 }
 0x70a   :  { %8039 = vmatpush3.bf16.msra.mxu0 %v8884_v26 }
 0x70b   :  { %8061 = vmatpush3.bf16.msra.mxu1 %v8885_v54 }
 0x70d   :  { %v6778_v9 = vpop.f32.mrf.mxu0  ;;  %7103 = vmatmul.mubr.bf16.vlgmr.msra.gmra.mxu0 %v9753_v37 }
 0x70e   :  { %v6779_v11 = vadd.f32 %v6778_v9, %v6738_v16  ;;  %v6819_v45 = vpop.f32.mrf.mxu1  ;;  %7143 = vmatmul.mubr.bf16.vlgmr.msra.gmra.mxu1 %v9755_v42 }
 0x70f   :  { %v6780_v41 = vpop.f32.mrf.mxu0 }
 0x710   :  { %v6820_v57 = vadd.f32 %v6819_v45, %v6779_v11  ;;  %v6781_v62 = vadd.f32 %v6780_v41, %v6740_v39  ;;  %v6821_v44 = vpop.f32.mrf.mxu1 }
 0x711   :  { %v6782_v49 = vpop.f32.mrf.mxu0 }
 0x712   :  { %8918 = vtanh.f32 %v6820_v57  ;;  %v6822_v22 = vadd.f32 %v6821_v44, %v6781_v62  ;;  %v6823_v35 = vpop.f32.mrf.mxu1 }
 0x713   :  { %v6783_v0 = vpop.f32.mrf.mxu0 }
 0x714   :  { %8920 = vtanh.f32 %v6822_v22  ;;  %v6824_v46 = vpop.f32.mrf.mxu1 }
 0x71f   :  { %v8919_v31 = vpop.eup %8918 }
 0x720   :  { %7159 = vst [vmem:[%s9861_s17 + $0x10] sm:$0xff] %v8919_v31 }
 0x721   :  { %v8921_v37 = vpop.eup %8920 }
 0x722   :  { %7160 = vst [vmem:[%s9861_s17 + $0x18] sm:$0xff] %v8921_v37 }
 0x74d   :  { %v6860_v42 = vpop.f32.mrf.mxu0 }
 0x74e   :  { %v6901_v28 = vpop.f32.mrf.mxu1  ;;  %v6861_v40 = vadd.f32 %v6860_v42, %v4178_v13 }
 0x74f   :  { %v6862_v4 = vpop.f32.mrf.mxu0 }
 0x750   :  { %v6903_v60 = vpop.f32.mrf.mxu1  ;;  %v6863_v30 = vadd.f32 %v6862_v4, %v4182_v21  ;;  %v6902_v15 = vadd.f32 %v6901_v28, %v6861_v40 }
 0x751   :  { %v6864_v36 = vpop.f32.mrf.mxu0 }
 0x752   :  { %v6905_v8 = vpop.f32.mrf.mxu1  ;;  %v6904_v5 = vadd.f32 %v6903_v60, %v6863_v30 }
 0x753   :  { %v6865_v10 = vpop.f32.mrf.mxu0 }
 0x754   :  { %v6906_v12 = vpop.f32.mrf.mxu1 }
 0x78d   :  { %v6942_v17 = vpop.f32.mrf.mxu0 }
 0x78e   :  { %v6943_v6 = vadd.f32 %v6942_v17, %v6902_v15  ;;  %v6983_v7 = vpop.f32.mrf.mxu1 }
 0x78f   :  { %v6944_v50 = vpop.f32.mrf.mxu0 }
 0x790   :  { %v6984_v43 = vadd.f32 %v6983_v7, %v6943_v6  ;;  %v6945_v2 = vadd.f32 %v6944_v50, %v6904_v5  ;;  %v6985_v34 = vpop.f32.mrf.mxu1 }
 0x791   :  { %v6946_v3 = vpop.f32.mrf.mxu0 }
 0x792   :  { %8922 = vtanh.f32 %v6984_v43  ;;  %v6986_v24 = vadd.f32 %v6985_v34, %v6945_v2  ;;  %v6987_v33 = vpop.f32.mrf.mxu1 }
 0x793   :  { %v6947_v32 = vpop.f32.mrf.mxu0 }
 0x794   :  { %8924 = vtanh.f32 %v6986_v24  ;;  %v6988_v48 = vpop.f32.mrf.mxu1 }
 0x79f   :  { %v8923_v1 = vpop.eup %8922 }
 0x7a0   :  { %7161 = vst [vmem:[%s9861_s17 + $0x20] sm:$0xff] %v8923_v1 }
 0x7a1   :  { %v8925_v18 = vpop.eup %8924 }
 0x7a2   :  { %7162 = vst [vmem:[%s9861_s17 + $0x28] sm:$0xff] %v8925_v18 }
 0x7ad   :  { %v7996_v25 = vpop.f32.mrf.mxu0 }
 0x7ae   :  { %v8018_v29 = vpop.f32.mrf.mxu1 }
 0x7af   :  { %v7997_v23 = vpop.f32.mrf.mxu0 }
 0x7b0   :  { %v8019_v63 = vpop.f32.mrf.mxu1  ;;  %v7998_v27 = vadd.f32 %v7997_v23, %v7996_v25 }
 0x7b1   :  { %v7999_v61 = vpop.f32.mrf.mxu0  ;;  %v8020_v14 = vadd.f32 %v8019_v63, %v8018_v29 }
 0x7b2   :  { %v8021_v47 = vpop.f32.mrf.mxu1  ;;  %v7025_v38 = vadd.f32 %v7998_v27, %v4186_v59 }
 0x7b3   :  { %v8000_v52 = vpop.f32.mrf.mxu0 }
 0x7b4   :  { %v8022_v56 = vpop.f32.mrf.mxu1  ;;  %v7065_v54 = vadd.f32 %v8020_v14, %v7025_v38 }
 0x7cd   :  { %v8040_v19 = vpop.f32.mrf.mxu0 }
 0x7ce   :  { %v8062_v51 = vpop.f32.mrf.mxu1 }
 0x7cf   :  { %v8041_v26 = vpop.f32.mrf.mxu0 }
 0x7d0   :  { %v8042_v55 = vadd.f32 %v8041_v26, %v8040_v19  ;;  %v8063_v20 = vpop.f32.mrf.mxu1 }
 0x7d1   :  { %v8043_v16 = vpop.f32.mrf.mxu0  ;;  %v8064_v39 = vadd.f32 %v8063_v20, %v8062_v51 }
 0x7d2   :  { %v7105_v9 = vadd.f32 %v8042_v55, %v7065_v54  ;;  %v8065_v11 = vpop.f32.mrf.mxu1 }
 0x7d3   :  { %v8044_v45 = vpop.f32.mrf.mxu0 }
 0x7d4   :  { %v7145_v41 = vadd.f32 %v8064_v39, %v7105_v9  ;;  %v8066_v57 = vpop.f32.mrf.mxu1 }
 0x7d6   :  { %8926 = vtanh.f32 %v7145_v41 }
 0x7e3   :  { %v8927_v62 = vpop.eup %8926 }
 0x7e4   :  { %7164 = vst.msk [vmem:[%s9861_s17 + $0x30] sm:$0xff] %vm7163_vm0, %v8927_v62 }
 0x7e5   :  { %7169 = vsyncpa [#allocation3], 1 }
 0x7e6   :  { %7170 = vsyncpa [#allocation5], 1 }
 0x7e7   :  { %7171 = vsyncpa [#allocation8], 1 }
 0x7e8   :  { %7172 = vsyncpa [#allocation11], 1 }
 0x7e9   :  { %7173 = vsyncpa [#allocation14], 1 }
 0x7ea   :  { %7174 = vsyncpa [#allocation17], 1 }
 0x7eb   :  { %7175 = vsyncpa [#allocation20], 1 }
 0x7ec   :  { %7176 = vsyncpa [#allocation23], 1 }
 0x7ed   :  { %7177 = vsyncpa [#allocation26], 1 }

</bundles_post_ra>
